<compile_context>
chip_gen: v7x
topology: tpu7x:2x2x1
jax: 0.10.0
libtpu: 0.0.40
codegen_flags: <defaults>
</compile_context>

<pallas_src>
import functools
import math

import jax
import jax.numpy as jnp
from jax.experimental import pallas as pl
from jax.experimental.pallas import tpu as pltpu


def _layernorm(v, g, b, eps):
    mu = jnp.mean(v, axis=-1, keepdims=True)
    var = jnp.mean((v - mu) ** 2, axis=-1, keepdims=True)
    return (v - mu) * jax.lax.rsqrt(var + eps) * g + b


def encoder_block_kernel(x_ref, ln1_g, ln1_b, wqkv, bqkv, wo, bo,
                         ln2_g, ln2_b, w1, b1, w2, b2,
                         o_ref,
                         ah_s, yn_s, acc_s,
                         *, num_heads, bT):
    eps = jnp.float32(1e-6)
    mk = pl.program_id(1)
    n_mk = pl.num_programs(1)
    S = x_ref.shape[1]
    D = x_ref.shape[2]

    # ---- first step of the mlp axis: attention + residual-1 + ln_2 ----------
    @pl.when(mk == 0)
    def _attention_and_ln2():
        dh = D // num_heads
        scale = jnp.float32(1.0 / math.sqrt(dh))

        for bi in range(bT):                              # static unroll over batch rows
            x = x_ref[bi]                                 # (S, D) f32
            xn = _layernorm(x, ln1_g[0], ln1_b[0], eps)

            # fused QKV projection: one wide (S,D)@(D,3D) bf16 matmul, f32 accum.
            qkv = jnp.dot(xn.astype(jnp.bfloat16), wqkv[...],
                          preferred_element_type=jnp.float32) + bqkv[0]
            # fold the 1/sqrt(dh) scale into q (S*D mults, not S*S per head).
            q_bf = (qkv[:, 0 * D:1 * D] * scale).astype(jnp.bfloat16)   # (S, D)
            # cast K once to bf16, transpose once (bf16 XLU transpose).
            k_bf_t = qkv[:, 1 * D:2 * D].astype(jnp.bfloat16).T          # (D, S)
            v_bf = qkv[:, 2 * D:3 * D].astype(jnp.bfloat16)              # (S, D)

            # Per-head attention; results written to the bf16 concat scratch at
            # static column offsets (only one head's (S,S) scores live at a time).
            for h in range(num_heads):
                qh = q_bf[:, h * dh:(h + 1) * dh]          # (S, dh) bf16 (pre-scaled)
                kh_t = k_bf_t[h * dh:(h + 1) * dh, :]      # (dh, S) bf16
                vh = v_bf[:, h * dh:(h + 1) * dh]          # (S, dh) bf16

                s = jnp.dot(qh, kh_t, preferred_element_type=jnp.float32)
                s = s - jnp.max(s, axis=-1, keepdims=True)
                p = jnp.exp(s)
                p = p * pl.reciprocal(jnp.sum(p, axis=-1, keepdims=True), approx=True)

                ah = jnp.dot(p.astype(jnp.bfloat16), vh,
                             preferred_element_type=jnp.float32)         # (S, dh)
                ah_s[:, h * dh:(h + 1) * dh] = ah.astype(jnp.bfloat16)

            # single K=D output projection (full MXU utilization).
            attn = jnp.dot(ah_s[...], wo[...], preferred_element_type=jnp.float32)
            x1 = attn + bo[0] + x                          # residual 1
            yn = _layernorm(x1, ln2_g[0], ln2_b[0], eps)
            yn_s[bi * S:(bi + 1) * S, :] = yn.astype(jnp.bfloat16)  # cached for every MLP tile
            acc_s[bi * S:(bi + 1) * S, :] = x1                       # residual 2 seeds accumulator

    # ---- every step: one (D, tM) / (tM, D) slice of the MLP over all bT rows --
    h1 = jnp.dot(yn_s[...], w1[...], preferred_element_type=jnp.float32) + b1[0]
    h1 = 0.5 * h1 * (1.0 + jax.lax.erf(h1 * jnp.float32(1.0 / math.sqrt(2.0))))
    acc_s[...] += jnp.dot(h1.astype(jnp.bfloat16), w2[...],
                          preferred_element_type=jnp.float32)

    @pl.when(mk == n_mk - 1)
    def _finalize():
        for bi in range(bT):
            o_ref[bi] = (acc_s[bi * S:(bi + 1) * S, :] + b2[0]).astype(o_ref.dtype)


def _vmem_capacity_bytes():
    """Physical VMEM per core (falls back to the most conservative generation)."""
    try:
        return int(pltpu.get_tpu_info().vmem_capacity_bytes)
    except Exception:
        return 64 * 1024 * 1024   # v7x-sized fallback: safe everywhere


def _pick_batch_block(B, max_bt):
    """Largest divisor of B <= max_bt that keeps >= 2 parallel grid steps."""
    best = 1
    for bt in range(1, min(B, max_bt) + 1):
        if B % bt == 0 and B // bt >= 2:
            best = bt
    return best


def _pick_mlp_tile(M, vmem_cap, bT):
    """Largest multiple-of-128 divisor of M within a generation-aware budget."""
    if vmem_cap >= 96 * 1024 * 1024:        # v5e / v6e: 128 MiB VMEM -> fat tiles
        max_tile = 1024
    else:                                    # v7x: 64 MiB per TC -> stay lean
        max_tile = 256 if bT > 1 else 512
    if M <= max_tile:
        return M
    t = max_tile - (max_tile % 128)
    while t >= 128:
        if M % t == 0:
            return t
        t -= 128
    return M


def encoder_block(x, params, num_heads, *, mlp_tile=None, batch_block=None,
                  out_dtype=None, single_buffer_consts=True):
    B, S, D = x.shape
    M = params["w1"].shape[1]
    if out_dtype is None:
        out_dtype = x.dtype

    vmem_cap = _vmem_capacity_bytes()

    if batch_block is None:
        batch_block = _pick_batch_block(B, max_bt=4 if vmem_cap >= 96 * 1024 * 1024 else 2)
    bT = batch_block
    assert B % bT == 0, "batch must be divisible by batch_block"

    if mlp_tile is None:
        mlp_tile = _pick_mlp_tile(M, vmem_cap, bT)
    assert M % mlp_tile == 0, "mlp_dim must be divisible by mlp_tile"
    n_mk = M // mlp_tile

    # Constant-index operands never change block index -> single-buffer them to
    # reclaim VMEM (double-buffering them is pure waste).
    const_kwargs = {"pipeline_mode": pl.Buffered(1)} if single_buffer_consts else {}

    def const_spec(a):
        nd = a.ndim
        return pl.BlockSpec(a.shape, lambda b, mk, _nd=nd: (0,) * _nd, **const_kwargs)

    in_specs = [
        pl.BlockSpec((bT, S, D), lambda b, mk: (b, 0, 0)),       # x (batch block)
        const_spec(params["ln1_g"]),
        const_spec(params["ln1_b"]),
        const_spec(params["wqkv"]),
        const_spec(params["bqkv"]),
        const_spec(params["wo"]),
        const_spec(params["bo"]),
        const_spec(params["ln2_g"]),
        const_spec(params["ln2_b"]),
        pl.BlockSpec((D, mlp_tile), lambda b, mk: (0, mk)),      # w1 streamed
        pl.BlockSpec((1, mlp_tile), lambda b, mk: (0, mk)),      # b1 streamed
        pl.BlockSpec((mlp_tile, D), lambda b, mk: (mk, 0)),      # w2 streamed
        const_spec(params["b2"]),
    ]
    out_specs = pl.BlockSpec((bT, S, D), lambda b, mk: (b, 0, 0))

    scratch_shapes = [
        pltpu.VMEM((S, D), jnp.bfloat16),        # per-row head-concat scratch
        pltpu.VMEM((bT * S, D), jnp.bfloat16),   # cached ln_2(x1) for all bT rows
        pltpu.VMEM((bT * S, D), jnp.float32),    # residual-2 / MLP accumulator
    ]

    kernel = functools.partial(encoder_block_kernel, num_heads=num_heads, bT=bT)

    # Generation-aware scoped VMEM: ~75% of physical, never below 32 MiB.
    vmem_limit = max(32 * 1024 * 1024, min(int(0.75 * vmem_cap), 112 * 1024 * 1024))

    return pl.pallas_call(
        kernel,
        out_shape=jax.ShapeDtypeStruct((B, S, D), out_dtype),
        grid_spec=pltpu.PrefetchScalarGridSpec(
            num_scalar_prefetch=0,
            grid=(B // bT, n_mk),
            in_specs=in_specs,
            out_specs=out_specs,
            scratch_shapes=scratch_shapes,
        ),
        compiler_params=pltpu.CompilerParams(
            dimension_semantics=("parallel", "arbitrary"),
            vmem_limit_bytes=vmem_limit,
        ),
    )(x, params["ln1_g"], params["ln1_b"], params["wqkv"], params["bqkv"],
      params["wo"], params["bo"], params["ln2_g"], params["ln2_b"],
      params["w1"], params["b1"], params["w2"], params["b2"])


def encoder_block_reference(x, params, num_heads):
    """Pure-JAX f32 reference mirroring the PyTorch forward (eval mode)."""
    eps = 1e-6
    B, S, D = x.shape
    dh = D // num_heads
    f32 = lambda a: a.astype(jnp.float32)

    def ln(v, g, b):
        mu = jnp.mean(v, axis=-1, keepdims=True)
        var = jnp.mean((v - mu) ** 2, axis=-1, keepdims=True)
        return (v - mu) / jnp.sqrt(var + eps) * g[0] + b[0]

    xn = ln(x, params["ln1_g"], params["ln1_b"])
    qkv = xn @ f32(params["wqkv"]) + params["bqkv"][0]
    q, k, v = jnp.split(qkv, 3, axis=-1)
    q = q.reshape(B, S, num_heads, dh).transpose(0, 2, 1, 3)
    k = k.reshape(B, S, num_heads, dh).transpose(0, 2, 1, 3)
    v = v.reshape(B, S, num_heads, dh).transpose(0, 2, 1, 3)
    s = jnp.einsum("bhqd,bhkd->bhqk", q, k) / jnp.sqrt(jnp.float32(dh))
    p = jax.nn.softmax(s, axis=-1)
    a = jnp.einsum("bhqk,bhkd->bhqd", p, v).transpose(0, 2, 1, 3).reshape(B, S, D)
    a = a @ f32(params["wo"]) + params["bo"][0]
    x1 = a + x
    yn = ln(x1, params["ln2_g"], params["ln2_b"])
    h1 = yn @ f32(params["w1"]) + params["b1"][0]
    h1 = 0.5 * h1 * (1.0 + jax.lax.erf(h1 / jnp.sqrt(jnp.float32(2.0))))
    y = h1 @ f32(params["w2"]) + params["b2"][0]
    return x1 + y


def init_params(key, hidden_dim, mlp_dim):
    ks = jax.random.split(key, 12)
    D, M = hidden_dim, mlp_dim
    bf16 = jnp.bfloat16
    return {
        "ln1_g": 1.0 + 0.1 * jax.random.normal(ks[8], (1, D), jnp.float32),
        "ln1_b": 0.1 * jax.random.normal(ks[9], (1, D), jnp.float32),
        "wqkv": (jax.random.normal(ks[0], (D, 3 * D), jnp.float32) * 0.05).astype(bf16),
        "bqkv": jax.random.normal(ks[1], (1, 3 * D), jnp.float32) * 0.1,
        "wo": (jax.random.normal(ks[2], (D, D), jnp.float32) * 0.05).astype(bf16),
        "bo": jax.random.normal(ks[3], (1, D), jnp.float32) * 0.1,
        "ln2_g": 1.0 + 0.1 * jax.random.normal(ks[10], (1, D), jnp.float32),
        "ln2_b": 0.1 * jax.random.normal(ks[11], (1, D), jnp.float32),
        "w1": (jax.random.normal(ks[4], (D, M), jnp.float32) * 0.05).astype(bf16),
        "b1": jax.random.normal(ks[5], (1, M), jnp.float32) * 0.1,
        "w2": (jax.random.normal(ks[6], (M, D), jnp.float32) * 0.05).astype(bf16),
        "b2": jax.random.normal(ks[7], (1, D), jnp.float32) * 0.1,
    }


if __name__ == "__main__":
    # Small shapes consistent with the (batch, seq, hidden) input of the module.
    # B=4 exercises the batch-blocked grid (bT=2, 2 parallel steps) and
    # mlp_dim=256 with mlp_tile=128 exercises the streamed-MLP axis.
    B, S, D = 4, 8, 32
    num_heads = 4
    mlp_dim = 256

    key = jax.random.PRNGKey(0)
    k_x, k_p = jax.random.split(key)
    x = jax.random.normal(k_x, (B, S, D), jnp.float32)
    params = init_params(k_p, D, mlp_dim)

    try:
        out = encoder_block(x, params, num_heads, mlp_tile=128)
    except Exception:
        # Fallback in case this jax build rejects single-buffered
        # (pipeline_mode=pl.Buffered(1)) constant operands.
        out = encoder_block(x, params, num_heads, mlp_tile=128,
                            single_buffer_consts=False)
    out = jax.block_until_ready(out)

    ref = encoder_block_reference(x, params, num_heads)
    assert out.shape == (B, S, D)
    # bf16 matmul operands + approx reciprocal -> loosened tolerance vs f32 ref.
    assert jnp.allclose(out, ref, atol=3e-2, rtol=3e-2), "mismatch vs reference"

    print("KERNEL_OK")
</pallas_src>

<mosaic_0001>
module attributes {stable_mosaic.version = 11 : i64} {
  func.func @encoder_block_kernel(%arg0: i32, %arg1: i32, %arg2: memref<2x8x32xf32, #tpu.memory_space<vmem>>, %arg3: memref<1x32xf32, #tpu.memory_space<vmem>>, %arg4: memref<1x32xf32, #tpu.memory_space<vmem>>, %arg5: memref<32x96xbf16, #tpu.memory_space<vmem>>, %arg6: memref<1x96xf32, #tpu.memory_space<vmem>>, %arg7: memref<32x32xbf16, #tpu.memory_space<vmem>>, %arg8: memref<1x32xf32, #tpu.memory_space<vmem>>, %arg9: memref<1x32xf32, #tpu.memory_space<vmem>>, %arg10: memref<1x32xf32, #tpu.memory_space<vmem>>, %arg11: memref<32x128xbf16, #tpu.memory_space<vmem>>, %arg12: memref<1x128xf32, #tpu.memory_space<vmem>>, %arg13: memref<128x32xbf16, #tpu.memory_space<vmem>>, %arg14: memref<1x32xf32, #tpu.memory_space<vmem>>, %arg15: memref<2x8x32xf32, #tpu.memory_space<vmem>>, %arg16: memref<8x32xbf16, #tpu.memory_space<vmem>>, %arg17: memref<16x32xbf16, #tpu.memory_space<vmem>>, %arg18: memref<16x32xf32, #tpu.memory_space<vmem>>) attributes {dimension_semantics = [#tpu.dimension_semantics<parallel>, #tpu.dimension_semantics<arbitrary>], iteration_bounds = array<i64: 2, 2>, scalar_prefetch = 0 : i64, scratch_operands = 3 : i64, tpu.core_type = #tpu.core_type<tc>, window_params = [{transform_indices = @transform_0, window_bounds = array<i64: 2, 8, 32>}, {pipeline_mode = #tpu.pipeline_mode<synchronous>, transform_indices = @transform_1, window_bounds = array<i64: 1, 32>}, {pipeline_mode = #tpu.pipeline_mode<synchronous>, transform_indices = @transform_2, window_bounds = array<i64: 1, 32>}, {pipeline_mode = #tpu.pipeline_mode<synchronous>, transform_indices = @transform_3, window_bounds = array<i64: 32, 96>}, {pipeline_mode = #tpu.pipeline_mode<synchronous>, transform_indices = @transform_4, window_bounds = array<i64: 1, 96>}, {pipeline_mode = #tpu.pipeline_mode<synchronous>, transform_indices = @transform_5, window_bounds = array<i64: 32, 32>}, {pipeline_mode = #tpu.pipeline_mode<synchronous>, transform_indices = @transform_6, window_bounds = array<i64: 1, 32>}, {pipeline_mode = #tpu.pipeline_mode<synchronous>, transform_indices = @transform_7, window_bounds = array<i64: 1, 32>}, {pipeline_mode = #tpu.pipeline_mode<synchronous>, transform_indices = @transform_8, window_bounds = array<i64: 1, 32>}, {transform_indices = @transform_9, window_bounds = array<i64: 32, 128>}, {transform_indices = @transform_10, window_bounds = array<i64: 1, 128>}, {transform_indices = @transform_11, window_bounds = array<i64: 128, 32>}, {pipeline_mode = #tpu.pipeline_mode<synchronous>, transform_indices = @transform_12, window_bounds = array<i64: 1, 32>}, {transform_indices = @transform_13, window_bounds = array<i64: 2, 8, 32>}]} {
    %c0_i32 = arith.constant 0 : i32
    %0 = arith.cmpi eq, %arg1, %c0_i32 : i32
    %1 = arith.extui %0 : i1 to i32
    %cst = arith.constant 9.99999997E-7 : f32
    %c0_i32_0 = arith.constant 0 : i32
    %2 = arith.cmpi ne, %1, %c0_i32_0 : i32
    scf.if %2 {
      %c0_18 = arith.constant 0 : index
      %c0_19 = arith.constant 0 : index
      %c0_20 = arith.constant 0 : index
      %28 = vector.load %arg2[%c0_18, %c0_19, %c0_20] : memref<2x8x32xf32, #tpu.memory_space<vmem>>, vector<1x8x32xf32>
      %29 = vector.shape_cast %28 : vector<1x8x32xf32> to vector<8x32xf32>
      %c0_21 = arith.constant 0 : index
      %c0_22 = arith.constant 0 : index
      %30 = vector.load %arg3[%c0_21, %c0_22] : memref<1x32xf32, #tpu.memory_space<vmem>>, vector<1x32xf32>
      %31 = vector.shape_cast %30 : vector<1x32xf32> to vector<32xf32>
      %c0_23 = arith.constant 0 : index
      %c0_24 = arith.constant 0 : index
      %32 = vector.load %arg4[%c0_23, %c0_24] : memref<1x32xf32, #tpu.memory_space<vmem>>, vector<1x32xf32>
      %33 = vector.shape_cast %32 : vector<1x32xf32> to vector<32xf32>
      %cst_25 = arith.constant dense<0.000000e+00> : vector<8xf32>
      %34 = vector.multi_reduction <add>, %29, %cst_25 [1] : vector<8x32xf32> to vector<8xf32>
      %35 = vector.shape_cast %34 : vector<8xf32> to vector<8x1xf32>
      %cst_26 = arith.constant 3.200000e+01 : f32
      %36 = vector.broadcast %cst_26 : f32 to vector<8x1xf32>
      %37 = arith.divf %35, %36 : vector<8x1xf32>
      %38 = vector.broadcast %37 : vector<8x1xf32> to vector<8x32xf32>
      %39 = arith.subf %29, %38 : vector<8x32xf32>
      %40 = arith.mulf %39, %39 : vector<8x32xf32>
      %cst_27 = arith.constant dense<0.000000e+00> : vector<8xf32>
      %41 = vector.multi_reduction <add>, %40, %cst_27 [1] : vector<8x32xf32> to vector<8xf32>
      %42 = vector.shape_cast %41 : vector<8xf32> to vector<8x1xf32>
      %cst_28 = arith.constant 3.200000e+01 : f32
      %43 = vector.broadcast %cst_28 : f32 to vector<8x1xf32>
      %44 = arith.divf %42, %43 : vector<8x1xf32>
      %45 = vector.broadcast %37 : vector<8x1xf32> to vector<8x32xf32>
      %46 = arith.subf %29, %45 : vector<8x32xf32>
      %47 = vector.broadcast %cst : f32 to vector<8x1xf32>
      %48 = arith.addf %44, %47 : vector<8x1xf32>
      %49 = math.rsqrt %48 : vector<8x1xf32>
      %50 = vector.broadcast %49 : vector<8x1xf32> to vector<8x32xf32>
      %51 = arith.mulf %46, %50 : vector<8x32xf32>
      %52 = vector.shape_cast %31 : vector<32xf32> to vector<1x32xf32>
      %53 = vector.broadcast %52 : vector<1x32xf32> to vector<8x32xf32>
      %54 = arith.mulf %51, %53 : vector<8x32xf32>
      %55 = vector.shape_cast %33 : vector<32xf32> to vector<1x32xf32>
      %56 = vector.broadcast %55 : vector<1x32xf32> to vector<8x32xf32>
      %57 = arith.addf %54, %56 : vector<8x32xf32>
      %58 = arith.truncf %57 : vector<8x32xf32> to vector<8x32xbf16>
      %c0_29 = arith.constant 0 : index
      %c0_30 = arith.constant 0 : index
      %59 = vector.load %arg5[%c0_29, %c0_30] : memref<32x96xbf16, #tpu.memory_space<vmem>>, vector<32x96xbf16>
      %cst_31 = arith.constant dense<0.000000e+00> : vector<8x96xf32>
      %60 = tpu.matmul %58, %59, %cst_31 {dimension_numbers = #tpu.dot_dimension_numbers<[1], [0], [0], [1], [0, 0, 1, 1], [], []>} : vector<8x32xbf16>, vector<32x96xbf16>, vector<8x96xf32> -> vector<8x96xf32>
      %c0_32 = arith.constant 0 : index
      %c0_33 = arith.constant 0 : index
      %61 = vector.load %arg6[%c0_32, %c0_33] : memref<1x96xf32, #tpu.memory_space<vmem>>, vector<1x96xf32>
      %62 = vector.shape_cast %61 : vector<1x96xf32> to vector<96xf32>
      %63 = vector.shape_cast %62 : vector<96xf32> to vector<1x96xf32>
      %64 = vector.broadcast %63 : vector<1x96xf32> to vector<8x96xf32>
      %65 = arith.addf %60, %64 : vector<8x96xf32>
      %66 = vector.extract_strided_slice %65 {offsets = [0, 0], sizes = [8, 32], strides = [1, 1]} : vector<8x96xf32> to vector<8x32xf32>
      %cst_34 = arith.constant 0.353553385 : f32
      %67 = vector.broadcast %cst_34 : f32 to vector<8x32xf32>
      %68 = arith.mulf %66, %67 : vector<8x32xf32>
      %69 = arith.truncf %68 : vector<8x32xf32> to vector<8x32xbf16>
      %70 = vector.extract_strided_slice %65 {offsets = [0, 32], sizes = [8, 32], strides = [1, 1]} : vector<8x96xf32> to vector<8x32xf32>
      %71 = arith.truncf %70 : vector<8x32xf32> to vector<8x32xbf16>
      %72 = tpu.transpose %71, [1, 0] : vector<8x32xbf16> -> vector<32x8xbf16>
      %73 = vector.extract_strided_slice %65 {offsets = [0, 64], sizes = [8, 32], strides = [1, 1]} : vector<8x96xf32> to vector<8x32xf32>
      %74 = arith.truncf %73 : vector<8x32xf32> to vector<8x32xbf16>
      %75 = vector.extract_strided_slice %69 {offsets = [0, 0], sizes = [8, 8], strides = [1, 1]} : vector<8x32xbf16> to vector<8x8xbf16>
      %76 = vector.extract_strided_slice %72 {offsets = [0, 0], sizes = [8, 8], strides = [1, 1]} : vector<32x8xbf16> to vector<8x8xbf16>
      %77 = vector.extract_strided_slice %74 {offsets = [0, 0], sizes = [8, 8], strides = [1, 1]} : vector<8x32xbf16> to vector<8x8xbf16>
      %cst_35 = arith.constant dense<0.000000e+00> : vector<8x8xf32>
      %78 = tpu.matmul %75, %76, %cst_35 {dimension_numbers = #tpu.dot_dimension_numbers<[1], [0], [0], [1], [0, 0, 1, 1], [], []>} : vector<8x8xbf16>, vector<8x8xbf16>, vector<8x8xf32> -> vector<8x8xf32>
      %cst_36 = arith.constant dense<0xFF800000> : vector<8xf32>
      %79 = vector.multi_reduction <maximumf>, %78, %cst_36 [1] : vector<8x8xf32> to vector<8xf32>
      %80 = vector.shape_cast %79 : vector<8xf32> to vector<8x1xf32>
      %81 = vector.broadcast %80 : vector<8x1xf32> to vector<8x8xf32>
      %82 = arith.subf %78, %81 : vector<8x8xf32>
      %83 = math.exp %82 : vector<8x8xf32>
      %cst_37 = arith.constant dense<0.000000e+00> : vector<8xf32>
      %84 = vector.multi_reduction <add>, %83, %cst_37 [1] : vector<8x8xf32> to vector<8xf32>
      %85 = vector.shape_cast %84 : vector<8xf32> to vector<8x1xf32>
      %86 = tpu.reciprocal %85 {approx = true} : vector<8x1xf32> -> vector<8x1xf32>
      %87 = vector.broadcast %86 : vector<8x1xf32> to vector<8x8xf32>
      %88 = arith.mulf %83, %87 : vector<8x8xf32>
      %89 = arith.truncf %88 : vector<8x8xf32> to vector<8x8xbf16>
      %cst_38 = arith.constant dense<0.000000e+00> : vector<8x8xf32>
      %90 = tpu.matmul %89, %77, %cst_38 {dimension_numbers = #tpu.dot_dimension_numbers<[1], [0], [0], [1], [0, 0, 1, 1], [], []>} : vector<8x8xbf16>, vector<8x8xbf16>, vector<8x8xf32> -> vector<8x8xf32>
      %91 = arith.truncf %90 : vector<8x8xf32> to vector<8x8xbf16>
      %c0_39 = arith.constant 0 : index
      %c0_40 = arith.constant 0 : index
      %92 = vector.load %arg16[%c0_39, %c0_40] : memref<8x32xbf16, #tpu.memory_space<vmem>>, vector<8x8xbf16>
      tpu.vector_store %arg16[%c0_39, %c0_40], %91 {strides = array<i32>} : memref<8x32xbf16, #tpu.memory_space<vmem>>, vector<8x8xbf16>,
      %93 = vector.extract_strided_slice %69 {offsets = [0, 8], sizes = [8, 8], strides = [1, 1]} : vector<8x32xbf16> to vector<8x8xbf16>
      %94 = vector.extract_strided_slice %72 {offsets = [8, 0], sizes = [8, 8], strides = [1, 1]} : vector<32x8xbf16> to vector<8x8xbf16>
      %95 = vector.extract_strided_slice %74 {offsets = [0, 8], sizes = [8, 8], strides = [1, 1]} : vector<8x32xbf16> to vector<8x8xbf16>
      %cst_41 = arith.constant dense<0.000000e+00> : vector<8x8xf32>
      %96 = tpu.matmul %93, %94, %cst_41 {dimension_numbers = #tpu.dot_dimension_numbers<[1], [0], [0], [1], [0, 0, 1, 1], [], []>} : vector<8x8xbf16>, vector<8x8xbf16>, vector<8x8xf32> -> vector<8x8xf32>
      %cst_42 = arith.constant dense<0xFF800000> : vector<8xf32>
      %97 = vector.multi_reduction <maximumf>, %96, %cst_42 [1] : vector<8x8xf32> to vector<8xf32>
      %98 = vector.shape_cast %97 : vector<8xf32> to vector<8x1xf32>
      %99 = vector.broadcast %98 : vector<8x1xf32> to vector<8x8xf32>
      %100 = arith.subf %96, %99 : vector<8x8xf32>
      %101 = math.exp %100 : vector<8x8xf32>
      %cst_43 = arith.constant dense<0.000000e+00> : vector<8xf32>
      %102 = vector.multi_reduction <add>, %101, %cst_43 [1] : vector<8x8xf32> to vector<8xf32>
      %103 = vector.shape_cast %102 : vector<8xf32> to vector<8x1xf32>
      %104 = tpu.reciprocal %103 {approx = true} : vector<8x1xf32> -> vector<8x1xf32>
      %105 = vector.broadcast %104 : vector<8x1xf32> to vector<8x8xf32>
      %106 = arith.mulf %101, %105 : vector<8x8xf32>
      %107 = arith.truncf %106 : vector<8x8xf32> to vector<8x8xbf16>
      %cst_44 = arith.constant dense<0.000000e+00> : vector<8x8xf32>
      %108 = tpu.matmul %107, %95, %cst_44 {dimension_numbers = #tpu.dot_dimension_numbers<[1], [0], [0], [1], [0, 0, 1, 1], [], []>} : vector<8x8xbf16>, vector<8x8xbf16>, vector<8x8xf32> -> vector<8x8xf32>
      %109 = arith.truncf %108 : vector<8x8xf32> to vector<8x8xbf16>
      %c0_45 = arith.constant 0 : index
      %c8 = arith.constant 8 : index
      %110 = vector.load %arg16[%c0_45, %c8] : memref<8x32xbf16, #tpu.memory_space<vmem>>, vector<8x8xbf16>
      tpu.vector_store %arg16[%c0_45, %c8], %109 {strides = array<i32>} : memref<8x32xbf16, #tpu.memory_space<vmem>>, vector<8x8xbf16>,
      %111 = vector.extract_strided_slice %69 {offsets = [0, 16], sizes = [8, 8], strides = [1, 1]} : vector<8x32xbf16> to vector<8x8xbf16>
      %112 = vector.extract_strided_slice %72 {offsets = [16, 0], sizes = [8, 8], strides = [1, 1]} : vector<32x8xbf16> to vector<8x8xbf16>
      %113 = vector.extract_strided_slice %74 {offsets = [0, 16], sizes = [8, 8], strides = [1, 1]} : vector<8x32xbf16> to vector<8x8xbf16>
      %cst_46 = arith.constant dense<0.000000e+00> : vector<8x8xf32>
      %114 = tpu.matmul %111, %112, %cst_46 {dimension_numbers = #tpu.dot_dimension_numbers<[1], [0], [0], [1], [0, 0, 1, 1], [], []>} : vector<8x8xbf16>, vector<8x8xbf16>, vector<8x8xf32> -> vector<8x8xf32>
      %cst_47 = arith.constant dense<0xFF800000> : vector<8xf32>
      %115 = vector.multi_reduction <maximumf>, %114, %cst_47 [1] : vector<8x8xf32> to vector<8xf32>
      %116 = vector.shape_cast %115 : vector<8xf32> to vector<8x1xf32>
      %117 = vector.broadcast %116 : vector<8x1xf32> to vector<8x8xf32>
      %118 = arith.subf %114, %117 : vector<8x8xf32>
      %119 = math.exp %118 : vector<8x8xf32>
      %cst_48 = arith.constant dense<0.000000e+00> : vector<8xf32>
      %120 = vector.multi_reduction <add>, %119, %cst_48 [1] : vector<8x8xf32> to vector<8xf32>
      %121 = vector.shape_cast %120 : vector<8xf32> to vector<8x1xf32>
      %122 = tpu.reciprocal %121 {approx = true} : vector<8x1xf32> -> vector<8x1xf32>
      %123 = vector.broadcast %122 : vector<8x1xf32> to vector<8x8xf32>
      %124 = arith.mulf %119, %123 : vector<8x8xf32>
      %125 = arith.truncf %124 : vector<8x8xf32> to vector<8x8xbf16>
      %cst_49 = arith.constant dense<0.000000e+00> : vector<8x8xf32>
      %126 = tpu.matmul %125, %113, %cst_49 {dimension_numbers = #tpu.dot_dimension_numbers<[1], [0], [0], [1], [0, 0, 1, 1], [], []>} : vector<8x8xbf16>, vector<8x8xbf16>, vector<8x8xf32> -> vector<8x8xf32>
      %127 = arith.truncf %126 : vector<8x8xf32> to vector<8x8xbf16>
      %c0_50 = arith.constant 0 : index
      %c16 = arith.constant 16 : index
      %128 = vector.load %arg16[%c0_50, %c16] : memref<8x32xbf16, #tpu.memory_space<vmem>>, vector<8x8xbf16>
      tpu.vector_store %arg16[%c0_50, %c16], %127 {strides = array<i32>} : memref<8x32xbf16, #tpu.memory_space<vmem>>, vector<8x8xbf16>,
      %129 = vector.extract_strided_slice %69 {offsets = [0, 24], sizes = [8, 8], strides = [1, 1]} : vector<8x32xbf16> to vector<8x8xbf16>
      %130 = vector.extract_strided_slice %72 {offsets = [24, 0], sizes = [8, 8], strides = [1, 1]} : vector<32x8xbf16> to vector<8x8xbf16>
      %131 = vector.extract_strided_slice %74 {offsets = [0, 24], sizes = [8, 8], strides = [1, 1]} : vector<8x32xbf16> to vector<8x8xbf16>
      %cst_51 = arith.constant dense<0.000000e+00> : vector<8x8xf32>
      %132 = tpu.matmul %129, %130, %cst_51 {dimension_numbers = #tpu.dot_dimension_numbers<[1], [0], [0], [1], [0, 0, 1, 1], [], []>} : vector<8x8xbf16>, vector<8x8xbf16>, vector<8x8xf32> -> vector<8x8xf32>
      %cst_52 = arith.constant dense<0xFF800000> : vector<8xf32>
      %133 = vector.multi_reduction <maximumf>, %132, %cst_52 [1] : vector<8x8xf32> to vector<8xf32>
      %134 = vector.shape_cast %133 : vector<8xf32> to vector<8x1xf32>
      %135 = vector.broadcast %134 : vector<8x1xf32> to vector<8x8xf32>
      %136 = arith.subf %132, %135 : vector<8x8xf32>
      %137 = math.exp %136 : vector<8x8xf32>
      %cst_53 = arith.constant dense<0.000000e+00> : vector<8xf32>
      %138 = vector.multi_reduction <add>, %137, %cst_53 [1] : vector<8x8xf32> to vector<8xf32>
      %139 = vector.shape_cast %138 : vector<8xf32> to vector<8x1xf32>
      %140 = tpu.reciprocal %139 {approx = true} : vector<8x1xf32> -> vector<8x1xf32>
      %141 = vector.broadcast %140 : vector<8x1xf32> to vector<8x8xf32>
      %142 = arith.mulf %137, %141 : vector<8x8xf32>
      %143 = arith.truncf %142 : vector<8x8xf32> to vector<8x8xbf16>
      %cst_54 = arith.constant dense<0.000000e+00> : vector<8x8xf32>
      %144 = tpu.matmul %143, %131, %cst_54 {dimension_numbers = #tpu.dot_dimension_numbers<[1], [0], [0], [1], [0, 0, 1, 1], [], []>} : vector<8x8xbf16>, vector<8x8xbf16>, vector<8x8xf32> -> vector<8x8xf32>
      %145 = arith.truncf %144 : vector<8x8xf32> to vector<8x8xbf16>
      %c0_55 = arith.constant 0 : index
      %c24 = arith.constant 24 : index
      %146 = vector.load %arg16[%c0_55, %c24] : memref<8x32xbf16, #tpu.memory_space<vmem>>, vector<8x8xbf16>
      tpu.vector_store %arg16[%c0_55, %c24], %145 {strides = array<i32>} : memref<8x32xbf16, #tpu.memory_space<vmem>>, vector<8x8xbf16>,
      %c0_56 = arith.constant 0 : index
      %c0_57 = arith.constant 0 : index
      %147 = vector.load %arg16[%c0_56, %c0_57] : memref<8x32xbf16, #tpu.memory_space<vmem>>, vector<8x32xbf16>
      %c0_58 = arith.constant 0 : index
      %c0_59 = arith.constant 0 : index
      %148 = vector.load %arg7[%c0_58, %c0_59] : memref<32x32xbf16, #tpu.memory_space<vmem>>, vector<32x32xbf16>
      %cst_60 = arith.constant dense<0.000000e+00> : vector<8x32xf32>
      %149 = tpu.matmul %147, %148, %cst_60 {dimension_numbers = #tpu.dot_dimension_numbers<[1], [0], [0], [1], [0, 0, 1, 1], [], []>} : vector<8x32xbf16>, vector<32x32xbf16>, vector<8x32xf32> -> vector<8x32xf32>
      %c0_61 = arith.constant 0 : index
      %c0_62 = arith.constant 0 : index
      %150 = vector.load %arg8[%c0_61, %c0_62] : memref<1x32xf32, #tpu.memory_space<vmem>>, vector<1x32xf32>
      %151 = vector.shape_cast %150 : vector<1x32xf32> to vector<32xf32>
      %152 = vector.shape_cast %151 : vector<32xf32> to vector<1x32xf32>
      %153 = vector.broadcast %152 : vector<1x32xf32> to vector<8x32xf32>
      %154 = arith.addf %149, %153 : vector<8x32xf32>
      %155 = arith.addf %154, %29 : vector<8x32xf32>
      %c0_63 = arith.constant 0 : index
      %c0_64 = arith.constant 0 : index
      %156 = vector.load %arg9[%c0_63, %c0_64] : memref<1x32xf32, #tpu.memory_space<vmem>>, vector<1x32xf32>
      %157 = vector.shape_cast %156 : vector<1x32xf32> to vector<32xf32>
      %c0_65 = arith.constant 0 : index
      %c0_66 = arith.constant 0 : index
      %158 = vector.load %arg10[%c0_65, %c0_66] : memref<1x32xf32, #tpu.memory_space<vmem>>, vector<1x32xf32>
      %159 = vector.shape_cast %158 : vector<1x32xf32> to vector<32xf32>
      %cst_67 = arith.constant dense<0.000000e+00> : vector<8xf32>
      %160 = vector.multi_reduction <add>, %155, %cst_67 [1] : vector<8x32xf32> to vector<8xf32>
      %161 = vector.shape_cast %160 : vector<8xf32> to vector<8x1xf32>
      %cst_68 = arith.constant 3.200000e+01 : f32
      %162 = vector.broadcast %cst_68 : f32 to vector<8x1xf32>
      %163 = arith.divf %161, %162 : vector<8x1xf32>
      %164 = vector.broadcast %163 : vector<8x1xf32> to vector<8x32xf32>
      %165 = arith.subf %155, %164 : vector<8x32xf32>
      %166 = arith.mulf %165, %165 : vector<8x32xf32>
      %cst_69 = arith.constant dense<0.000000e+00> : vector<8xf32>
      %167 = vector.multi_reduction <add>, %166, %cst_69 [1] : vector<8x32xf32> to vector<8xf32>
      %168 = vector.shape_cast %167 : vector<8xf32> to vector<8x1xf32>
      %cst_70 = arith.constant 3.200000e+01 : f32
      %169 = vector.broadcast %cst_70 : f32 to vector<8x1xf32>
      %170 = arith.divf %168, %169 : vector<8x1xf32>
      %171 = vector.broadcast %163 : vector<8x1xf32> to vector<8x32xf32>
      %172 = arith.subf %155, %171 : vector<8x32xf32>
      %173 = vector.broadcast %cst : f32 to vector<8x1xf32>
      %174 = arith.addf %170, %173 : vector<8x1xf32>
      %175 = math.rsqrt %174 : vector<8x1xf32>
      %176 = vector.broadcast %175 : vector<8x1xf32> to vector<8x32xf32>
      %177 = arith.mulf %172, %176 : vector<8x32xf32>
      %178 = vector.shape_cast %157 : vector<32xf32> to vector<1x32xf32>
      %179 = vector.broadcast %178 : vector<1x32xf32> to vector<8x32xf32>
      %180 = arith.mulf %177, %179 : vector<8x32xf32>
      %181 = vector.shape_cast %159 : vector<32xf32> to vector<1x32xf32>
      %182 = vector.broadcast %181 : vector<1x32xf32> to vector<8x32xf32>
      %183 = arith.addf %180, %182 : vector<8x32xf32>
      %184 = arith.truncf %183 : vector<8x32xf32> to vector<8x32xbf16>
      %c0_71 = arith.constant 0 : index
      %c0_72 = arith.constant 0 : index
      %185 = vector.load %arg17[%c0_71, %c0_72] : memref<16x32xbf16, #tpu.memory_space<vmem>>, vector<8x32xbf16>
      tpu.vector_store %arg17[%c0_71, %c0_72], %184 {strides = array<i32>} : memref<16x32xbf16, #tpu.memory_space<vmem>>, vector<8x32xbf16>,
      %c0_73 = arith.constant 0 : index
      %c0_74 = arith.constant 0 : index
      %186 = vector.load %arg18[%c0_73, %c0_74] : memref<16x32xf32, #tpu.memory_space<vmem>>, vector<8x32xf32>
      tpu.vector_store %arg18[%c0_73, %c0_74], %155 {strides = array<i32>} : memref<16x32xf32, #tpu.memory_space<vmem>>, vector<8x32xf32>,
      %c1 = arith.constant 1 : index
      %c0_75 = arith.constant 0 : index
      %c0_76 = arith.constant 0 : index
      %187 = vector.load %arg2[%c1, %c0_75, %c0_76] : memref<2x8x32xf32, #tpu.memory_space<vmem>>, vector<1x8x32xf32>
      %188 = vector.shape_cast %187 : vector<1x8x32xf32> to vector<8x32xf32>
      %c0_77 = arith.constant 0 : index
      %c0_78 = arith.constant 0 : index
      %189 = vector.load %arg3[%c0_77, %c0_78] : memref<1x32xf32, #tpu.memory_space<vmem>>, vector<1x32xf32>
      %190 = vector.shape_cast %189 : vector<1x32xf32> to vector<32xf32>
      %c0_79 = arith.constant 0 : index
      %c0_80 = arith.constant 0 : index
      %191 = vector.load %arg4[%c0_79, %c0_80] : memref<1x32xf32, #tpu.memory_space<vmem>>, vector<1x32xf32>
      %192 = vector.shape_cast %191 : vector<1x32xf32> to vector<32xf32>
      %cst_81 = arith.constant dense<0.000000e+00> : vector<8xf32>
      %193 = vector.multi_reduction <add>, %188, %cst_81 [1] : vector<8x32xf32> to vector<8xf32>
      %194 = vector.shape_cast %193 : vector<8xf32> to vector<8x1xf32>
      %cst_82 = arith.constant 3.200000e+01 : f32
      %195 = vector.broadcast %cst_82 : f32 to vector<8x1xf32>
      %196 = arith.divf %194, %195 : vector<8x1xf32>
      %197 = vector.broadcast %196 : vector<8x1xf32> to vector<8x32xf32>
      %198 = arith.subf %188, %197 : vector<8x32xf32>
      %199 = arith.mulf %198, %198 : vector<8x32xf32>
      %cst_83 = arith.constant dense<0.000000e+00> : vector<8xf32>
      %200 = vector.multi_reduction <add>, %199, %cst_83 [1] : vector<8x32xf32> to vector<8xf32>
      %201 = vector.shape_cast %200 : vector<8xf32> to vector<8x1xf32>
      %cst_84 = arith.constant 3.200000e+01 : f32
      %202 = vector.broadcast %cst_84 : f32 to vector<8x1xf32>
      %203 = arith.divf %201, %202 : vector<8x1xf32>
      %204 = vector.broadcast %196 : vector<8x1xf32> to vector<8x32xf32>
      %205 = arith.subf %188, %204 : vector<8x32xf32>
      %206 = vector.broadcast %cst : f32 to vector<8x1xf32>
      %207 = arith.addf %203, %206 : vector<8x1xf32>
      %208 = math.rsqrt %207 : vector<8x1xf32>
      %209 = vector.broadcast %208 : vector<8x1xf32> to vector<8x32xf32>
      %210 = arith.mulf %205, %209 : vector<8x32xf32>
      %211 = vector.shape_cast %190 : vector<32xf32> to vector<1x32xf32>
      %212 = vector.broadcast %211 : vector<1x32xf32> to vector<8x32xf32>
      %213 = arith.mulf %210, %212 : vector<8x32xf32>
      %214 = vector.shape_cast %192 : vector<32xf32> to vector<1x32xf32>
      %215 = vector.broadcast %214 : vector<1x32xf32> to vector<8x32xf32>
      %216 = arith.addf %213, %215 : vector<8x32xf32>
      %217 = arith.truncf %216 : vector<8x32xf32> to vector<8x32xbf16>
      %c0_85 = arith.constant 0 : index
      %c0_86 = arith.constant 0 : index
      %218 = vector.load %arg5[%c0_85, %c0_86] : memref<32x96xbf16, #tpu.memory_space<vmem>>, vector<32x96xbf16>
      %cst_87 = arith.constant dense<0.000000e+00> : vector<8x96xf32>
      %219 = tpu.matmul %217, %218, %cst_87 {dimension_numbers = #tpu.dot_dimension_numbers<[1], [0], [0], [1], [0, 0, 1, 1], [], []>} : vector<8x32xbf16>, vector<32x96xbf16>, vector<8x96xf32> -> vector<8x96xf32>
      %c0_88 = arith.constant 0 : index
      %c0_89 = arith.constant 0 : index
      %220 = vector.load %arg6[%c0_88, %c0_89] : memref<1x96xf32, #tpu.memory_space<vmem>>, vector<1x96xf32>
      %221 = vector.shape_cast %220 : vector<1x96xf32> to vector<96xf32>
      %222 = vector.shape_cast %221 : vector<96xf32> to vector<1x96xf32>
      %223 = vector.broadcast %222 : vector<1x96xf32> to vector<8x96xf32>
      %224 = arith.addf %219, %223 : vector<8x96xf32>
      %225 = vector.extract_strided_slice %224 {offsets = [0, 0], sizes = [8, 32], strides = [1, 1]} : vector<8x96xf32> to vector<8x32xf32>
      %cst_90 = arith.constant 0.353553385 : f32
      %226 = vector.broadcast %cst_90 : f32 to vector<8x32xf32>
      %227 = arith.mulf %225, %226 : vector<8x32xf32>
      %228 = arith.truncf %227 : vector<8x32xf32> to vector<8x32xbf16>
      %229 = vector.extract_strided_slice %224 {offsets = [0, 32], sizes = [8, 32], strides = [1, 1]} : vector<8x96xf32> to vector<8x32xf32>
      %230 = arith.truncf %229 : vector<8x32xf32> to vector<8x32xbf16>
      %231 = tpu.transpose %230, [1, 0] : vector<8x32xbf16> -> vector<32x8xbf16>
      %232 = vector.extract_strided_slice %224 {offsets = [0, 64], sizes = [8, 32], strides = [1, 1]} : vector<8x96xf32> to vector<8x32xf32>
      %233 = arith.truncf %232 : vector<8x32xf32> to vector<8x32xbf16>
      %234 = vector.extract_strided_slice %228 {offsets = [0, 0], sizes = [8, 8], strides = [1, 1]} : vector<8x32xbf16> to vector<8x8xbf16>
      %235 = vector.extract_strided_slice %231 {offsets = [0, 0], sizes = [8, 8], strides = [1, 1]} : vector<32x8xbf16> to vector<8x8xbf16>
      %236 = vector.extract_strided_slice %233 {offsets = [0, 0], sizes = [8, 8], strides = [1, 1]} : vector<8x32xbf16> to vector<8x8xbf16>
      %cst_91 = arith.constant dense<0.000000e+00> : vector<8x8xf32>
      %237 = tpu.matmul %234, %235, %cst_91 {dimension_numbers = #tpu.dot_dimension_numbers<[1], [0], [0], [1], [0, 0, 1, 1], [], []>} : vector<8x8xbf16>, vector<8x8xbf16>, vector<8x8xf32> -> vector<8x8xf32>
      %cst_92 = arith.constant dense<0xFF800000> : vector<8xf32>
      %238 = vector.multi_reduction <maximumf>, %237, %cst_92 [1] : vector<8x8xf32> to vector<8xf32>
      %239 = vector.shape_cast %238 : vector<8xf32> to vector<8x1xf32>
      %240 = vector.broadcast %239 : vector<8x1xf32> to vector<8x8xf32>
      %241 = arith.subf %237, %240 : vector<8x8xf32>
      %242 = math.exp %241 : vector<8x8xf32>
      %cst_93 = arith.constant dense<0.000000e+00> : vector<8xf32>
      %243 = vector.multi_reduction <add>, %242, %cst_93 [1] : vector<8x8xf32> to vector<8xf32>
      %244 = vector.shape_cast %243 : vector<8xf32> to vector<8x1xf32>
      %245 = tpu.reciprocal %244 {approx = true} : vector<8x1xf32> -> vector<8x1xf32>
      %246 = vector.broadcast %245 : vector<8x1xf32> to vector<8x8xf32>
      %247 = arith.mulf %242, %246 : vector<8x8xf32>
      %248 = arith.truncf %247 : vector<8x8xf32> to vector<8x8xbf16>
      %cst_94 = arith.constant dense<0.000000e+00> : vector<8x8xf32>
      %249 = tpu.matmul %248, %236, %cst_94 {dimension_numbers = #tpu.dot_dimension_numbers<[1], [0], [0], [1], [0, 0, 1, 1], [], []>} : vector<8x8xbf16>, vector<8x8xbf16>, vector<8x8xf32> -> vector<8x8xf32>
      %250 = arith.truncf %249 : vector<8x8xf32> to vector<8x8xbf16>
      %c0_95 = arith.constant 0 : index
      %c0_96 = arith.constant 0 : index
      %251 = vector.load %arg16[%c0_95, %c0_96] : memref<8x32xbf16, #tpu.memory_space<vmem>>, vector<8x8xbf16>
      tpu.vector_store %arg16[%c0_95, %c0_96], %250 {strides = array<i32>} : memref<8x32xbf16, #tpu.memory_space<vmem>>, vector<8x8xbf16>,
      %252 = vector.extract_strided_slice %228 {offsets = [0, 8], sizes = [8, 8], strides = [1, 1]} : vector<8x32xbf16> to vector<8x8xbf16>
      %253 = vector.extract_strided_slice %231 {offsets = [8, 0], sizes = [8, 8], strides = [1, 1]} : vector<32x8xbf16> to vector<8x8xbf16>
      %254 = vector.extract_strided_slice %233 {offsets = [0, 8], sizes = [8, 8], strides = [1, 1]} : vector<8x32xbf16> to vector<8x8xbf16>
      %cst_97 = arith.constant dense<0.000000e+00> : vector<8x8xf32>
      %255 = tpu.matmul %252, %253, %cst_97 {dimension_numbers = #tpu.dot_dimension_numbers<[1], [0], [0], [1], [0, 0, 1, 1], [], []>} : vector<8x8xbf16>, vector<8x8xbf16>, vector<8x8xf32> -> vector<8x8xf32>
      %cst_98 = arith.constant dense<0xFF800000> : vector<8xf32>
      %256 = vector.multi_reduction <maximumf>, %255, %cst_98 [1] : vector<8x8xf32> to vector<8xf32>
      %257 = vector.shape_cast %256 : vector<8xf32> to vector<8x1xf32>
      %258 = vector.broadcast %257 : vector<8x1xf32> to vector<8x8xf32>
      %259 = arith.subf %255, %258 : vector<8x8xf32>
      %260 = math.exp %259 : vector<8x8xf32>
      %cst_99 = arith.constant dense<0.000000e+00> : vector<8xf32>
      %261 = vector.multi_reduction <add>, %260, %cst_99 [1] : vector<8x8xf32> to vector<8xf32>
      %262 = vector.shape_cast %261 : vector<8xf32> to vector<8x1xf32>
      %263 = tpu.reciprocal %262 {approx = true} : vector<8x1xf32> -> vector<8x1xf32>
      %264 = vector.broadcast %263 : vector<8x1xf32> to vector<8x8xf32>
      %265 = arith.mulf %260, %264 : vector<8x8xf32>
      %266 = arith.truncf %265 : vector<8x8xf32> to vector<8x8xbf16>
      %cst_100 = arith.constant dense<0.000000e+00> : vector<8x8xf32>
      %267 = tpu.matmul %266, %254, %cst_100 {dimension_numbers = #tpu.dot_dimension_numbers<[1], [0], [0], [1], [0, 0, 1, 1], [], []>} : vector<8x8xbf16>, vector<8x8xbf16>, vector<8x8xf32> -> vector<8x8xf32>
      %268 = arith.truncf %267 : vector<8x8xf32> to vector<8x8xbf16>
      %c0_101 = arith.constant 0 : index
      %c8_102 = arith.constant 8 : index
      %269 = vector.load %arg16[%c0_101, %c8_102] : memref<8x32xbf16, #tpu.memory_space<vmem>>, vector<8x8xbf16>
      tpu.vector_store %arg16[%c0_101, %c8_102], %268 {strides = array<i32>} : memref<8x32xbf16, #tpu.memory_space<vmem>>, vector<8x8xbf16>,
      %270 = vector.extract_strided_slice %228 {offsets = [0, 16], sizes = [8, 8], strides = [1, 1]} : vector<8x32xbf16> to vector<8x8xbf16>
      %271 = vector.extract_strided_slice %231 {offsets = [16, 0], sizes = [8, 8], strides = [1, 1]} : vector<32x8xbf16> to vector<8x8xbf16>
      %272 = vector.extract_strided_slice %233 {offsets = [0, 16], sizes = [8, 8], strides = [1, 1]} : vector<8x32xbf16> to vector<8x8xbf16>
      %cst_103 = arith.constant dense<0.000000e+00> : vector<8x8xf32>
      %273 = tpu.matmul %270, %271, %cst_103 {dimension_numbers = #tpu.dot_dimension_numbers<[1], [0], [0], [1], [0, 0, 1, 1], [], []>} : vector<8x8xbf16>, vector<8x8xbf16>, vector<8x8xf32> -> vector<8x8xf32>
      %cst_104 = arith.constant dense<0xFF800000> : vector<8xf32>
      %274 = vector.multi_reduction <maximumf>, %273, %cst_104 [1] : vector<8x8xf32> to vector<8xf32>
      %275 = vector.shape_cast %274 : vector<8xf32> to vector<8x1xf32>
      %276 = vector.broadcast %275 : vector<8x1xf32> to vector<8x8xf32>
      %277 = arith.subf %273, %276 : vector<8x8xf32>
      %278 = math.exp %277 : vector<8x8xf32>
      %cst_105 = arith.constant dense<0.000000e+00> : vector<8xf32>
      %279 = vector.multi_reduction <add>, %278, %cst_105 [1] : vector<8x8xf32> to vector<8xf32>
      %280 = vector.shape_cast %279 : vector<8xf32> to vector<8x1xf32>
      %281 = tpu.reciprocal %280 {approx = true} : vector<8x1xf32> -> vector<8x1xf32>
      %282 = vector.broadcast %281 : vector<8x1xf32> to vector<8x8xf32>
      %283 = arith.mulf %278, %282 : vector<8x8xf32>
      %284 = arith.truncf %283 : vector<8x8xf32> to vector<8x8xbf16>
      %cst_106 = arith.constant dense<0.000000e+00> : vector<8x8xf32>
      %285 = tpu.matmul %284, %272, %cst_106 {dimension_numbers = #tpu.dot_dimension_numbers<[1], [0], [0], [1], [0, 0, 1, 1], [], []>} : vector<8x8xbf16>, vector<8x8xbf16>, vector<8x8xf32> -> vector<8x8xf32>
      %286 = arith.truncf %285 : vector<8x8xf32> to vector<8x8xbf16>
      %c0_107 = arith.constant 0 : index
      %c16_108 = arith.constant 16 : index
      %287 = vector.load %arg16[%c0_107, %c16_108] : memref<8x32xbf16, #tpu.memory_space<vmem>>, vector<8x8xbf16>
      tpu.vector_store %arg16[%c0_107, %c16_108], %286 {strides = array<i32>} : memref<8x32xbf16, #tpu.memory_space<vmem>>, vector<8x8xbf16>,
      %288 = vector.extract_strided_slice %228 {offsets = [0, 24], sizes = [8, 8], strides = [1, 1]} : vector<8x32xbf16> to vector<8x8xbf16>
      %289 = vector.extract_strided_slice %231 {offsets = [24, 0], sizes = [8, 8], strides = [1, 1]} : vector<32x8xbf16> to vector<8x8xbf16>
      %290 = vector.extract_strided_slice %233 {offsets = [0, 24], sizes = [8, 8], strides = [1, 1]} : vector<8x32xbf16> to vector<8x8xbf16>
      %cst_109 = arith.constant dense<0.000000e+00> : vector<8x8xf32>
      %291 = tpu.matmul %288, %289, %cst_109 {dimension_numbers = #tpu.dot_dimension_numbers<[1], [0], [0], [1], [0, 0, 1, 1], [], []>} : vector<8x8xbf16>, vector<8x8xbf16>, vector<8x8xf32> -> vector<8x8xf32>
      %cst_110 = arith.constant dense<0xFF800000> : vector<8xf32>
      %292 = vector.multi_reduction <maximumf>, %291, %cst_110 [1] : vector<8x8xf32> to vector<8xf32>
      %293 = vector.shape_cast %292 : vector<8xf32> to vector<8x1xf32>
      %294 = vector.broadcast %293 : vector<8x1xf32> to vector<8x8xf32>
      %295 = arith.subf %291, %294 : vector<8x8xf32>
      %296 = math.exp %295 : vector<8x8xf32>
      %cst_111 = arith.constant dense<0.000000e+00> : vector<8xf32>
      %297 = vector.multi_reduction <add>, %296, %cst_111 [1] : vector<8x8xf32> to vector<8xf32>
      %298 = vector.shape_cast %297 : vector<8xf32> to vector<8x1xf32>
      %299 = tpu.reciprocal %298 {approx = true} : vector<8x1xf32> -> vector<8x1xf32>
      %300 = vector.broadcast %299 : vector<8x1xf32> to vector<8x8xf32>
      %301 = arith.mulf %296, %300 : vector<8x8xf32>
      %302 = arith.truncf %301 : vector<8x8xf32> to vector<8x8xbf16>
      %cst_112 = arith.constant dense<0.000000e+00> : vector<8x8xf32>
      %303 = tpu.matmul %302, %290, %cst_112 {dimension_numbers = #tpu.dot_dimension_numbers<[1], [0], [0], [1], [0, 0, 1, 1], [], []>} : vector<8x8xbf16>, vector<8x8xbf16>, vector<8x8xf32> -> vector<8x8xf32>
      %304 = arith.truncf %303 : vector<8x8xf32> to vector<8x8xbf16>
      %c0_113 = arith.constant 0 : index
      %c24_114 = arith.constant 24 : index
      %305 = vector.load %arg16[%c0_113, %c24_114] : memref<8x32xbf16, #tpu.memory_space<vmem>>, vector<8x8xbf16>
      tpu.vector_store %arg16[%c0_113, %c24_114], %304 {strides = array<i32>} : memref<8x32xbf16, #tpu.memory_space<vmem>>, vector<8x8xbf16>,
      %c0_115 = arith.constant 0 : index
      %c0_116 = arith.constant 0 : index
      %306 = vector.load %arg16[%c0_115, %c0_116] : memref<8x32xbf16, #tpu.memory_space<vmem>>, vector<8x32xbf16>
      %c0_117 = arith.constant 0 : index
      %c0_118 = arith.constant 0 : index
      %307 = vector.load %arg7[%c0_117, %c0_118] : memref<32x32xbf16, #tpu.memory_space<vmem>>, vector<32x32xbf16>
      %cst_119 = arith.constant dense<0.000000e+00> : vector<8x32xf32>
      %308 = tpu.matmul %306, %307, %cst_119 {dimension_numbers = #tpu.dot_dimension_numbers<[1], [0], [0], [1], [0, 0, 1, 1], [], []>} : vector<8x32xbf16>, vector<32x32xbf16>, vector<8x32xf32> -> vector<8x32xf32>
      %c0_120 = arith.constant 0 : index
      %c0_121 = arith.constant 0 : index
      %309 = vector.load %arg8[%c0_120, %c0_121] : memref<1x32xf32, #tpu.memory_space<vmem>>, vector<1x32xf32>
      %310 = vector.shape_cast %309 : vector<1x32xf32> to vector<32xf32>
      %311 = vector.shape_cast %310 : vector<32xf32> to vector<1x32xf32>
      %312 = vector.broadcast %311 : vector<1x32xf32> to vector<8x32xf32>
      %313 = arith.addf %308, %312 : vector<8x32xf32>
      %314 = arith.addf %313, %188 : vector<8x32xf32>
      %c0_122 = arith.constant 0 : index
      %c0_123 = arith.constant 0 : index
      %315 = vector.load %arg9[%c0_122, %c0_123] : memref<1x32xf32, #tpu.memory_space<vmem>>, vector<1x32xf32>
      %316 = vector.shape_cast %315 : vector<1x32xf32> to vector<32xf32>
      %c0_124 = arith.constant 0 : index
      %c0_125 = arith.constant 0 : index
      %317 = vector.load %arg10[%c0_124, %c0_125] : memref<1x32xf32, #tpu.memory_space<vmem>>, vector<1x32xf32>
      %318 = vector.shape_cast %317 : vector<1x32xf32> to vector<32xf32>
      %cst_126 = arith.constant dense<0.000000e+00> : vector<8xf32>
      %319 = vector.multi_reduction <add>, %314, %cst_126 [1] : vector<8x32xf32> to vector<8xf32>
      %320 = vector.shape_cast %319 : vector<8xf32> to vector<8x1xf32>
      %cst_127 = arith.constant 3.200000e+01 : f32
      %321 = vector.broadcast %cst_127 : f32 to vector<8x1xf32>
      %322 = arith.divf %320, %321 : vector<8x1xf32>
      %323 = vector.broadcast %322 : vector<8x1xf32> to vector<8x32xf32>
      %324 = arith.subf %314, %323 : vector<8x32xf32>
      %325 = arith.mulf %324, %324 : vector<8x32xf32>
      %cst_128 = arith.constant dense<0.000000e+00> : vector<8xf32>
      %326 = vector.multi_reduction <add>, %325, %cst_128 [1] : vector<8x32xf32> to vector<8xf32>
      %327 = vector.shape_cast %326 : vector<8xf32> to vector<8x1xf32>
      %cst_129 = arith.constant 3.200000e+01 : f32
      %328 = vector.broadcast %cst_129 : f32 to vector<8x1xf32>
      %329 = arith.divf %327, %328 : vector<8x1xf32>
      %330 = vector.broadcast %322 : vector<8x1xf32> to vector<8x32xf32>
      %331 = arith.subf %314, %330 : vector<8x32xf32>
      %332 = vector.broadcast %cst : f32 to vector<8x1xf32>
      %333 = arith.addf %329, %332 : vector<8x1xf32>
      %334 = math.rsqrt %333 : vector<8x1xf32>
      %335 = vector.broadcast %334 : vector<8x1xf32> to vector<8x32xf32>
      %336 = arith.mulf %331, %335 : vector<8x32xf32>
      %337 = vector.shape_cast %316 : vector<32xf32> to vector<1x32xf32>
      %338 = vector.broadcast %337 : vector<1x32xf32> to vector<8x32xf32>
      %339 = arith.mulf %336, %338 : vector<8x32xf32>
      %340 = vector.shape_cast %318 : vector<32xf32> to vector<1x32xf32>
      %341 = vector.broadcast %340 : vector<1x32xf32> to vector<8x32xf32>
      %342 = arith.addf %339, %341 : vector<8x32xf32>
      %343 = arith.truncf %342 : vector<8x32xf32> to vector<8x32xbf16>
      %c8_130 = arith.constant 8 : index
      %c0_131 = arith.constant 0 : index
      %344 = vector.load %arg17[%c8_130, %c0_131] : memref<16x32xbf16, #tpu.memory_space<vmem>>, vector<8x32xbf16>
      tpu.vector_store %arg17[%c8_130, %c0_131], %343 {strides = array<i32>} : memref<16x32xbf16, #tpu.memory_space<vmem>>, vector<8x32xbf16>,
      %c8_132 = arith.constant 8 : index
      %c0_133 = arith.constant 0 : index
      %345 = vector.load %arg18[%c8_132, %c0_133] : memref<16x32xf32, #tpu.memory_space<vmem>>, vector<8x32xf32>
      tpu.vector_store %arg18[%c8_132, %c0_133], %314 {strides = array<i32>} : memref<16x32xf32, #tpu.memory_space<vmem>>, vector<8x32xf32>,
    } else {
    }
    %c0 = arith.constant 0 : index
    %c0_1 = arith.constant 0 : index
    %3 = vector.load %arg17[%c0, %c0_1] : memref<16x32xbf16, #tpu.memory_space<vmem>>, vector<16x32xbf16>
    %c0_2 = arith.constant 0 : index
    %c0_3 = arith.constant 0 : index
    %4 = vector.load %arg11[%c0_2, %c0_3] : memref<32x128xbf16, #tpu.memory_space<vmem>>, vector<32x128xbf16>
    %cst_4 = arith.constant dense<0.000000e+00> : vector<16x128xf32>
    %5 = tpu.matmul %3, %4, %cst_4 {dimension_numbers = #tpu.dot_dimension_numbers<[1], [0], [0], [1], [0, 0, 1, 1], [], []>} : vector<16x32xbf16>, vector<32x128xbf16>, vector<16x128xf32> -> vector<16x128xf32>
    %c0_5 = arith.constant 0 : index
    %c0_6 = arith.constant 0 : index
    %6 = vector.load %arg12[%c0_5, %c0_6] : memref<1x128xf32, #tpu.memory_space<vmem>>, vector<1x128xf32>
    %7 = vector.shape_cast %6 : vector<1x128xf32> to vector<128xf32>
    %8 = vector.shape_cast %7 : vector<128xf32> to vector<1x128xf32>
    %9 = vector.broadcast %8 : vector<1x128xf32> to vector<16x128xf32>
    %10 = arith.addf %5, %9 : vector<16x128xf32>
    %cst_7 = arith.constant 5.000000e-01 : f32
    %11 = vector.broadcast %cst_7 : f32 to vector<16x128xf32>
    %12 = arith.mulf %11, %10 : vector<16x128xf32>
    %cst_8 = arith.constant 0.707106769 : f32
    %13 = vector.broadcast %cst_8 : f32 to vector<16x128xf32>
    %14 = arith.mulf %10, %13 : vector<16x128xf32>
    %15 = math.erf %14 : vector<16x128xf32>
    %cst_9 = arith.constant 1.000000e+00 : f32
    %16 = vector.broadcast %cst_9 : f32 to vector<16x128xf32>
    %17 = arith.addf %16, %15 : vector<16x128xf32>
    %18 = arith.mulf %12, %17 : vector<16x128xf32>
    %c0_10 = arith.constant 0 : index
    %c0_11 = arith.constant 0 : index
    %19 = vector.load %arg18[%c0_10, %c0_11] : memref<16x32xf32, #tpu.memory_space<vmem>>, vector<16x32xf32>
    %20 = arith.truncf %18 : vector<16x128xf32> to vector<16x128xbf16>
    %c0_12 = arith.constant 0 : index
    %c0_13 = arith.constant 0 : index
    %21 = vector.load %arg13[%c0_12, %c0_13] : memref<128x32xbf16, #tpu.memory_space<vmem>>, vector<128x32xbf16>
    %cst_14 = arith.constant dense<0.000000e+00> : vector<16x32xf32>
    %22 = tpu.matmul %20, %21, %cst_14 {dimension_numbers = #tpu.dot_dimension_numbers<[1], [0], [0], [1], [0, 0, 1, 1], [], []>} : vector<16x128xbf16>, vector<128x32xbf16>, vector<16x32xf32> -> vector<16x32xf32>
    %23 = arith.addf %19, %22 : vector<16x32xf32>
    %c0_15 = arith.constant 0 : index
    %c0_16 = arith.constant 0 : index
    %24 = vector.load %arg18[%c0_15, %c0_16] : memref<16x32xf32, #tpu.memory_space<vmem>>, vector<16x32xf32>
    tpu.vector_store %arg18[%c0_15, %c0_16], %23 {strides = array<i32>} : memref<16x32xf32, #tpu.memory_space<vmem>>, vector<16x32xf32>,
    %c1_i32 = arith.constant 1 : i32
    %25 = arith.cmpi eq, %arg1, %c1_i32 : i32
    %26 = arith.extui %25 : i1 to i32
    %c0_i32_17 = arith.constant 0 : i32
    %27 = arith.cmpi ne, %26, %c0_i32_17 : i32
    scf.if %27 {
      %c0_18 = arith.constant 0 : index
      %c0_19 = arith.constant 0 : index
      %28 = vector.load %arg18[%c0_18, %c0_19] : memref<16x32xf32, #tpu.memory_space<vmem>>, vector<8x32xf32>
      %c0_20 = arith.constant 0 : index
      %c0_21 = arith.constant 0 : index
      %29 = vector.load %arg14[%c0_20, %c0_21] : memref<1x32xf32, #tpu.memory_space<vmem>>, vector<1x32xf32>
      %30 = vector.shape_cast %29 : vector<1x32xf32> to vector<32xf32>
      %31 = vector.shape_cast %30 : vector<32xf32> to vector<1x32xf32>
      %32 = vector.broadcast %31 : vector<1x32xf32> to vector<8x32xf32>
      %33 = arith.addf %28, %32 : vector<8x32xf32>
      %c0_22 = arith.constant 0 : index
      %c0_23 = arith.constant 0 : index
      %c0_24 = arith.constant 0 : index
      %34 = vector.load %arg15[%c0_22, %c0_23, %c0_24] : memref<2x8x32xf32, #tpu.memory_space<vmem>>, vector<1x8x32xf32>
      %35 = vector.shape_cast %34 : vector<1x8x32xf32> to vector<8x32xf32>
      %36 = vector.shape_cast %33 : vector<8x32xf32> to vector<1x8x32xf32>
      tpu.vector_store %arg15[%c0_22, %c0_23, %c0_24], %36 {strides = array<i32>} : memref<2x8x32xf32, #tpu.memory_space<vmem>>, vector<1x8x32xf32>,
      %c8 = arith.constant 8 : index
      %c0_25 = arith.constant 0 : index
      %37 = vector.load %arg18[%c8, %c0_25] : memref<16x32xf32, #tpu.memory_space<vmem>>, vector<8x32xf32>
      %c0_26 = arith.constant 0 : index
      %c0_27 = arith.constant 0 : index
      %38 = vector.load %arg14[%c0_26, %c0_27] : memref<1x32xf32, #tpu.memory_space<vmem>>, vector<1x32xf32>
      %39 = vector.shape_cast %38 : vector<1x32xf32> to vector<32xf32>
      %40 = vector.shape_cast %39 : vector<32xf32> to vector<1x32xf32>
      %41 = vector.broadcast %40 : vector<1x32xf32> to vector<8x32xf32>
      %42 = arith.addf %37, %41 : vector<8x32xf32>
      %c1 = arith.constant 1 : index
      %c0_28 = arith.constant 0 : index
      %c0_29 = arith.constant 0 : index
      %43 = vector.load %arg15[%c1, %c0_28, %c0_29] : memref<2x8x32xf32, #tpu.memory_space<vmem>>, vector<1x8x32xf32>
      %44 = vector.shape_cast %43 : vector<1x8x32xf32> to vector<8x32xf32>
      %45 = vector.shape_cast %42 : vector<8x32xf32> to vector<1x8x32xf32>
      tpu.vector_store %arg15[%c1, %c0_28, %c0_29], %45 {strides = array<i32>} : memref<2x8x32xf32, #tpu.memory_space<vmem>>, vector<1x8x32xf32>,
    } else {
    }
    return
  }
  func.func @transform_0(%arg0: i32, %arg1: i32) -> (i32, i32, i32) {
    %c0_i32 = arith.constant 0 : i32
    %c0_i32_0 = arith.constant 0 : i32
    %c0_i32_1 = arith.constant 0 : i32
    return %arg0, %c0_i32, %c0_i32_0 : i32, i32, i32
  }
  func.func @transform_1(%arg0: i32, %arg1: i32) -> (i32, i32) {
    %c0_i32 = arith.constant 0 : i32
    %c0_i32_0 = arith.constant 0 : i32
    %c0_i32_1 = arith.constant 0 : i32
    return %c0_i32, %c0_i32_0 : i32, i32
  }
  func.func @transform_2(%arg0: i32, %arg1: i32) -> (i32, i32) {
    %c0_i32 = arith.constant 0 : i32
    %c0_i32_0 = arith.constant 0 : i32
    %c0_i32_1 = arith.constant 0 : i32
    return %c0_i32, %c0_i32_0 : i32, i32
  }
  func.func @transform_3(%arg0: i32, %arg1: i32) -> (i32, i32) {
    %c0_i32 = arith.constant 0 : i32
    %c0_i32_0 = arith.constant 0 : i32
    %c0_i32_1 = arith.constant 0 : i32
    return %c0_i32, %c0_i32_0 : i32, i32
  }
  func.func @transform_4(%arg0: i32, %arg1: i32) -> (i32, i32) {
    %c0_i32 = arith.constant 0 : i32
    %c0_i32_0 = arith.constant 0 : i32
    %c0_i32_1 = arith.constant 0 : i32
    return %c0_i32, %c0_i32_0 : i32, i32
  }
  func.func @transform_5(%arg0: i32, %arg1: i32) -> (i32, i32) {
    %c0_i32 = arith.constant 0 : i32
    %c0_i32_0 = arith.constant 0 : i32
    %c0_i32_1 = arith.constant 0 : i32
    return %c0_i32, %c0_i32_0 : i32, i32
  }
  func.func @transform_6(%arg0: i32, %arg1: i32) -> (i32, i32) {
    %c0_i32 = arith.constant 0 : i32
    %c0_i32_0 = arith.constant 0 : i32
    %c0_i32_1 = arith.constant 0 : i32
    return %c0_i32, %c0_i32_0 : i32, i32
  }
  func.func @transform_7(%arg0: i32, %arg1: i32) -> (i32, i32) {
    %c0_i32 = arith.constant 0 : i32
    %c0_i32_0 = arith.constant 0 : i32
    %c0_i32_1 = arith.constant 0 : i32
    return %c0_i32, %c0_i32_0 : i32, i32
  }
  func.func @transform_8(%arg0: i32, %arg1: i32) -> (i32, i32) {
    %c0_i32 = arith.constant 0 : i32
    %c0_i32_0 = arith.constant 0 : i32
    %c0_i32_1 = arith.constant 0 : i32
    return %c0_i32, %c0_i32_0 : i32, i32
  }
  func.func @transform_9(%arg0: i32, %arg1: i32) -> (i32, i32) {
    %c0_i32 = arith.constant 0 : i32
    %c0_i32_0 = arith.constant 0 : i32
    return %c0_i32, %arg1 : i32, i32
  }
  func.func @transform_10(%arg0: i32, %arg1: i32) -> (i32, i32) {
    %c0_i32 = arith.constant 0 : i32
    %c0_i32_0 = arith.constant 0 : i32
    return %c0_i32, %arg1 : i32, i32
  }
  func.func @transform_11(%arg0: i32, %arg1: i32) -> (i32, i32) {
    %c0_i32 = arith.constant 0 : i32
    %c0_i32_0 = arith.constant 0 : i32
    return %arg1, %c0_i32 : i32, i32
  }
  func.func @transform_12(%arg0: i32, %arg1: i32) -> (i32, i32) {
    %c0_i32 = arith.constant 0 : i32
    %c0_i32_0 = arith.constant 0 : i32
    %c0_i32_1 = arith.constant 0 : i32
    return %c0_i32, %c0_i32_0 : i32, i32
  }
  func.func @transform_13(%arg0: i32, %arg1: i32) -> (i32, i32, i32) {
    %c0_i32 = arith.constant 0 : i32
    %c0_i32_0 = arith.constant 0 : i32
    %c0_i32_1 = arith.constant 0 : i32
    return %arg0, %c0_i32, %c0_i32_0 : i32, i32, i32
  }
}

module attributes {stable_mosaic.version = 11 : i64} {
  func.func @encoder_block_kernel(%arg0: i32, %arg1: i32, %arg2: memref<2x8x32xf32, #tpu.memory_space<vmem>>, %arg3: memref<1x32xf32, #tpu.memory_space<vmem>>, %arg4: memref<1x32xf32, #tpu.memory_space<vmem>>, %arg5: memref<32x96xbf16, #tpu.memory_space<vmem>>, %arg6: memref<1x96xf32, #tpu.memory_space<vmem>>, %arg7: memref<32x32xbf16, #tpu.memory_space<vmem>>, %arg8: memref<1x32xf32, #tpu.memory_space<vmem>>, %arg9: memref<1x32xf32, #tpu.memory_space<vmem>>, %arg10: memref<1x32xf32, #tpu.memory_space<vmem>>, %arg11: memref<32x128xbf16, #tpu.memory_space<vmem>>, %arg12: memref<1x128xf32, #tpu.memory_space<vmem>>, %arg13: memref<128x32xbf16, #tpu.memory_space<vmem>>, %arg14: memref<1x32xf32, #tpu.memory_space<vmem>>, %arg15: memref<2x8x32xf32, #tpu.memory_space<vmem>>, %arg16: memref<8x32xbf16, #tpu.memory_space<vmem>>, %arg17: memref<16x32xbf16, #tpu.memory_space<vmem>>, %arg18: memref<16x32xf32, #tpu.memory_space<vmem>>) attributes {dimension_semantics = [#tpu.dimension_semantics<parallel>, #tpu.dimension_semantics<arbitrary>], iteration_bounds = array<i64: 2, 2>, scalar_prefetch = 0 : i64, scratch_operands = 3 : i64, tpu.core_type = #tpu.core_type<tc>, window_params = [{transform_indices = @transform_0, window_bounds = array<i64: 2, 8, 32>}, {pipeline_mode = #tpu.pipeline_mode<synchronous>, transform_indices = @transform_1, window_bounds = array<i64: 1, 32>}, {pipeline_mode = #tpu.pipeline_mode<synchronous>, transform_indices = @transform_2, window_bounds = array<i64: 1, 32>}, {pipeline_mode = #tpu.pipeline_mode<synchronous>, transform_indices = @transform_3, window_bounds = array<i64: 32, 96>}, {pipeline_mode = #tpu.pipeline_mode<synchronous>, transform_indices = @transform_4, window_bounds = array<i64: 1, 96>}, {pipeline_mode = #tpu.pipeline_mode<synchronous>, transform_indices = @transform_5, window_bounds = array<i64: 32, 32>}, {pipeline_mode = #tpu.pipeline_mode<synchronous>, transform_indices = @transform_6, window_bounds = array<i64: 1, 32>}, {pipeline_mode = #tpu.pipeline_mode<synchronous>, transform_indices = @transform_7, window_bounds = array<i64: 1, 32>}, {pipeline_mode = #tpu.pipeline_mode<synchronous>, transform_indices = @transform_8, window_bounds = array<i64: 1, 32>}, {transform_indices = @transform_9, window_bounds = array<i64: 32, 128>}, {transform_indices = @transform_10, window_bounds = array<i64: 1, 128>}, {transform_indices = @transform_11, window_bounds = array<i64: 128, 32>}, {pipeline_mode = #tpu.pipeline_mode<synchronous>, transform_indices = @transform_12, window_bounds = array<i64: 1, 32>}, {transform_indices = @transform_13, window_bounds = array<i64: 2, 8, 32>}]} {
    %c0_i32 = arith.constant 0 : i32
    %0 = arith.cmpi eq, %arg1, %c0_i32 : i32
    %1 = arith.extui %0 : i1 to i32
    %cst = arith.constant 9.99999997E-7 : f32
    %c0_i32_0 = arith.constant 0 : i32
    %2 = arith.cmpi ne, %1, %c0_i32_0 : i32
    scf.if %2 {
      %c0_18 = arith.constant 0 : index
      %c0_19 = arith.constant 0 : index
      %c0_20 = arith.constant 0 : index
      %28 = vector.load %arg2[%c0_18, %c0_19, %c0_20] : memref<2x8x32xf32, #tpu.memory_space<vmem>>, vector<1x8x32xf32>
      %29 = vector.shape_cast %28 : vector<1x8x32xf32> to vector<8x32xf32>
      %c0_21 = arith.constant 0 : index
      %c0_22 = arith.constant 0 : index
      %30 = vector.load %arg3[%c0_21, %c0_22] : memref<1x32xf32, #tpu.memory_space<vmem>>, vector<1x32xf32>
      %31 = vector.shape_cast %30 : vector<1x32xf32> to vector<32xf32>
      %c0_23 = arith.constant 0 : index
      %c0_24 = arith.constant 0 : index
      %32 = vector.load %arg4[%c0_23, %c0_24] : memref<1x32xf32, #tpu.memory_space<vmem>>, vector<1x32xf32>
      %33 = vector.shape_cast %32 : vector<1x32xf32> to vector<32xf32>
      %cst_25 = arith.constant dense<0.000000e+00> : vector<8xf32>
      %34 = vector.multi_reduction <add>, %29, %cst_25 [1] : vector<8x32xf32> to vector<8xf32>
      %35 = vector.shape_cast %34 : vector<8xf32> to vector<8x1xf32>
      %cst_26 = arith.constant 3.200000e+01 : f32
      %36 = vector.broadcast %cst_26 : f32 to vector<8x1xf32>
      %37 = arith.divf %35, %36 : vector<8x1xf32>
      %38 = vector.broadcast %37 : vector<8x1xf32> to vector<8x32xf32>
      %39 = arith.subf %29, %38 : vector<8x32xf32>
      %40 = arith.mulf %39, %39 : vector<8x32xf32>
      %cst_27 = arith.constant dense<0.000000e+00> : vector<8xf32>
      %41 = vector.multi_reduction <add>, %40, %cst_27 [1] : vector<8x32xf32> to vector<8xf32>
      %42 = vector.shape_cast %41 : vector<8xf32> to vector<8x1xf32>
      %cst_28 = arith.constant 3.200000e+01 : f32
      %43 = vector.broadcast %cst_28 : f32 to vector<8x1xf32>
      %44 = arith.divf %42, %43 : vector<8x1xf32>
      %45 = vector.broadcast %37 : vector<8x1xf32> to vector<8x32xf32>
      %46 = arith.subf %29, %45 : vector<8x32xf32>
      %47 = vector.broadcast %cst : f32 to vector<8x1xf32>
      %48 = arith.addf %44, %47 : vector<8x1xf32>
      %49 = math.rsqrt %48 : vector<8x1xf32>
      %50 = vector.broadcast %49 : vector<8x1xf32> to vector<8x32xf32>
      %51 = arith.mulf %46, %50 : vector<8x32xf32>
      %52 = vector.shape_cast %31 : vector<32xf32> to vector<1x32xf32>
      %53 = vector.broadcast %52 : vector<1x32xf32> to vector<8x32xf32>
      %54 = arith.mulf %51, %53 : vector<8x32xf32>
      %55 = vector.shape_cast %33 : vector<32xf32> to vector<1x32xf32>
      %56 = vector.broadcast %55 : vector<1x32xf32> to vector<8x32xf32>
      %57 = arith.addf %54, %56 : vector<8x32xf32>
      %58 = arith.truncf %57 : vector<8x32xf32> to vector<8x32xbf16>
      %c0_29 = arith.constant 0 : index
      %c0_30 = arith.constant 0 : index
      %59 = vector.load %arg5[%c0_29, %c0_30] : memref<32x96xbf16, #tpu.memory_space<vmem>>, vector<32x96xbf16>
      %cst_31 = arith.constant dense<0.000000e+00> : vector<8x96xf32>
      %60 = tpu.matmul %58, %59, %cst_31 {dimension_numbers = #tpu.dot_dimension_numbers<[1], [0], [0], [1], [0, 0, 1, 1], [], []>} : vector<8x32xbf16>, vector<32x96xbf16>, vector<8x96xf32> -> vector<8x96xf32>
      %c0_32 = arith.constant 0 : index
      %c0_33 = arith.constant 0 : index
      %61 = vector.load %arg6[%c0_32, %c0_33] : memref<1x96xf32, #tpu.memory_space<vmem>>, vector<1x96xf32>
      %62 = vector.shape_cast %61 : vector<1x96xf32> to vector<96xf32>
      %63 = vector.shape_cast %62 : vector<96xf32> to vector<1x96xf32>
      %64 = vector.broadcast %63 : vector<1x96xf32> to vector<8x96xf32>
      %65 = arith.addf %60, %64 : vector<8x96xf32>
      %66 = vector.extract_strided_slice %65 {offsets = [0, 0], sizes = [8, 32], strides = [1, 1]} : vector<8x96xf32> to vector<8x32xf32>
      %cst_34 = arith.constant 0.353553385 : f32
      %67 = vector.broadcast %cst_34 : f32 to vector<8x32xf32>
      %68 = arith.mulf %66, %67 : vector<8x32xf32>
      %69 = arith.truncf %68 : vector<8x32xf32> to vector<8x32xbf16>
      %70 = vector.extract_strided_slice %65 {offsets = [0, 32], sizes = [8, 32], strides = [1, 1]} : vector<8x96xf32> to vector<8x32xf32>
      %71 = arith.truncf %70 : vector<8x32xf32> to vector<8x32xbf16>
      %72 = tpu.transpose %71, [1, 0] : vector<8x32xbf16> -> vector<32x8xbf16>
      %73 = vector.extract_strided_slice %65 {offsets = [0, 64], sizes = [8, 32], strides = [1, 1]} : vector<8x96xf32> to vector<8x32xf32>
      %74 = arith.truncf %73 : vector<8x32xf32> to vector<8x32xbf16>
      %75 = vector.extract_strided_slice %69 {offsets = [0, 0], sizes = [8, 8], strides = [1, 1]} : vector<8x32xbf16> to vector<8x8xbf16>
      %76 = vector.extract_strided_slice %72 {offsets = [0, 0], sizes = [8, 8], strides = [1, 1]} : vector<32x8xbf16> to vector<8x8xbf16>
      %77 = vector.extract_strided_slice %74 {offsets = [0, 0], sizes = [8, 8], strides = [1, 1]} : vector<8x32xbf16> to vector<8x8xbf16>
      %cst_35 = arith.constant dense<0.000000e+00> : vector<8x8xf32>
      %78 = tpu.matmul %75, %76, %cst_35 {dimension_numbers = #tpu.dot_dimension_numbers<[1], [0], [0], [1], [0, 0, 1, 1], [], []>} : vector<8x8xbf16>, vector<8x8xbf16>, vector<8x8xf32> -> vector<8x8xf32>
      %cst_36 = arith.constant dense<0xFF800000> : vector<8xf32>
      %79 = vector.multi_reduction <maximumf>, %78, %cst_36 [1] : vector<8x8xf32> to vector<8xf32>
      %80 = vector.shape_cast %79 : vector<8xf32> to vector<8x1xf32>
      %81 = vector.broadcast %80 : vector<8x1xf32> to vector<8x8xf32>
      %82 = arith.subf %78, %81 : vector<8x8xf32>
      %83 = math.exp %82 : vector<8x8xf32>
      %cst_37 = arith.constant dense<0.000000e+00> : vector<8xf32>
      %84 = vector.multi_reduction <add>, %83, %cst_37 [1] : vector<8x8xf32> to vector<8xf32>
      %85 = vector.shape_cast %84 : vector<8xf32> to vector<8x1xf32>
      %86 = tpu.reciprocal %85 {approx = true} : vector<8x1xf32> -> vector<8x1xf32>
      %87 = vector.broadcast %86 : vector<8x1xf32> to vector<8x8xf32>
      %88 = arith.mulf %83, %87 : vector<8x8xf32>
      %89 = arith.truncf %88 : vector<8x8xf32> to vector<8x8xbf16>
      %cst_38 = arith.constant dense<0.000000e+00> : vector<8x8xf32>
      %90 = tpu.matmul %89, %77, %cst_38 {dimension_numbers = #tpu.dot_dimension_numbers<[1], [0], [0], [1], [0, 0, 1, 1], [], []>} : vector<8x8xbf16>, vector<8x8xbf16>, vector<8x8xf32> -> vector<8x8xf32>
      %91 = arith.truncf %90 : vector<8x8xf32> to vector<8x8xbf16>
      %c0_39 = arith.constant 0 : index
      %c0_40 = arith.constant 0 : index
      %92 = vector.load %arg16[%c0_39, %c0_40] : memref<8x32xbf16, #tpu.memory_space<vmem>>, vector<8x8xbf16>
      tpu.vector_store %arg16[%c0_39, %c0_40], %91 {strides = array<i32>} : memref<8x32xbf16, #tpu.memory_space<vmem>>, vector<8x8xbf16>,
      %93 = vector.extract_strided_slice %69 {offsets = [0, 8], sizes = [8, 8], strides = [1, 1]} : vector<8x32xbf16> to vector<8x8xbf16>
      %94 = vector.extract_strided_slice %72 {offsets = [8, 0], sizes = [8, 8], strides = [1, 1]} : vector<32x8xbf16> to vector<8x8xbf16>
      %95 = vector.extract_strided_slice %74 {offsets = [0, 8], sizes = [8, 8], strides = [1, 1]} : vector<8x32xbf16> to vector<8x8xbf16>
      %cst_41 = arith.constant dense<0.000000e+00> : vector<8x8xf32>
      %96 = tpu.matmul %93, %94, %cst_41 {dimension_numbers = #tpu.dot_dimension_numbers<[1], [0], [0], [1], [0, 0, 1, 1], [], []>} : vector<8x8xbf16>, vector<8x8xbf16>, vector<8x8xf32> -> vector<8x8xf32>
      %cst_42 = arith.constant dense<0xFF800000> : vector<8xf32>
      %97 = vector.multi_reduction <maximumf>, %96, %cst_42 [1] : vector<8x8xf32> to vector<8xf32>
      %98 = vector.shape_cast %97 : vector<8xf32> to vector<8x1xf32>
      %99 = vector.broadcast %98 : vector<8x1xf32> to vector<8x8xf32>
      %100 = arith.subf %96, %99 : vector<8x8xf32>
      %101 = math.exp %100 : vector<8x8xf32>
      %cst_43 = arith.constant dense<0.000000e+00> : vector<8xf32>
      %102 = vector.multi_reduction <add>, %101, %cst_43 [1] : vector<8x8xf32> to vector<8xf32>
      %103 = vector.shape_cast %102 : vector<8xf32> to vector<8x1xf32>
      %104 = tpu.reciprocal %103 {approx = true} : vector<8x1xf32> -> vector<8x1xf32>
      %105 = vector.broadcast %104 : vector<8x1xf32> to vector<8x8xf32>
      %106 = arith.mulf %101, %105 : vector<8x8xf32>
      %107 = arith.truncf %106 : vector<8x8xf32> to vector<8x8xbf16>
      %cst_44 = arith.constant dense<0.000000e+00> : vector<8x8xf32>
      %108 = tpu.matmul %107, %95, %cst_44 {dimension_numbers = #tpu.dot_dimension_numbers<[1], [0], [0], [1], [0, 0, 1, 1], [], []>} : vector<8x8xbf16>, vector<8x8xbf16>, vector<8x8xf32> -> vector<8x8xf32>
      %109 = arith.truncf %108 : vector<8x8xf32> to vector<8x8xbf16>
      %c0_45 = arith.constant 0 : index
      %c8 = arith.constant 8 : index
      %110 = vector.load %arg16[%c0_45, %c8] : memref<8x32xbf16, #tpu.memory_space<vmem>>, vector<8x8xbf16>
      tpu.vector_store %arg16[%c0_45, %c8], %109 {strides = array<i32>} : memref<8x32xbf16, #tpu.memory_space<vmem>>, vector<8x8xbf16>,
      %111 = vector.extract_strided_slice %69 {offsets = [0, 16], sizes = [8, 8], strides = [1, 1]} : vector<8x32xbf16> to vector<8x8xbf16>
      %112 = vector.extract_strided_slice %72 {offsets = [16, 0], sizes = [8, 8], strides = [1, 1]} : vector<32x8xbf16> to vector<8x8xbf16>
      %113 = vector.extract_strided_slice %74 {offsets = [0, 16], sizes = [8, 8], strides = [1, 1]} : vector<8x32xbf16> to vector<8x8xbf16>
      %cst_46 = arith.constant dense<0.000000e+00> : vector<8x8xf32>
      %114 = tpu.matmul %111, %112, %cst_46 {dimension_numbers = #tpu.dot_dimension_numbers<[1], [0], [0], [1], [0, 0, 1, 1], [], []>} : vector<8x8xbf16>, vector<8x8xbf16>, vector<8x8xf32> -> vector<8x8xf32>
      %cst_47 = arith.constant dense<0xFF800000> : vector<8xf32>
      %115 = vector.multi_reduction <maximumf>, %114, %cst_47 [1] : vector<8x8xf32> to vector<8xf32>
      %116 = vector.shape_cast %115 : vector<8xf32> to vector<8x1xf32>
      %117 = vector.broadcast %116 : vector<8x1xf32> to vector<8x8xf32>
      %118 = arith.subf %114, %117 : vector<8x8xf32>
      %119 = math.exp %118 : vector<8x8xf32>
      %cst_48 = arith.constant dense<0.000000e+00> : vector<8xf32>
      %120 = vector.multi_reduction <add>, %119, %cst_48 [1] : vector<8x8xf32> to vector<8xf32>
      %121 = vector.shape_cast %120 : vector<8xf32> to vector<8x1xf32>
      %122 = tpu.reciprocal %121 {approx = true} : vector<8x1xf32> -> vector<8x1xf32>
      %123 = vector.broadcast %122 : vector<8x1xf32> to vector<8x8xf32>
      %124 = arith.mulf %119, %123 : vector<8x8xf32>
      %125 = arith.truncf %124 : vector<8x8xf32> to vector<8x8xbf16>
      %cst_49 = arith.constant dense<0.000000e+00> : vector<8x8xf32>
      %126 = tpu.matmul %125, %113, %cst_49 {dimension_numbers = #tpu.dot_dimension_numbers<[1], [0], [0], [1], [0, 0, 1, 1], [], []>} : vector<8x8xbf16>, vector<8x8xbf16>, vector<8x8xf32> -> vector<8x8xf32>
      %127 = arith.truncf %126 : vector<8x8xf32> to vector<8x8xbf16>
      %c0_50 = arith.constant 0 : index
      %c16 = arith.constant 16 : index
      %128 = vector.load %arg16[%c0_50, %c16] : memref<8x32xbf16, #tpu.memory_space<vmem>>, vector<8x8xbf16>
      tpu.vector_store %arg16[%c0_50, %c16], %127 {strides = array<i32>} : memref<8x32xbf16, #tpu.memory_space<vmem>>, vector<8x8xbf16>,
      %129 = vector.extract_strided_slice %69 {offsets = [0, 24], sizes = [8, 8], strides = [1, 1]} : vector<8x32xbf16> to vector<8x8xbf16>
      %130 = vector.extract_strided_slice %72 {offsets = [24, 0], sizes = [8, 8], strides = [1, 1]} : vector<32x8xbf16> to vector<8x8xbf16>
      %131 = vector.extract_strided_slice %74 {offsets = [0, 24], sizes = [8, 8], strides = [1, 1]} : vector<8x32xbf16> to vector<8x8xbf16>
      %cst_51 = arith.constant dense<0.000000e+00> : vector<8x8xf32>
      %132 = tpu.matmul %129, %130, %cst_51 {dimension_numbers = #tpu.dot_dimension_numbers<[1], [0], [0], [1], [0, 0, 1, 1], [], []>} : vector<8x8xbf16>, vector<8x8xbf16>, vector<8x8xf32> -> vector<8x8xf32>
      %cst_52 = arith.constant dense<0xFF800000> : vector<8xf32>
      %133 = vector.multi_reduction <maximumf>, %132, %cst_52 [1] : vector<8x8xf32> to vector<8xf32>
      %134 = vector.shape_cast %133 : vector<8xf32> to vector<8x1xf32>
      %135 = vector.broadcast %134 : vector<8x1xf32> to vector<8x8xf32>
      %136 = arith.subf %132, %135 : vector<8x8xf32>
      %137 = math.exp %136 : vector<8x8xf32>
      %cst_53 = arith.constant dense<0.000000e+00> : vector<8xf32>
      %138 = vector.multi_reduction <add>, %137, %cst_53 [1] : vector<8x8xf32> to vector<8xf32>
      %139 = vector.shape_cast %138 : vector<8xf32> to vector<8x1xf32>
      %140 = tpu.reciprocal %139 {approx = true} : vector<8x1xf32> -> vector<8x1xf32>
      %141 = vector.broadcast %140 : vector<8x1xf32> to vector<8x8xf32>
      %142 = arith.mulf %137, %141 : vector<8x8xf32>
      %143 = arith.truncf %142 : vector<8x8xf32> to vector<8x8xbf16>
      %cst_54 = arith.constant dense<0.000000e+00> : vector<8x8xf32>
      %144 = tpu.matmul %143, %131, %cst_54 {dimension_numbers = #tpu.dot_dimension_numbers<[1], [0], [0], [1], [0, 0, 1, 1], [], []>} : vector<8x8xbf16>, vector<8x8xbf16>, vector<8x8xf32> -> vector<8x8xf32>
      %145 = arith.truncf %144 : vector<8x8xf32> to vector<8x8xbf16>
      %c0_55 = arith.constant 0 : index
      %c24 = arith.constant 24 : index
      %146 = vector.load %arg16[%c0_55, %c24] : memref<8x32xbf16, #tpu.memory_space<vmem>>, vector<8x8xbf16>
      tpu.vector_store %arg16[%c0_55, %c24], %145 {strides = array<i32>} : memref<8x32xbf16, #tpu.memory_space<vmem>>, vector<8x8xbf16>,
      %c0_56 = arith.constant 0 : index
      %c0_57 = arith.constant 0 : index
      %147 = vector.load %arg16[%c0_56, %c0_57] : memref<8x32xbf16, #tpu.memory_space<vmem>>, vector<8x32xbf16>
      %c0_58 = arith.constant 0 : index
      %c0_59 = arith.constant 0 : index
      %148 = vector.load %arg7[%c0_58, %c0_59] : memref<32x32xbf16, #tpu.memory_space<vmem>>, vector<32x32xbf16>
      %cst_60 = arith.constant dense<0.000000e+00> : vector<8x32xf32>
      %149 = tpu.matmul %147, %148, %cst_60 {dimension_numbers = #tpu.dot_dimension_numbers<[1], [0], [0], [1], [0, 0, 1, 1], [], []>} : vector<8x32xbf16>, vector<32x32xbf16>, vector<8x32xf32> -> vector<8x32xf32>
      %c0_61 = arith.constant 0 : index
      %c0_62 = arith.constant 0 : index
      %150 = vector.load %arg8[%c0_61, %c0_62] : memref<1x32xf32, #tpu.memory_space<vmem>>, vector<1x32xf32>
      %151 = vector.shape_cast %150 : vector<1x32xf32> to vector<32xf32>
      %152 = vector.shape_cast %151 : vector<32xf32> to vector<1x32xf32>
      %153 = vector.broadcast %152 : vector<1x32xf32> to vector<8x32xf32>
      %154 = arith.addf %149, %153 : vector<8x32xf32>
      %155 = arith.addf %154, %29 : vector<8x32xf32>
      %c0_63 = arith.constant 0 : index
      %c0_64 = arith.constant 0 : index
      %156 = vector.load %arg9[%c0_63, %c0_64] : memref<1x32xf32, #tpu.memory_space<vmem>>, vector<1x32xf32>
      %157 = vector.shape_cast %156 : vector<1x32xf32> to vector<32xf32>
      %c0_65 = arith.constant 0 : index
      %c0_66 = arith.constant 0 : index
      %158 = vector.load %arg10[%c0_65, %c0_66] : memref<1x32xf32, #tpu.memory_space<vmem>>, vector<1x32xf32>
      %159 = vector.shape_cast %158 : vector<1x32xf32> to vector<32xf32>
      %cst_67 = arith.constant dense<0.000000e+00> : vector<8xf32>
      %160 = vector.multi_reduction <add>, %155, %cst_67 [1] : vector<8x32xf32> to vector<8xf32>
      %161 = vector.shape_cast %160 : vector<8xf32> to vector<8x1xf32>
      %cst_68 = arith.constant 3.200000e+01 : f32
      %162 = vector.broadcast %cst_68 : f32 to vector<8x1xf32>
      %163 = arith.divf %161, %162 : vector<8x1xf32>
      %164 = vector.broadcast %163 : vector<8x1xf32> to vector<8x32xf32>
      %165 = arith.subf %155, %164 : vector<8x32xf32>
      %166 = arith.mulf %165, %165 : vector<8x32xf32>
      %cst_69 = arith.constant dense<0.000000e+00> : vector<8xf32>
      %167 = vector.multi_reduction <add>, %166, %cst_69 [1] : vector<8x32xf32> to vector<8xf32>
      %168 = vector.shape_cast %167 : vector<8xf32> to vector<8x1xf32>
      %cst_70 = arith.constant 3.200000e+01 : f32
      %169 = vector.broadcast %cst_70 : f32 to vector<8x1xf32>
      %170 = arith.divf %168, %169 : vector<8x1xf32>
      %171 = vector.broadcast %163 : vector<8x1xf32> to vector<8x32xf32>
      %172 = arith.subf %155, %171 : vector<8x32xf32>
      %173 = vector.broadcast %cst : f32 to vector<8x1xf32>
      %174 = arith.addf %170, %173 : vector<8x1xf32>
      %175 = math.rsqrt %174 : vector<8x1xf32>
      %176 = vector.broadcast %175 : vector<8x1xf32> to vector<8x32xf32>
      %177 = arith.mulf %172, %176 : vector<8x32xf32>
      %178 = vector.shape_cast %157 : vector<32xf32> to vector<1x32xf32>
      %179 = vector.broadcast %178 : vector<1x32xf32> to vector<8x32xf32>
      %180 = arith.mulf %177, %179 : vector<8x32xf32>
      %181 = vector.shape_cast %159 : vector<32xf32> to vector<1x32xf32>
      %182 = vector.broadcast %181 : vector<1x32xf32> to vector<8x32xf32>
      %183 = arith.addf %180, %182 : vector<8x32xf32>
      %184 = arith.truncf %183 : vector<8x32xf32> to vector<8x32xbf16>
      %c0_71 = arith.constant 0 : index
      %c0_72 = arith.constant 0 : index
      %185 = vector.load %arg17[%c0_71, %c0_72] : memref<16x32xbf16, #tpu.memory_space<vmem>>, vector<8x32xbf16>
      tpu.vector_store %arg17[%c0_71, %c0_72], %184 {strides = array<i32>} : memref<16x32xbf16, #tpu.memory_space<vmem>>, vector<8x32xbf16>,
      %c0_73 = arith.constant 0 : index
      %c0_74 = arith.constant 0 : index
      %186 = vector.load %arg18[%c0_73, %c0_74] : memref<16x32xf32, #tpu.memory_space<vmem>>, vector<8x32xf32>
      tpu.vector_store %arg18[%c0_73, %c0_74], %155 {strides = array<i32>} : memref<16x32xf32, #tpu.memory_space<vmem>>, vector<8x32xf32>,
      %c1 = arith.constant 1 : index
      %c0_75 = arith.constant 0 : index
      %c0_76 = arith.constant 0 : index
      %187 = vector.load %arg2[%c1, %c0_75, %c0_76] : memref<2x8x32xf32, #tpu.memory_space<vmem>>, vector<1x8x32xf32>
      %188 = vector.shape_cast %187 : vector<1x8x32xf32> to vector<8x32xf32>
      %c0_77 = arith.constant 0 : index
      %c0_78 = arith.constant 0 : index
      %189 = vector.load %arg3[%c0_77, %c0_78] : memref<1x32xf32, #tpu.memory_space<vmem>>, vector<1x32xf32>
      %190 = vector.shape_cast %189 : vector<1x32xf32> to vector<32xf32>
      %c0_79 = arith.constant 0 : index
      %c0_80 = arith.constant 0 : index
      %191 = vector.load %arg4[%c0_79, %c0_80] : memref<1x32xf32, #tpu.memory_space<vmem>>, vector<1x32xf32>
      %192 = vector.shape_cast %191 : vector<1x32xf32> to vector<32xf32>
      %cst_81 = arith.constant dense<0.000000e+00> : vector<8xf32>
      %193 = vector.multi_reduction <add>, %188, %cst_81 [1] : vector<8x32xf32> to vector<8xf32>
      %194 = vector.shape_cast %193 : vector<8xf32> to vector<8x1xf32>
      %cst_82 = arith.constant 3.200000e+01 : f32
      %195 = vector.broadcast %cst_82 : f32 to vector<8x1xf32>
      %196 = arith.divf %194, %195 : vector<8x1xf32>
      %197 = vector.broadcast %196 : vector<8x1xf32> to vector<8x32xf32>
      %198 = arith.subf %188, %197 : vector<8x32xf32>
      %199 = arith.mulf %198, %198 : vector<8x32xf32>
      %cst_83 = arith.constant dense<0.000000e+00> : vector<8xf32>
      %200 = vector.multi_reduction <add>, %199, %cst_83 [1] : vector<8x32xf32> to vector<8xf32>
      %201 = vector.shape_cast %200 : vector<8xf32> to vector<8x1xf32>
      %cst_84 = arith.constant 3.200000e+01 : f32
      %202 = vector.broadcast %cst_84 : f32 to vector<8x1xf32>
      %203 = arith.divf %201, %202 : vector<8x1xf32>
      %204 = vector.broadcast %196 : vector<8x1xf32> to vector<8x32xf32>
      %205 = arith.subf %188, %204 : vector<8x32xf32>
      %206 = vector.broadcast %cst : f32 to vector<8x1xf32>
      %207 = arith.addf %203, %206 : vector<8x1xf32>
      %208 = math.rsqrt %207 : vector<8x1xf32>
      %209 = vector.broadcast %208 : vector<8x1xf32> to vector<8x32xf32>
      %210 = arith.mulf %205, %209 : vector<8x32xf32>
      %211 = vector.shape_cast %190 : vector<32xf32> to vector<1x32xf32>
      %212 = vector.broadcast %211 : vector<1x32xf32> to vector<8x32xf32>
      %213 = arith.mulf %210, %212 : vector<8x32xf32>
      %214 = vector.shape_cast %192 : vector<32xf32> to vector<1x32xf32>
      %215 = vector.broadcast %214 : vector<1x32xf32> to vector<8x32xf32>
      %216 = arith.addf %213, %215 : vector<8x32xf32>
      %217 = arith.truncf %216 : vector<8x32xf32> to vector<8x32xbf16>
      %c0_85 = arith.constant 0 : index
      %c0_86 = arith.constant 0 : index
      %218 = vector.load %arg5[%c0_85, %c0_86] : memref<32x96xbf16, #tpu.memory_space<vmem>>, vector<32x96xbf16>
      %cst_87 = arith.constant dense<0.000000e+00> : vector<8x96xf32>
      %219 = tpu.matmul %217, %218, %cst_87 {dimension_numbers = #tpu.dot_dimension_numbers<[1], [0], [0], [1], [0, 0, 1, 1], [], []>} : vector<8x32xbf16>, vector<32x96xbf16>, vector<8x96xf32> -> vector<8x96xf32>
      %c0_88 = arith.constant 0 : index
      %c0_89 = arith.constant 0 : index
      %220 = vector.load %arg6[%c0_88, %c0_89] : memref<1x96xf32, #tpu.memory_space<vmem>>, vector<1x96xf32>
      %221 = vector.shape_cast %220 : vector<1x96xf32> to vector<96xf32>
      %222 = vector.shape_cast %221 : vector<96xf32> to vector<1x96xf32>
      %223 = vector.broadcast %222 : vector<1x96xf32> to vector<8x96xf32>
      %224 = arith.addf %219, %223 : vector<8x96xf32>
      %225 = vector.extract_strided_slice %224 {offsets = [0, 0], sizes = [8, 32], strides = [1, 1]} : vector<8x96xf32> to vector<8x32xf32>
      %cst_90 = arith.constant 0.353553385 : f32
      %226 = vector.broadcast %cst_90 : f32 to vector<8x32xf32>
      %227 = arith.mulf %225, %226 : vector<8x32xf32>
      %228 = arith.truncf %227 : vector<8x32xf32> to vector<8x32xbf16>
      %229 = vector.extract_strided_slice %224 {offsets = [0, 32], sizes = [8, 32], strides = [1, 1]} : vector<8x96xf32> to vector<8x32xf32>
      %230 = arith.truncf %229 : vector<8x32xf32> to vector<8x32xbf16>
      %231 = tpu.transpose %230, [1, 0] : vector<8x32xbf16> -> vector<32x8xbf16>
      %232 = vector.extract_strided_slice %224 {offsets = [0, 64], sizes = [8, 32], strides = [1, 1]} : vector<8x96xf32> to vector<8x32xf32>
      %233 = arith.truncf %232 : vector<8x32xf32> to vector<8x32xbf16>
      %234 = vector.extract_strided_slice %228 {offsets = [0, 0], sizes = [8, 8], strides = [1, 1]} : vector<8x32xbf16> to vector<8x8xbf16>
      %235 = vector.extract_strided_slice %231 {offsets = [0, 0], sizes = [8, 8], strides = [1, 1]} : vector<32x8xbf16> to vector<8x8xbf16>
      %236 = vector.extract_strided_slice %233 {offsets = [0, 0], sizes = [8, 8], strides = [1, 1]} : vector<8x32xbf16> to vector<8x8xbf16>
      %cst_91 = arith.constant dense<0.000000e+00> : vector<8x8xf32>
      %237 = tpu.matmul %234, %235, %cst_91 {dimension_numbers = #tpu.dot_dimension_numbers<[1], [0], [0], [1], [0, 0, 1, 1], [], []>} : vector<8x8xbf16>, vector<8x8xbf16>, vector<8x8xf32> -> vector<8x8xf32>
      %cst_92 = arith.constant dense<0xFF800000> : vector<8xf32>
      %238 = vector.multi_reduction <maximumf>, %237, %cst_92 [1] : vector<8x8xf32> to vector<8xf32>
      %239 = vector.shape_cast %238 : vector<8xf32> to vector<8x1xf32>
      %240 = vector.broadcast %239 : vector<8x1xf32> to vector<8x8xf32>
      %241 = arith.subf %237, %240 : vector<8x8xf32>
      %242 = math.exp %241 : vector<8x8xf32>
      %cst_93 = arith.constant dense<0.000000e+00> : vector<8xf32>
      %243 = vector.multi_reduction <add>, %242, %cst_93 [1] : vector<8x8xf32> to vector<8xf32>
      %244 = vector.shape_cast %243 : vector<8xf32> to vector<8x1xf32>
      %245 = tpu.reciprocal %244 {approx = true} : vector<8x1xf32> -> vector<8x1xf32>
      %246 = vector.broadcast %245 : vector<8x1xf32> to vector<8x8xf32>
      %247 = arith.mulf %242, %246 : vector<8x8xf32>
      %248 = arith.truncf %247 : vector<8x8xf32> to vector<8x8xbf16>
      %cst_94 = arith.constant dense<0.000000e+00> : vector<8x8xf32>
      %249 = tpu.matmul %248, %236, %cst_94 {dimension_numbers = #tpu.dot_dimension_numbers<[1], [0], [0], [1], [0, 0, 1, 1], [], []>} : vector<8x8xbf16>, vector<8x8xbf16>, vector<8x8xf32> -> vector<8x8xf32>
      %250 = arith.truncf %249 : vector<8x8xf32> to vector<8x8xbf16>
      %c0_95 = arith.constant 0 : index
      %c0_96 = arith.constant 0 : index
      %251 = vector.load %arg16[%c0_95, %c0_96] : memref<8x32xbf16, #tpu.memory_space<vmem>>, vector<8x8xbf16>
      tpu.vector_store %arg16[%c0_95, %c0_96], %250 {strides = array<i32>} : memref<8x32xbf16, #tpu.memory_space<vmem>>, vector<8x8xbf16>,
      %252 = vector.extract_strided_slice %228 {offsets = [0, 8], sizes = [8, 8], strides = [1, 1]} : vector<8x32xbf16> to vector<8x8xbf16>
      %253 = vector.extract_strided_slice %231 {offsets = [8, 0], sizes = [8, 8], strides = [1, 1]} : vector<32x8xbf16> to vector<8x8xbf16>
      %254 = vector.extract_strided_slice %233 {offsets = [0, 8], sizes = [8, 8], strides = [1, 1]} : vector<8x32xbf16> to vector<8x8xbf16>
      %cst_97 = arith.constant dense<0.000000e+00> : vector<8x8xf32>
      %255 = tpu.matmul %252, %253, %cst_97 {dimension_numbers = #tpu.dot_dimension_numbers<[1], [0], [0], [1], [0, 0, 1, 1], [], []>} : vector<8x8xbf16>, vector<8x8xbf16>, vector<8x8xf32> -> vector<8x8xf32>
      %cst_98 = arith.constant dense<0xFF800000> : vector<8xf32>
      %256 = vector.multi_reduction <maximumf>, %255, %cst_98 [1] : vector<8x8xf32> to vector<8xf32>
      %257 = vector.shape_cast %256 : vector<8xf32> to vector<8x1xf32>
      %258 = vector.broadcast %257 : vector<8x1xf32> to vector<8x8xf32>
      %259 = arith.subf %255, %258 : vector<8x8xf32>
      %260 = math.exp %259 : vector<8x8xf32>
      %cst_99 = arith.constant dense<0.000000e+00> : vector<8xf32>
      %261 = vector.multi_reduction <add>, %260, %cst_99 [1] : vector<8x8xf32> to vector<8xf32>
      %262 = vector.shape_cast %261 : vector<8xf32> to vector<8x1xf32>
      %263 = tpu.reciprocal %262 {approx = true} : vector<8x1xf32> -> vector<8x1xf32>
      %264 = vector.broadcast %263 : vector<8x1xf32> to vector<8x8xf32>
      %265 = arith.mulf %260, %264 : vector<8x8xf32>
      %266 = arith.truncf %265 : vector<8x8xf32> to vector<8x8xbf16>
      %cst_100 = arith.constant dense<0.000000e+00> : vector<8x8xf32>
      %267 = tpu.matmul %266, %254, %cst_100 {dimension_numbers = #tpu.dot_dimension_numbers<[1], [0], [0], [1], [0, 0, 1, 1], [], []>} : vector<8x8xbf16>, vector<8x8xbf16>, vector<8x8xf32> -> vector<8x8xf32>
      %268 = arith.truncf %267 : vector<8x8xf32> to vector<8x8xbf16>
      %c0_101 = arith.constant 0 : index
      %c8_102 = arith.constant 8 : index
      %269 = vector.load %arg16[%c0_101, %c8_102] : memref<8x32xbf16, #tpu.memory_space<vmem>>, vector<8x8xbf16>
      tpu.vector_store %arg16[%c0_101, %c8_102], %268 {strides = array<i32>} : memref<8x32xbf16, #tpu.memory_space<vmem>>, vector<8x8xbf16>,
      %270 = vector.extract_strided_slice %228 {offsets = [0, 16], sizes = [8, 8], strides = [1, 1]} : vector<8x32xbf16> to vector<8x8xbf16>
      %271 = vector.extract_strided_slice %231 {offsets = [16, 0], sizes = [8, 8], strides = [1, 1]} : vector<32x8xbf16> to vector<8x8xbf16>
      %272 = vector.extract_strided_slice %233 {offsets = [0, 16], sizes = [8, 8], strides = [1, 1]} : vector<8x32xbf16> to vector<8x8xbf16>
      %cst_103 = arith.constant dense<0.000000e+00> : vector<8x8xf32>
      %273 = tpu.matmul %270, %271, %cst_103 {dimension_numbers = #tpu.dot_dimension_numbers<[1], [0], [0], [1], [0, 0, 1, 1], [], []>} : vector<8x8xbf16>, vector<8x8xbf16>, vector<8x8xf32> -> vector<8x8xf32>
      %cst_104 = arith.constant dense<0xFF800000> : vector<8xf32>
      %274 = vector.multi_reduction <maximumf>, %273, %cst_104 [1] : vector<8x8xf32> to vector<8xf32>
      %275 = vector.shape_cast %274 : vector<8xf32> to vector<8x1xf32>
      %276 = vector.broadcast %275 : vector<8x1xf32> to vector<8x8xf32>
      %277 = arith.subf %273, %276 : vector<8x8xf32>
      %278 = math.exp %277 : vector<8x8xf32>
      %cst_105 = arith.constant dense<0.000000e+00> : vector<8xf32>
      %279 = vector.multi_reduction <add>, %278, %cst_105 [1] : vector<8x8xf32> to vector<8xf32>
      %280 = vector.shape_cast %279 : vector<8xf32> to vector<8x1xf32>
      %281 = tpu.reciprocal %280 {approx = true} : vector<8x1xf32> -> vector<8x1xf32>
      %282 = vector.broadcast %281 : vector<8x1xf32> to vector<8x8xf32>
      %283 = arith.mulf %278, %282 : vector<8x8xf32>
      %284 = arith.truncf %283 : vector<8x8xf32> to vector<8x8xbf16>
      %cst_106 = arith.constant dense<0.000000e+00> : vector<8x8xf32>
      %285 = tpu.matmul %284, %272, %cst_106 {dimension_numbers = #tpu.dot_dimension_numbers<[1], [0], [0], [1], [0, 0, 1, 1], [], []>} : vector<8x8xbf16>, vector<8x8xbf16>, vector<8x8xf32> -> vector<8x8xf32>
      %286 = arith.truncf %285 : vector<8x8xf32> to vector<8x8xbf16>
      %c0_107 = arith.constant 0 : index
      %c16_108 = arith.constant 16 : index
      %287 = vector.load %arg16[%c0_107, %c16_108] : memref<8x32xbf16, #tpu.memory_space<vmem>>, vector<8x8xbf16>
      tpu.vector_store %arg16[%c0_107, %c16_108], %286 {strides = array<i32>} : memref<8x32xbf16, #tpu.memory_space<vmem>>, vector<8x8xbf16>,
      %288 = vector.extract_strided_slice %228 {offsets = [0, 24], sizes = [8, 8], strides = [1, 1]} : vector<8x32xbf16> to vector<8x8xbf16>
      %289 = vector.extract_strided_slice %231 {offsets = [24, 0], sizes = [8, 8], strides = [1, 1]} : vector<32x8xbf16> to vector<8x8xbf16>
      %290 = vector.extract_strided_slice %233 {offsets = [0, 24], sizes = [8, 8], strides = [1, 1]} : vector<8x32xbf16> to vector<8x8xbf16>
      %cst_109 = arith.constant dense<0.000000e+00> : vector<8x8xf32>
      %291 = tpu.matmul %288, %289, %cst_109 {dimension_numbers = #tpu.dot_dimension_numbers<[1], [0], [0], [1], [0, 0, 1, 1], [], []>} : vector<8x8xbf16>, vector<8x8xbf16>, vector<8x8xf32> -> vector<8x8xf32>
      %cst_110 = arith.constant dense<0xFF800000> : vector<8xf32>
      %292 = vector.multi_reduction <maximumf>, %291, %cst_110 [1] : vector<8x8xf32> to vector<8xf32>
      %293 = vector.shape_cast %292 : vector<8xf32> to vector<8x1xf32>
      %294 = vector.broadcast %293 : vector<8x1xf32> to vector<8x8xf32>
      %295 = arith.subf %291, %294 : vector<8x8xf32>
      %296 = math.exp %295 : vector<8x8xf32>
      %cst_111 = arith.constant dense<0.000000e+00> : vector<8xf32>
      %297 = vector.multi_reduction <add>, %296, %cst_111 [1] : vector<8x8xf32> to vector<8xf32>
      %298 = vector.shape_cast %297 : vector<8xf32> to vector<8x1xf32>
      %299 = tpu.reciprocal %298 {approx = true} : vector<8x1xf32> -> vector<8x1xf32>
      %300 = vector.broadcast %299 : vector<8x1xf32> to vector<8x8xf32>
      %301 = arith.mulf %296, %300 : vector<8x8xf32>
      %302 = arith.truncf %301 : vector<8x8xf32> to vector<8x8xbf16>
      %cst_112 = arith.constant dense<0.000000e+00> : vector<8x8xf32>
      %303 = tpu.matmul %302, %290, %cst_112 {dimension_numbers = #tpu.dot_dimension_numbers<[1], [0], [0], [1], [0, 0, 1, 1], [], []>} : vector<8x8xbf16>, vector<8x8xbf16>, vector<8x8xf32> -> vector<8x8xf32>
      %304 = arith.truncf %303 : vector<8x8xf32> to vector<8x8xbf16>
      %c0_113 = arith.constant 0 : index
      %c24_114 = arith.constant 24 : index
      %305 = vector.load %arg16[%c0_113, %c24_114] : memref<8x32xbf16, #tpu.memory_space<vmem>>, vector<8x8xbf16>
      tpu.vector_store %arg16[%c0_113, %c24_114], %304 {strides = array<i32>} : memref<8x32xbf16, #tpu.memory_space<vmem>>, vector<8x8xbf16>,
      %c0_115 = arith.constant 0 : index
      %c0_116 = arith.constant 0 : index
      %306 = vector.load %arg16[%c0_115, %c0_116] : memref<8x32xbf16, #tpu.memory_space<vmem>>, vector<8x32xbf16>
      %c0_117 = arith.constant 0 : index
      %c0_118 = arith.constant 0 : index
      %307 = vector.load %arg7[%c0_117, %c0_118] : memref<32x32xbf16, #tpu.memory_space<vmem>>, vector<32x32xbf16>
      %cst_119 = arith.constant dense<0.000000e+00> : vector<8x32xf32>
      %308 = tpu.matmul %306, %307, %cst_119 {dimension_numbers = #tpu.dot_dimension_numbers<[1], [0], [0], [1], [0, 0, 1, 1], [], []>} : vector<8x32xbf16>, vector<32x32xbf16>, vector<8x32xf32> -> vector<8x32xf32>
      %c0_120 = arith.constant 0 : index
      %c0_121 = arith.constant 0 : index
      %309 = vector.load %arg8[%c0_120, %c0_121] : memref<1x32xf32, #tpu.memory_space<vmem>>, vector<1x32xf32>
      %310 = vector.shape_cast %309 : vector<1x32xf32> to vector<32xf32>
      %311 = vector.shape_cast %310 : vector<32xf32> to vector<1x32xf32>
      %312 = vector.broadcast %311 : vector<1x32xf32> to vector<8x32xf32>
      %313 = arith.addf %308, %312 : vector<8x32xf32>
      %314 = arith.addf %313, %188 : vector<8x32xf32>
      %c0_122 = arith.constant 0 : index
      %c0_123 = arith.constant 0 : index
      %315 = vector.load %arg9[%c0_122, %c0_123] : memref<1x32xf32, #tpu.memory_space<vmem>>, vector<1x32xf32>
      %316 = vector.shape_cast %315 : vector<1x32xf32> to vector<32xf32>
      %c0_124 = arith.constant 0 : index
      %c0_125 = arith.constant 0 : index
      %317 = vector.load %arg10[%c0_124, %c0_125] : memref<1x32xf32, #tpu.memory_space<vmem>>, vector<1x32xf32>
      %318 = vector.shape_cast %317 : vector<1x32xf32> to vector<32xf32>
      %cst_126 = arith.constant dense<0.000000e+00> : vector<8xf32>
      %319 = vector.multi_reduction <add>, %314, %cst_126 [1] : vector<8x32xf32> to vector<8xf32>
      %320 = vector.shape_cast %319 : vector<8xf32> to vector<8x1xf32>
      %cst_127 = arith.constant 3.200000e+01 : f32
      %321 = vector.broadcast %cst_127 : f32 to vector<8x1xf32>
      %322 = arith.divf %320, %321 : vector<8x1xf32>
      %323 = vector.broadcast %322 : vector<8x1xf32> to vector<8x32xf32>
      %324 = arith.subf %314, %323 : vector<8x32xf32>
      %325 = arith.mulf %324, %324 : vector<8x32xf32>
      %cst_128 = arith.constant dense<0.000000e+00> : vector<8xf32>
      %326 = vector.multi_reduction <add>, %325, %cst_128 [1] : vector<8x32xf32> to vector<8xf32>
      %327 = vector.shape_cast %326 : vector<8xf32> to vector<8x1xf32>
      %cst_129 = arith.constant 3.200000e+01 : f32
      %328 = vector.broadcast %cst_129 : f32 to vector<8x1xf32>
      %329 = arith.divf %327, %328 : vector<8x1xf32>
      %330 = vector.broadcast %322 : vector<8x1xf32> to vector<8x32xf32>
      %331 = arith.subf %314, %330 : vector<8x32xf32>
      %332 = vector.broadcast %cst : f32 to vector<8x1xf32>
      %333 = arith.addf %329, %332 : vector<8x1xf32>
      %334 = math.rsqrt %333 : vector<8x1xf32>
      %335 = vector.broadcast %334 : vector<8x1xf32> to vector<8x32xf32>
      %336 = arith.mulf %331, %335 : vector<8x32xf32>
      %337 = vector.shape_cast %316 : vector<32xf32> to vector<1x32xf32>
      %338 = vector.broadcast %337 : vector<1x32xf32> to vector<8x32xf32>
      %339 = arith.mulf %336, %338 : vector<8x32xf32>
      %340 = vector.shape_cast %318 : vector<32xf32> to vector<1x32xf32>
      %341 = vector.broadcast %340 : vector<1x32xf32> to vector<8x32xf32>
      %342 = arith.addf %339, %341 : vector<8x32xf32>
      %343 = arith.truncf %342 : vector<8x32xf32> to vector<8x32xbf16>
      %c8_130 = arith.constant 8 : index
      %c0_131 = arith.constant 0 : index
      %344 = vector.load %arg17[%c8_130, %c0_131] : memref<16x32xbf16, #tpu.memory_space<vmem>>, vector<8x32xbf16>
      tpu.vector_store %arg17[%c8_130, %c0_131], %343 {strides = array<i32>} : memref<16x32xbf16, #tpu.memory_space<vmem>>, vector<8x32xbf16>,
      %c8_132 = arith.constant 8 : index
      %c0_133 = arith.constant 0 : index
      %345 = vector.load %arg18[%c8_132, %c0_133] : memref<16x32xf32, #tpu.memory_space<vmem>>, vector<8x32xf32>
      tpu.vector_store %arg18[%c8_132, %c0_133], %314 {strides = array<i32>} : memref<16x32xf32, #tpu.memory_space<vmem>>, vector<8x32xf32>,
    } else {
    }
    %c0 = arith.constant 0 : index
    %c0_1 = arith.constant 0 : index
    %3 = vector.load %arg17[%c0, %c0_1] : memref<16x32xbf16, #tpu.memory_space<vmem>>, vector<16x32xbf16>
    %c0_2 = arith.constant 0 : index
    %c0_3 = arith.constant 0 : index
    %4 = vector.load %arg11[%c0_2, %c0_3] : memref<32x128xbf16, #tpu.memory_space<vmem>>, vector<32x128xbf16>
    %cst_4 = arith.constant dense<0.000000e+00> : vector<16x128xf32>
    %5 = tpu.matmul %3, %4, %cst_4 {dimension_numbers = #tpu.dot_dimension_numbers<[1], [0], [0], [1], [0, 0, 1, 1], [], []>} : vector<16x32xbf16>, vector<32x128xbf16>, vector<16x128xf32> -> vector<16x128xf32>
    %c0_5 = arith.constant 0 : index
    %c0_6 = arith.constant 0 : index
    %6 = vector.load %arg12[%c0_5, %c0_6] : memref<1x128xf32, #tpu.memory_space<vmem>>, vector<1x128xf32>
    %7 = vector.shape_cast %6 : vector<1x128xf32> to vector<128xf32>
    %8 = vector.shape_cast %7 : vector<128xf32> to vector<1x128xf32>
    %9 = vector.broadcast %8 : vector<1x128xf32> to vector<16x128xf32>
    %10 = arith.addf %5, %9 : vector<16x128xf32>
    %cst_7 = arith.constant 5.000000e-01 : f32
    %11 = vector.broadcast %cst_7 : f32 to vector<16x128xf32>
    %12 = arith.mulf %11, %10 : vector<16x128xf32>
    %cst_8 = arith.constant 0.707106769 : f32
    %13 = vector.broadcast %cst_8 : f32 to vector<16x128xf32>
    %14 = arith.mulf %10, %13 : vector<16x128xf32>
    %15 = math.erf %14 : vector<16x128xf32>
    %cst_9 = arith.constant 1.000000e+00 : f32
    %16 = vector.broadcast %cst_9 : f32 to vector<16x128xf32>
    %17 = arith.addf %16, %15 : vector<16x128xf32>
    %18 = arith.mulf %12, %17 : vector<16x128xf32>
    %c0_10 = arith.constant 0 : index
    %c0_11 = arith.constant 0 : index
    %19 = vector.load %arg18[%c0_10, %c0_11] : memref<16x32xf32, #tpu.memory_space<vmem>>, vector<16x32xf32>
    %20 = arith.truncf %18 : vector<16x128xf32> to vector<16x128xbf16>
    %c0_12 = arith.constant 0 : index
    %c0_13 = arith.constant 0 : index
    %21 = vector.load %arg13[%c0_12, %c0_13] : memref<128x32xbf16, #tpu.memory_space<vmem>>, vector<128x32xbf16>
    %cst_14 = arith.constant dense<0.000000e+00> : vector<16x32xf32>
    %22 = tpu.matmul %20, %21, %cst_14 {dimension_numbers = #tpu.dot_dimension_numbers<[1], [0], [0], [1], [0, 0, 1, 1], [], []>} : vector<16x128xbf16>, vector<128x32xbf16>, vector<16x32xf32> -> vector<16x32xf32>
    %23 = arith.addf %19, %22 : vector<16x32xf32>
    %c0_15 = arith.constant 0 : index
    %c0_16 = arith.constant 0 : index
    %24 = vector.load %arg18[%c0_15, %c0_16] : memref<16x32xf32, #tpu.memory_space<vmem>>, vector<16x32xf32>
    tpu.vector_store %arg18[%c0_15, %c0_16], %23 {strides = array<i32>} : memref<16x32xf32, #tpu.memory_space<vmem>>, vector<16x32xf32>,
    %c1_i32 = arith.constant 1 : i32
    %25 = arith.cmpi eq, %arg1, %c1_i32 : i32
    %26 = arith.extui %25 : i1 to i32
    %c0_i32_17 = arith.constant 0 : i32
    %27 = arith.cmpi ne, %26, %c0_i32_17 : i32
    scf.if %27 {
      %c0_18 = arith.constant 0 : index
      %c0_19 = arith.constant 0 : index
      %28 = vector.load %arg18[%c0_18, %c0_19] : memref<16x32xf32, #tpu.memory_space<vmem>>, vector<8x32xf32>
      %c0_20 = arith.constant 0 : index
      %c0_21 = arith.constant 0 : index
      %29 = vector.load %arg14[%c0_20, %c0_21] : memref<1x32xf32, #tpu.memory_space<vmem>>, vector<1x32xf32>
      %30 = vector.shape_cast %29 : vector<1x32xf32> to vector<32xf32>
      %31 = vector.shape_cast %30 : vector<32xf32> to vector<1x32xf32>
      %32 = vector.broadcast %31 : vector<1x32xf32> to vector<8x32xf32>
      %33 = arith.addf %28, %32 : vector<8x32xf32>
      %c0_22 = arith.constant 0 : index
      %c0_23 = arith.constant 0 : index
      %c0_24 = arith.constant 0 : index
      %34 = vector.load %arg15[%c0_22, %c0_23, %c0_24] : memref<2x8x32xf32, #tpu.memory_space<vmem>>, vector<1x8x32xf32>
      %35 = vector.shape_cast %34 : vector<1x8x32xf32> to vector<8x32xf32>
      %36 = vector.shape_cast %33 : vector<8x32xf32> to vector<1x8x32xf32>
      tpu.vector_store %arg15[%c0_22, %c0_23, %c0_24], %36 {strides = array<i32>} : memref<2x8x32xf32, #tpu.memory_space<vmem>>, vector<1x8x32xf32>,
      %c8 = arith.constant 8 : index
      %c0_25 = arith.constant 0 : index
      %37 = vector.load %arg18[%c8, %c0_25] : memref<16x32xf32, #tpu.memory_space<vmem>>, vector<8x32xf32>
      %c0_26 = arith.constant 0 : index
      %c0_27 = arith.constant 0 : index
      %38 = vector.load %arg14[%c0_26, %c0_27] : memref<1x32xf32, #tpu.memory_space<vmem>>, vector<1x32xf32>
      %39 = vector.shape_cast %38 : vector<1x32xf32> to vector<32xf32>
      %40 = vector.shape_cast %39 : vector<32xf32> to vector<1x32xf32>
      %41 = vector.broadcast %40 : vector<1x32xf32> to vector<8x32xf32>
      %42 = arith.addf %37, %41 : vector<8x32xf32>
      %c1 = arith.constant 1 : index
      %c0_28 = arith.constant 0 : index
      %c0_29 = arith.constant 0 : index
      %43 = vector.load %arg15[%c1, %c0_28, %c0_29] : memref<2x8x32xf32, #tpu.memory_space<vmem>>, vector<1x8x32xf32>
      %44 = vector.shape_cast %43 : vector<1x8x32xf32> to vector<8x32xf32>
      %45 = vector.shape_cast %42 : vector<8x32xf32> to vector<1x8x32xf32>
      tpu.vector_store %arg15[%c1, %c0_28, %c0_29], %45 {strides = array<i32>} : memref<2x8x32xf32, #tpu.memory_space<vmem>>, vector<1x8x32xf32>,
    } else {
    }
    return
  }
  func.func @transform_0(%arg0: i32, %arg1: i32) -> (i32, i32, i32) {
    %c0_i32 = arith.constant 0 : i32
    %c0_i32_0 = arith.constant 0 : i32
    %c0_i32_1 = arith.constant 0 : i32
    return %arg0, %c0_i32, %c0_i32_0 : i32, i32, i32
  }
  func.func @transform_1(%arg0: i32, %arg1: i32) -> (i32, i32) {
    %c0_i32 = arith.constant 0 : i32
    %c0_i32_0 = arith.constant 0 : i32
    %c0_i32_1 = arith.constant 0 : i32
    return %c0_i32, %c0_i32_0 : i32, i32
  }
  func.func @transform_2(%arg0: i32, %arg1: i32) -> (i32, i32) {
    %c0_i32 = arith.constant 0 : i32
    %c0_i32_0 = arith.constant 0 : i32
    %c0_i32_1 = arith.constant 0 : i32
    return %c0_i32, %c0_i32_0 : i32, i32
  }
  func.func @transform_3(%arg0: i32, %arg1: i32) -> (i32, i32) {
    %c0_i32 = arith.constant 0 : i32
    %c0_i32_0 = arith.constant 0 : i32
    %c0_i32_1 = arith.constant 0 : i32
    return %c0_i32, %c0_i32_0 : i32, i32
  }
  func.func @transform_4(%arg0: i32, %arg1: i32) -> (i32, i32) {
    %c0_i32 = arith.constant 0 : i32
    %c0_i32_0 = arith.constant 0 : i32
    %c0_i32_1 = arith.constant 0 : i32
    return %c0_i32, %c0_i32_0 : i32, i32
  }
  func.func @transform_5(%arg0: i32, %arg1: i32) -> (i32, i32) {
    %c0_i32 = arith.constant 0 : i32
    %c0_i32_0 = arith.constant 0 : i32
    %c0_i32_1 = arith.constant 0 : i32
    return %c0_i32, %c0_i32_0 : i32, i32
  }
  func.func @transform_6(%arg0: i32, %arg1: i32) -> (i32, i32) {
    %c0_i32 = arith.constant 0 : i32
    %c0_i32_0 = arith.constant 0 : i32
    %c0_i32_1 = arith.constant 0 : i32
    return %c0_i32, %c0_i32_0 : i32, i32
  }
  func.func @transform_7(%arg0: i32, %arg1: i32) -> (i32, i32) {
    %c0_i32 = arith.constant 0 : i32
    %c0_i32_0 = arith.constant 0 : i32
    %c0_i32_1 = arith.constant 0 : i32
    return %c0_i32, %c0_i32_0 : i32, i32
  }
  func.func @transform_8(%arg0: i32, %arg1: i32) -> (i32, i32) {
    %c0_i32 = arith.constant 0 : i32
    %c0_i32_0 = arith.constant 0 : i32
    %c0_i32_1 = arith.constant 0 : i32
    return %c0_i32, %c0_i32_0 : i32, i32
  }
  func.func @transform_9(%arg0: i32, %arg1: i32) -> (i32, i32) {
    %c0_i32 = arith.constant 0 : i32
    %c0_i32_0 = arith.constant 0 : i32
    return %c0_i32, %arg1 : i32, i32
  }
  func.func @transform_10(%arg0: i32, %arg1: i32) -> (i32, i32) {
    %c0_i32 = arith.constant 0 : i32
    %c0_i32_0 = arith.constant 0 : i32
    return %c0_i32, %arg1 : i32, i32
  }
  func.func @transform_11(%arg0: i32, %arg1: i32) -> (i32, i32) {
    %c0_i32 = arith.constant 0 : i32
    %c0_i32_0 = arith.constant 0 : i32
    return %arg1, %c0_i32 : i32, i32
  }
  func.func @transform_12(%arg0: i32, %arg1: i32) -> (i32, i32) {
    %c0_i32 = arith.constant 0 : i32
    %c0_i32_0 = arith.constant 0 : i32
    %c0_i32_1 = arith.constant 0 : i32
    return %c0_i32, %c0_i32_0 : i32, i32
  }
  func.func @transform_13(%arg0: i32, %arg1: i32) -> (i32, i32, i32) {
    %c0_i32 = arith.constant 0 : i32
    %c0_i32_0 = arith.constant 0 : i32
    %c0_i32_1 = arith.constant 0 : i32
    return %arg0, %c0_i32, %c0_i32_0 : i32, i32, i32
  }
}

</mosaic_0001>

<bundles_post_ra>
// kernel: tpu_custom_call.1
= control target key start
LH: loop header
LB: loop body
LE: loop exit
PB: predicated region body
PF: predicated region fallthrough
CT: control target
= control target key end

     0   :  { %s3418_s0 = inlined_call_operand.vmem [shape: f32[4,8,32], index: 0, kind: input, shape index: {}]   ;;  %s3419_s1 = inlined_call_operand.vmem [shape: f32[1,32], index: 1, kind: input, shape index: {}]   ;;  %s3420_s2 = inlined_call_operand.vmem [shape: f32[1,32], index: 2, kind: input, shape index: {}]   ;;  %s3421_s3 = inlined_call_operand.vmem [shape: bf16[32,96], index: 3, kind: input, shape index: {}]   ;;  %s3422_s4 = inlined_call_operand.vmem [shape: f32[1,96], index: 4, kind: input, shape index: {}]   ;;  %s3423_s5 = inlined_call_operand.vmem [shape: bf16[32,32], index: 5, kind: input, shape index: {}]   ;;  %s3424_s6 = inlined_call_operand.vmem [shape: f32[1,32], index: 6, kind: input, shape index: {}]   ;;  %s3425_s7 = inlined_call_operand.vmem [shape: f32[1,32], index: 7, kind: input, shape index: {}]   ;;  %s3426_s8 = inlined_call_operand.vmem [shape: f32[1,32], index: 8, kind: input, shape index: {}]   ;;  %s3427_s9 = inlined_call_operand.vmem [shape: bf16[32,256], index: 9, kind: input, shape index: {}]   ;;  %s3428_s10 = inlined_call_operand.vmem [shape: f32[1,256], index: 10, kind: input, shape index: {}]   ;;  %s3429_s11 = inlined_call_operand.vmem [shape: bf16[256,32], index: 11, kind: input, shape index: {}]   ;;  %s3430_s12 = inlined_call_operand.vmem [shape: f32[1,32], index: 12, kind: input, shape index: {}]   ;;  %s3431_s13 = inlined_call_operand.hbm [shape: f32[4,8,32], index: 13, kind: output, shape index: {}]  }
   0x1   :  { %3446 = sst [smem:[#allocation20_spill]] %s3425_s7 }
   0x2   :  { %3447 = sst [smem:[#allocation21_spill]] %s3426_s8 }
   0x3   :  { %3448 = sst [smem:[#allocation22_spill]] %s3427_s9 }
   0x4   :  { %3449 = sst [smem:[#allocation23_spill]] %s3430_s12 }
   0x5   :  { %3450 = sst [smem:[#allocation24_spill]] %s3431_s13 }
   0x6   :  { %18 = vsyncpa [#allocation7], 0 }
   0x7   :  { %20 = vsyncpa [#allocation7 + $0x1], 0  ;;  %s2929_s25 = smov 0   ;;  %s2931_s26 = smov 0  }
   0x8   :  { %s2933_s27 = smov 0   ;;  %s2935_s28 = smov 0  }
   0x9   :  { %s2937_s29 = smov 0   ;;  %s2939_s30 = smov 0  }
   0xa   :  { %s2941_s14 = smov 0   ;;  %s2943_s15 = smov 0  }
   0xb   :  { %s2945_s16 = smov 0   ;;  %s2947_s17 = smov 0  }
   0xc LB: > { %3451 = sst [smem:[#allocation9_spill]] %s2800_s25  ;;  %s2256_s18 = sadd.s32 4294967295, %s2836_s17   ;;  %s2836_s17 = sphi %s2947_s17, %s26_s17   ;;  %s2832_s16 = sphi %s2945_s16, %s3486_s16   ;;  %s2828_s15 = sphi %s2943_s15, %s3485_s15   ;;  %s2824_s14 = sphi %s2941_s14, %s3489_s14   ;;  %s2820_s30 = sphi %s2939_s30, %s3483_s30   ;;  %s2816_s29 = sphi %s2937_s29, %s3482_s29   ;;  %s2812_s28 = sphi %s2935_s28, %s3481_s28   ;;  %s2808_s27 = sphi %s2933_s27, %s3480_s27   ;;  %s2804_s26 = sphi %s2931_s26, %s3488_s26   ;;  %s2800_s25 = sphi %s2929_s25, %s3487_s25  }
   0xd   : > { %3452 = sst [smem:[#allocation10_spill]] %s2808_s27  ;;  %s2257_s19 = sadd.s32 4294967294, %s2836_s17  }
   0xe   : > { %3453 = sst [smem:[#allocation11_spill]] %s2816_s29  ;;  %s35_s20 = sadd.s32 1, %s2828_s15 }
   0xf   : > { %3454 = sst [smem:[#allocation12_spill]] %s2828_s15  ;;  %s38_s21 = sadd.s32 1, %s2832_s16 }
  0x10   : > { %3455 = sst [smem:[#allocation13_spill]] %s2832_s16  ;;  %p36_p0 = scmp.ge.s32.totalorder %s35_s20, 2 }
  0x11   : > { %3456 = sst [smem:[#allocation14_spill]] %s2836_s17  ;;  %s239_s22 = sadd.s32 1, %s2816_s29 }
  0x12   : > { %p246_p1 = scmp.ne.s32.totalorder %s2816_s29, %s2812_s28  ;;  %p247_p2 = scmp.eq.s32.totalorder %s2836_s17, 0 }
  0x13   : > { %s3491_s20 = smov (%p36_p0, %s35_s20), 0  ;;  %s3493_s21 = smov (!%p36_p0, %s38_s21), %s2832_s16 }
  0x14   : > { %3457 = sst [smem:[#allocation15_spill]] %s3491_s20  ;;  %s236_s23 = ssub.s32 %s2828_s15, %s3491_s20 }
  0x15   : > { %p2992_p3 = por %p247_p2, %p246_p1  ;;  %p40_p4 = scmp.ge.s32.totalorder %s3493_s21, 2 }
  0x16   : > { %p237_p5 = scmp.eq.s32.totalorder %s236_s23, 0  ;;  %s338_s13 = sadd.s32 1, %s2808_s27 }
  0x17   : > { %p348_p6 = scmp.ne.s32.totalorder %s2808_s27, %s2804_s26  ;;  %s3495_s21 = smov (%p40_p4, %s3493_s21), 0 }
  0x18   : > { %3459 = sst [smem:[#allocation16_spill]] %s3495_s21  ;;  %s335_s8 = ssub.s32 %s2832_s16, %s3495_s21 }
  0x19   : > { %s3002_s12 = scalar_select %p237_p5, %s2816_s29, %s239_s22  }
  0x1a   : > { %p349_p7 = scmp.eq.s32.totalorder %s2256_s18, 3  ;;  %p336_p8 = scmp.eq.s32.totalorder %s335_s8, 0 }
  0x1b   : > { %3460 = sst [smem:[#allocation17_spill]] %s3002_s12  ;;  %p354_p9 = scmp.ne.s32.totalorder %s2804_s26, %s2800_s25 }
  0x1c   : > { %p3008_p10 = por %p349_p7, %p348_p6  ;;  %p355_p11 = scmp.eq.s32.totalorder %s2257_s19, 3 }
  0x1d   : > { %s3013_s20 = scalar_select %p336_p8, %s2808_s27, %s338_s13  }
  0x1e   : > { %p3015_p12 = por %p355_p11, %p354_p9  ;;  %p2259_p13 = scmp.ge.s32.totalorder %s2836_s17, 4 }
  0x1f   : > { %3462 = sst [smem:[#allocation18_spill]] %s3013_s20 }
  0x20   : > { %s3463_s23 = scalar_select %p3015_p12, 1, 0 }
  0x21   : > { %398 = sbr.rel (%p2259_p13) target bundleno = 52 (0x34), region = 52 }
  0x22   : > { %3464 = sst [smem:[#allocation19_spill]] %s3463_s23 }
  0x28   : > { %410 = sbr.rel (!%p2992_p3) target bundleno = 52 (0x34), region = 60  ;;  %s412_s8 = sand.u32 (%p2992_p3), 1, %s2816_s29  }
  0x29   : > { %s2261_s18 = sshll.u32 (%p2992_p3), %s2828_s15, 2  ;;  %s2260_s22 = sshll.u32 (%p2992_p3), %s412_s8, 4 }
  0x2a   : > { %s3465_s9 = sld [smem:[#allocation22_spill]] (%p2992_p3)  ;;  %s414_s19 = scalar_lea.vmem (%p2992_p3), [#allocation5], %s2260_s22 }
  0x30   : > { %s416_s13 = scalar_lea.vmem %s3465_s9, %s2261_s18 }
  0x31   : > { %v432_v0 = vld [vmem:[%s416_s13] sm:$0xf]  ;;  %v434_v1 = vld [vmem:[%s416_s13 + $0x8] sm:$0xf]  ;;  %v436_v2 = vld [vmem:[%s416_s13 + $0x10] sm:$0xf] }
  0x32   : > { %433 = vst [vmem:[%s414_s19] sm:$0xf] %v432_v0  ;;  %435 = vst [vmem:[%s414_s19 + $0x4] sm:$0xf] %v434_v1  ;;  %v438_v3 = vld [vmem:[%s416_s13 + $0x18] sm:$0xf] }
  0x33   : > { %437 = vst [vmem:[%s414_s19 + $0x8] sm:$0xf] %v436_v2  ;;  %439 = vst [vmem:[%s414_s19 + $0xc] sm:$0xf] %v438_v3 }
  0x34 PF: > { %p2262_p0 = scmp.ge.s32.totalorder %s2836_s17, 1  ;;  %p484_p1 = scmp.lt.s32.totalorder %s2836_s17, 5 }
  0x36   : > { %p485_p2 = pnand %p2262_p0, %p484_p1 }
  0x37   : > { %s491_s16 = sand.u32 (!%p485_p2), 1, %s2812_s28   ;;  %s3438_s21 = sand.u32 (!%p485_p2), 1, %s2804_s26  }
  0x38   : > { %488 = sbr.rel (%p485_p2) target bundleno = 3616 (0xe20), region = 109  ;;  %s3031_s24 = sshll.u32 (!%p485_p2), %s491_s16, 4 }
  0x39   : > { %s2264_s8 = sshll.u32 (!%p485_p2), %s3438_s21, 4  ;;  %s2265_s18 = sshll.u32 (!%p485_p2), %s2824_s14, 1 }
  0x3a   : > { %p553_p3 = scmp.lt.s32.totalorder (!%p485_p2), %s2820_s30, 1  ;;  %p548_p4 = scmp.lt.s32.totalorder (!%p485_p2), %s2265_s18, 3 }
  0x3b   : > { %s2267_s22 = sshll.u32 (!%p485_p2), %s2820_s30, 4  ;;  %s3056_s17 = scalar_lea.vmem (!%p485_p2), [#allocation6], %s2264_s8 }
  0x3c   : > { %p557_p5 = scmp.lt.s32.totalorder (!%p485_p2), %s2267_s22, 31  ;;  %p2269_p6 = scmp.ne.s32.totalorder (!%p485_p2), %s2820_s30, 0 }
  0x3f   : > { %s3039_s13 = scalar_select %p553_p3, %s2820_s30, 1 }
  0x40   : > { %s3497_s18 = smov (!%p548_p4, %s2265_s18), 3  ;;  %s3499_s22 = smov (!%p557_p5, %s2267_s22), 31 }
  0x41   : > { %s2266_s28 = sshll.u32 %s3497_s18, 3  ;;  %s2268_s21 = sshll.u32 %s3499_s22, 2  ;;  %vm571_vm0 = vcmask (!%p2269_p6), 261120   ;;  %v2664_v11 = vld [vmem:[%s3421_s3] sm:$0xff] (!%p2269_p6)   ;;  %v2838_v12 = vmov (!%p2269_p6), 0.0   ;;  %vm2839_vm1 = vmmov (!%p2269_p6), 0  }
  0x42   : > { %s3048_s29 = scalar_lea.vmem %s3418_s0, %s2266_s28  ;;  %s3053_s23 = scalar_lea.vmem %s3429_s11, %s2268_s21  ;;  %2401 = vmatprep.subr.bf16.mxu0 (!%p2269_p6), %v2838_v12  ;;  %2405 = vmatprep.mubr.msk.bf16.mxu0 (!%p2269_p6), %vm2839_vm1, %v2838_v12  ;;  %v2665_v13 = vld [vmem:[%s3421_s3 + $0x8] sm:$0xff] (!%p2269_p6)   ;;  %v3083_v18 = vld [vmem:[%s3419_s1] ss:$0 sm:$0xff] (!%p2269_p6)  ;;  %vm673_vm2 = vcmask (!%p2269_p6), 64512   ;;  %vm737_vm3 = vcmask (!%p2269_p6), 1043456   ;;  %vm782_vm4 = vcmask (!%p2269_p6), 60416  }
  0x43   : > { %567 = sbr.rel (%p2269_p6) target bundleno = 3118 (0xc2e), region = 117  ;;  %v3060_v4 = vld [vmem:[%s3048_s29] sm:$0xff] (!%p2269_p6)  ;;  %2402 = vmatpush3.bf16.msra.mxu0 (!%p2269_p6), %v2664_v11  ;;  %2409 = vmatprep.subr.bf16.mxu1 (!%p2269_p6), %v2838_v12  ;;  %s2840_s16 = smov (!%p2269_p6), 96   ;;  %v3137_v55 = vld [vmem:[%s3048_s29 + $0x8] sm:$0xff] (!%p2269_p6)  ;;  %vm902_vm5 = vcmask (!%p2269_p6), 126016   ;;  %vm1021_vm6 = vcmask (!%p2269_p6), 191616  }
  0x44   : > { %v572_v5 = vsel (!%p2269_p6), %vm571_vm0, %v3060_v4, 0.0  ;;  %2403 = vmatprep.subr.bf16.mxu0 (!%p2269_p6), %v2838_v12  ;;  %2411 = vmatprep.mubr.msk.bf16.mxu1 (!%p2269_p6), %vm2839_vm1, %v2838_v12  ;;  %v3088_v20 = vld [vmem:[%s3420_s2] ss:$0 sm:$0xff] (!%p2269_p6)  ;;  %s2841_s9 = smov (!%p2269_p6), 120   ;;  %s2842_s12 = smov (!%p2269_p6), 88   ;;  %v1247_v60 = vsel (!%p2269_p6), %vm571_vm0, %v3137_v55, 0.0 }
  0x45   : > { %573 = vadd.xlane.f32.xlu0 (!%p2269_p6), %v572_v5  ;;  %v3098_v24 = vld [vmem:[%s3422_s4] ss:$0 sm:$0xff] (!%p2269_p6)  ;;  %s2843_s27 = smov (!%p2269_p6), 80   ;;  %s2844_s20 = smov (!%p2269_p6), 112   ;;  %vm1140_vm7 = vcmask (!%p2269_p6), 257216   ;;  %vm1240_vm8 = vcmask (!%p2269_p6), 257024  }
  0x46   : > { %s2845_s21 = smov (!%p2269_p6), 72   ;;  %s2846_s8 = smov (!%p2269_p6), 104   ;;  %vm1911_vm9 = vcmask (!%p2269_p6), 261124  }
  0x47   : > { %2404 = vmatpush3.bf16.msra.mxu0 (!%p2269_p6), %v2665_v13  ;;  %s2847_s18 = smov (!%p2269_p6), 64   ;;  %s2848_s29 = smov (!%p2269_p6), 48  }
  0x48   : > { %2415 = vmatprep.subr.bf16.mxu0 (!%p2269_p6), %v2838_v12  ;;  %s2849_s22 = smov (!%p2269_p6), 56   ;;  %s3444_s19 = smov (!%p2269_p6), 40  }
  0x49   : > { %s2852_s28 = smov (!%p2269_p6), 16   ;;  %s3469_s15 = sld [smem:[#allocation21_spill]] (!%p2269_p6) }
  0xd2   : > { %v574_v6 = vpop.xlane.xlu0 %573 }
  0xd3   : > { %v576_v7 = vmul.f32 0.03125, %v574_v6 }
  0xd5   : > { %v577_v8 = vsub.f32 %v3060_v4, %v576_v7 }
  0xd7   : > { %v578_v9 = vmul.f32 %v577_v8, %v577_v8 }
  0xd9   : > { %v579_v10 = vsel %vm571_vm0, %v578_v9, 0.0 }
  0xda   : > { %580 = vadd.xlane.f32.xlu0 %v579_v10 }
 0x167   : > { %v581_v14 = vpop.xlane.xlu0 %580 }
 0x168   : > { %v582_v15 = vmul.f32 0.03125, %v581_v14 }
 0x16a   : > { %v583_v16 = vadd.f32 1e-06, %v582_v15 }
 0x16c   : > { %2672 = vrsqrt.f32 %v583_v16 }
 0x176   : > { %v2673_v17 = vpop.eup %2672 }
 0x177   : > { %v585_v19 = vmul.f32 %v2673_v17, %v577_v8 }
 0x179   : > { %v592_v21 = vmul.f32 %v3083_v18, %v585_v19 }
 0x17b   : > { %v599_v22 = vadd.f32 %v3088_v20, %v592_v21 }
 0x17d   : > { %v600_v23 = vpack.c.bf16 %v599_v22, %v599_v22 }
 0x17f   : > { %2406 = vmatmul.mubr.msk.bf16.vlgmr.msra.gmra.mrb[0].mxu0 %vm571_vm0, %v600_v23 }
 0x180   : > { %2417 = vmatprep.mubr.msk.bf16.mxu0 %vm2839_vm1, %v2838_v12 }
 0x252   : > { %v661_v25 = vpop.f32.mrb[0].mxu0 }
 0x253   : > { %v662_v26 = vadd.f32 %v3098_v24, %v661_v25  ;;  %v2407_v27 = vpop.f32.mrb[1].mxu0 }
 0x254   : > { %v664_v28 = vpop.f32.mrb[2].mxu0 }
 0x255   : > { %v667_v29 = vmul.f32 0.35355338, %v662_v26  ;;  %v3101_v30 = vpack.c.bf16 %v662_v26, %v662_v26  ;;  %v2408_v31 = vpop.f32.mrb[3].mxu0 }
 0x257   : > { %v668_v32 = vpack.c.bf16 %v667_v29, %v667_v29  ;;  %671 = vrot.lane.b32.xlu1 %v3101_v30, %s2840_s16 }
 0x259   : > { %785 = vrot.lane.b32.xlu0 %v668_v32, %s2841_s9 }
 0x25b   : > { %787 = vrot.lane.b32.xlu1 %v3101_v30, %s2842_s12 }
 0x25f   : > { %906 = vrot.lane.b32.xlu1 %v3101_v30, %s2843_s27 }
 0x263   : > { %904 = vrot.lane.b32.xlu1 %v668_v32, %s2844_s20 }
 0x267   : > { %1025 = vrot.lane.b32.xlu1 %v3101_v30, %s2845_s21 }
 0x26b   : > { %1023 = vrot.lane.b32.xlu1 %v668_v32, %s2846_s8 }
 0x2c9   : > { %v672_v33 = vpop.permute.xlu1 %671 }
 0x2ca   : > { %v678_v34 = vsel %vm673_vm2, %v672_v33, 0 }
 0x2cb   : > { %2410 = vmatpush3.bf16.xpose.msra.mxu1 %v678_v34  ;;  %v786_v38 = vpop.permute.xlu0 %785 }
 0x2cc   : > { %2421 = vmatprep.subr.bf16.mxu1 %v2838_v12 }
 0x2cd   : > { %v788_v35 = vpop.permute.xlu1 %787 }
 0x2ce   : > { %v793_v36 = vsel %vm673_vm2, %v788_v35, 0 }
 0x2d1   : > { %v907_v37 = vpop.permute.xlu1 %906 }
 0x2d2   : > { %2412 = vmatmul.mubr.msk.bf16.vlgmr.msra.gmra.mrb[0].mxu1 %vm673_vm2, %v668_v32  ;;  %v912_v40 = vsel %vm673_vm2, %v907_v37, 0 }
 0x2d3   : > { %2422 = vmatpush3.bf16.xpose.msra.mxu1 %v793_v36  ;;  %2423 = vmatprep.mubr.msk.bf16.mxu1 %vm2839_vm1, %v2838_v12 }
 0x2d4   : > { %2433 = vmatprep.subr.bf16.mxu1 %v2838_v12 }
 0x2d5   : > { %v905_v39 = vpop.permute.xlu1 %904 }
 0x2d9   : > { %v1026_v41 = vpop.permute.xlu1 %1025 }
 0x2da   : > { %2424 = vmatmul.mubr.msk.bf16.vlgmr.msra.gmra.mrb[4].mxu1 %vm673_vm2, %v786_v38  ;;  %v1031_v42 = vsel %vm673_vm2, %v1026_v41, 0 }
 0x2db   : > { %2434 = vmatpush3.bf16.xpose.msra.mxu1 %v912_v40  ;;  %2435 = vmatprep.mubr.msk.bf16.mxu1 %vm2839_vm1, %v2838_v12 }
 0x2dc   : > { %2445 = vmatprep.subr.bf16.mxu1 %v2838_v12 }
 0x2dd   : > { %v1024_v43 = vpop.permute.xlu1 %1023 }
 0x2e2   : > { %2436 = vmatmul.mubr.msk.bf16.vlgmr.msra.gmra.mrb[8].mxu1 %vm673_vm2, %v905_v39 }
 0x2e3   : > { %2446 = vmatpush3.bf16.xpose.msra.mxu1 %v1031_v42  ;;  %2447 = vmatprep.mubr.msk.bf16.mxu1 %vm2839_vm1, %v2838_v12 }
 0x2e4   : > { %2457 = vmatprep.subr.bf16.mxu1 %v2838_v12 }
 0x2ea   : > { %2448 = vmatmul.mubr.msk.bf16.vlgmr.msra.gmra.mrb[12].mxu1 %vm673_vm2, %v1024_v43 }
 0x2eb   : > { %2461 = vmatprep.mubr.msk.bf16.mxu1 %vm2839_vm1, %v2838_v12 }
 0x3a5   : > { %v714_v44 = vpop.f32.mrb[0].mxu1 }
 0x3a6   : > { %v2413_v45 = vpop.f32.mrb[1].mxu1  ;;  %v720_v46 = vsel %vm673_vm2, %v714_v44, -inf }
 0x3a7   : > { %721 = vmax.xlane.f32.xlu1 %v720_v46  ;;  %v717_v47 = vpop.f32.mrb[2].mxu1 }
 0x3a8   : > { %v2414_v48 = vpop.f32.mrb[3].mxu1 }
 0x3ad   : > { %v829_v49 = vpop.f32.mrb[4].mxu1 }
 0x3ae   : > { %v2425_v50 = vpop.f32.mrb[5].mxu1  ;;  %v835_v51 = vsel %vm673_vm2, %v829_v49, -inf }
 0x3af   : > { %836 = vmax.xlane.f32.xlu0 %v835_v51  ;;  %v832_v52 = vpop.f32.mrb[6].mxu1 }
 0x3b0   : > { %v2426_v53 = vpop.f32.mrb[7].mxu1 }
 0x3b5   : > { %v948_v54 = vpop.f32.mrb[8].mxu1 }
 0x3b6   : > { %v2437_v56 = vpop.f32.mrb[9].mxu1  ;;  %v954_v57 = vsel %vm673_vm2, %v948_v54, -inf }
 0x3b7   : > { %955 = vmax.xlane.f32.xlu1 %v954_v57  ;;  %v951_v58 = vpop.f32.mrb[10].mxu1 }
 0x3b8   : > { %v2438_v59 = vpop.f32.mrb[11].mxu1 }
 0x3bb   : > { %1248 = vadd.xlane.f32.xlu1 %v1247_v60 }
 0x3bd   : > { %v1067_v61 = vpop.f32.mrb[12].mxu1 }
 0x3be   : > { %v2449_v62 = vpop.f32.mrb[13].mxu1  ;;  %v1073_v63 = vsel %vm673_vm2, %v1067_v61, -inf }
 0x3bf   : > { %1074 = vmax.xlane.f32.xlu0 %v1073_v63  ;;  %v1070_v0 = vpop.f32.mrb[14].mxu1 }
 0x3c0   : > { %v2450_v1 = vpop.f32.mrb[15].mxu1  ;;  %v2667_v0 = vld [vmem:[%s3421_s3 + $0x8] sm:$0xff]  }
 0x3cc   : > { %732 = vrot.lane.b32.xlu1 %v3101_v30, %s2847_s18 }
 0x434   : > { %v722_v2 = vpop.xlane.xlu1 %721 }
 0x435   : > { %v723_v6 = vsub.f32 %v714_v44, %v722_v2 }
 0x437   : > { %v724_v8 = vmul.f32 1.442695, %v723_v6 }
 0x43c   : > { %v837_v3 = vpop.xlane.xlu0 %836 }
 0x43d   : > { %v838_v5 = vsub.f32 %v829_v49, %v837_v3 }
 0x43f   : > { %v839_v7 = vmul.f32 1.442695, %v838_v5 }
 0x441   : > { %2674 = vpow2.f32 %v839_v7 }
 0x442   : > { %2676 = vpow2.f32 %v724_v8 }
 0x444   : > { %v956_v9 = vpop.xlane.xlu1 %955 }
 0x445   : > { %v957_v10 = vsub.f32 %v948_v54, %v956_v9 }
 0x447   : > { %v958_v11 = vmul.f32 1.442695, %v957_v10 }
 0x448   : > { %v1249_v13 = vpop.xlane.xlu1 %1248 }
 0x449   : > { %v1250_v14 = vmul.f32 0.03125, %v1249_v13  ;;  %2678 = vpow2.f32 %v958_v11 }
 0x44b   : > { %v2675_v15 = vpop.eup %2674  ;;  %v3146_v16 = vsub.f32 %v3137_v55, %v1250_v14 }
 0x44c   : > { %v733_v17 = vpop.permute.xlu1 %732  ;;  %v841_v19 = vsel %vm673_vm2, %v2675_v15, 0.0  ;;  %v2677_v25 = vpop.eup %2676 }
 0x44d   : > { %v739_v21 = vsel %vm737_vm3, %v733_v17, 0  ;;  %842 = vadd.xlane.f32.xlu1 %v841_v19  ;;  %v1252_v22 = vmul.f32 %v3146_v16, %v3146_v16  ;;  %v726_v26 = vsel %vm673_vm2, %v2677_v25, 0.0  ;;  %v1075_v29 = vpop.xlane.xlu0 %1074 }
 0x44e   : > { %2416 = vmatpush3.bf16.msra.mxu0 %v739_v21  ;;  %v1076_v31 = vsub.f32 %v1067_v61, %v1075_v29  ;;  %v2666_v61 = vld [vmem:[%s3421_s3] sm:$0xff]   ;;  %v2669_v21 = vld [vmem:[%s3423_s5 + $0x8] sm:$0xff]  }
 0x44f   : > { %v1253_v23 = vsel %vm571_vm0, %v1252_v22, 0.0  ;;  %2427 = vmatprep.subr.bf16.mxu0 %v2838_v12 }
 0x450   : > { %1254 = vadd.xlane.f32.xlu0 %v1253_v23  ;;  %v1077_v32 = vmul.f32 1.442695, %v1076_v31 }
 0x452   : > { %2680 = vpow2.f32 %v1077_v32 }
 0x453   : > { %v2679_v27 = vpop.eup %2678 }
 0x454   : > { %727 = vadd.xlane.f32.xlu0 %v726_v26  ;;  %v960_v28 = vsel %vm673_vm2, %v2679_v27, 0.0 }
 0x458   : > { %961 = vadd.xlane.f32.xlu0 %v960_v28 }
 0x45c   : > { %v2681_v33 = vpop.eup %2680 }
 0x45d   : > { %v1079_v34 = vsel %vm673_vm2, %v2681_v33, 0.0 }
 0x45e   : > { %966 = vrot.lane.b32.xlu1 %v3101_v30, %s2848_s29 }
 0x46e   : > { %847 = vrot.lane.b32.xlu0 %v3101_v30, %s2849_s22 }
 0x482   : > { %1080 = vadd.xlane.f32.xlu1 %v1079_v34 }
 0x493   : > { %1085 = vrot.lane.b32.xlu1 %v3101_v30, %s3444_s19  ;;  %s3445_s19 = smov 8  }
 0x4da   : > { %v843_v37 = vpop.xlane.xlu1 %842 }
 0x4dd   : > { %v1255_v35 = vpop.xlane.xlu0 %1254 }
 0x4de   : > { %v967_v45 = vpop.permute.xlu1 %966  ;;  %v1256_v51 = vmul.f32 0.03125, %v1255_v35 }
 0x4df   : > { %v972_v48 = vsel %vm737_vm3, %v967_v45, 0 }
 0x4e0   : > { %v1257_v52 = vadd.f32 1e-06, %v1256_v51 }
 0x4e1   : > { %v728_v36 = vpop.xlane.xlu0 %727 }
 0x4e2   : > { %2682 = vrcp.f32 %v728_v36 }
 0x4e3   : > { %2684 = vrcp.f32 %v843_v37 }
 0x4e5   : > { %v962_v38 = vpop.xlane.xlu0 %961 }
 0x4e6   : > { %2686 = vrcp.f32 %v962_v38 }
 0x4e7   : > { %2688 = vrsqrt.f32 %v1257_v52 }
 0x4e9   : > { %v848_v41 = vpop.permute.xlu0 %847 }
 0x4ea   : > { %v853_v44 = vsel %vm737_vm3, %v848_v41, 0 }
 0x4ec   : > { %v2683_v39 = vpop.eup %2682 }
 0x4ed   : > { %v730_v40 = vmul.f32 %v2683_v39, %v2677_v25  ;;  %v2685_v43 = vpop.eup %2684 }
 0x4ee   : > { %v845_v30 = vmul.f32 %v2685_v43, %v2675_v15 }
 0x4ef   : > { %v731_v42 = vpack.c.bf16 %v730_v40, %v730_v40 }
 0x4f0   : > { %v846_v46 = vpack.c.bf16 %v845_v30, %v845_v30  ;;  %v2687_v47 = vpop.eup %2686 }
 0x4f1   : > { %2418 = vmatmul.mubr.msk.bf16.vlgmr.msra.gmra.mrb[4].mxu0 %vm673_vm2, %v731_v42  ;;  %v964_v49 = vmul.f32 %v2687_v47, %v2679_v27  ;;  %v2689_v57 = vpop.eup %2688 }
 0x4f2   : > { %2428 = vmatpush3.bf16.msra.mxu0 %v853_v44  ;;  %2429 = vmatprep.mubr.msk.bf16.mxu0 %vm2839_vm1, %v2838_v12  ;;  %v1259_v58 = vmul.f32 %v2689_v57, %v3146_v16 }
 0x4f3   : > { %2439 = vmatprep.subr.bf16.mxu0 %v2838_v12  ;;  %v965_v50 = vpack.c.bf16 %v964_v49, %v964_v49 }
 0x4f4   : > { %v1266_v63 = vmul.f32 %v3083_v18, %v1259_v58 }
 0x4f6   : > { %v1273_v1 = vadd.f32 %v3088_v20, %v1266_v63  ;;  %v2668_v20 = vld [vmem:[%s3423_s5] sm:$0xff]  }
 0x4f7   : > { %2458 = vmatpush3.bf16.msra.mxu1 %v2668_v20 }
 0x4f8   : > { %v1274_v2 = vpack.c.bf16 %v1273_v1, %v1273_v1  ;;  %2459 = vmatprep.subr.bf16.mxu1 %v2838_v12 }
 0x4f9   : > { %2430 = vmatmul.mubr.msk.bf16.vlgmr.msra.gmra.mrb[8].mxu0 %vm673_vm2, %v846_v46 }
 0x4fa   : > { %2440 = vmatpush3.bf16.msra.mxu0 %v972_v48  ;;  %2441 = vmatprep.mubr.msk.bf16.mxu0 %vm2839_vm1, %v2838_v12 }
 0x4fb   : > { %2451 = vmatprep.subr.bf16.mxu0 %v2838_v12  ;;  %2460 = vmatpush3.bf16.msra.mxu1 %v2669_v21 }
 0x4fc   : > { %2473 = vmatprep.subr.bf16.mxu1 %v2838_v12 }
 0x501   : > { %2442 = vmatmul.mubr.msk.bf16.vlgmr.msra.gmra.mrb[12].mxu0 %vm673_vm2, %v965_v50  ;;  %v3250_v50 = vld [vmem:[%s3424_s6] ss:$0 sm:$0xff] }
 0x502   : > { %2453 = vmatprep.mubr.msk.bf16.mxu0 %vm2839_vm1, %v2838_v12 }
 0x50f   : > { %v1081_v53 = vpop.xlane.xlu1 %1080 }
 0x510   : > { %2690 = vrcp.f32 %v1081_v53 }
 0x513   : > { %v1086_v54 = vpop.permute.xlu1 %1085 }
 0x514   : > { %v1091_v56 = vsel %vm737_vm3, %v1086_v54, 0 }
 0x515   : > { %2452 = vmatpush3.bf16.msra.mxu0 %v1091_v56 }
 0x516   : > { %2465 = vmatprep.subr.bf16.mxu0 %v2838_v12 }
 0x51a   : > { %v2691_v59 = vpop.eup %2690 }
 0x51b   : > { %v1083_v60 = vmul.f32 %v2691_v59, %v2681_v33 }
 0x51d   : > { %v1084_v62 = vpack.c.bf16 %v1083_v60, %v1083_v60 }
 0x51f   : > { %2454 = vmatmul.mubr.msk.bf16.vlgmr.msra.gmra.mrb[16].mxu0 %vm673_vm2, %v1084_v62 }
 0x520   : > { %2466 = vmatpush3.bf16.msra.mxu0 %v2666_v61  ;;  %2469 = vmatprep.mubr.msk.bf16.mxu0 %vm2839_vm1, %v2838_v12 }
 0x521   : > { %2467 = vmatprep.subr.bf16.mxu0 %v2838_v12 }
 0x524   : > { %2468 = vmatpush3.bf16.msra.mxu0 %v2667_v0 }
 0x525   : > { %2479 = vmatprep.subr.bf16.mxu0 %v2838_v12 }
 0x527   : > { %2470 = vmatmul.mubr.msk.bf16.vlgmr.msra.gmra.mrb[20].mxu0 %vm571_vm0, %v1274_v2 }
 0x528   : > { %2481 = vmatprep.mubr.msk.bf16.mxu0 %vm2839_vm1, %v2838_v12 }
 0x5c4   : > { %v775_v18 = vpop.f32.mrb[4].mxu0 }
 0x5c5   : > { %v781_v3 = vpack.c.bf16 %v775_v18, %v775_v18  ;;  %v2419_v5 = vpop.f32.mrb[5].mxu0 }
 0x5c6   : > { %v778_v6 = vpop.f32.mrb[6].mxu0 }
 0x5c7   : > { %783 = vst.msk [vmem:[#allocation2] sm:$0xf] %vm782_vm4, %v781_v3  ;;  %v2420_v7 = vpop.f32.mrb[7].mxu0 }
 0x5cc   : > { %v889_v8 = vpop.f32.mrb[8].mxu0 }
 0x5cd   : > { %v2338_v9 = vpack.c.bf16 %v889_v8, %v889_v8  ;;  %v2431_v10 = vpop.f32.mrb[9].mxu0 }
 0x5ce   : > { %v892_v11 = vpop.f32.mrb[10].mxu0 }
 0x5cf   : > { %899 = vrot.lane.b32.xlu0 %v2338_v9, %s3445_s19  ;;  %v2432_v13 = vpop.f32.mrb[11].mxu0  ;;  %s2853_s19 = smov 24  }
 0x5d4   : > { %v1008_v14 = vpop.f32.mrb[12].mxu0 }
 0x5d5   : > { %v2339_v15 = vpack.c.bf16 %v1008_v14, %v1008_v14  ;;  %v2443_v16 = vpop.f32.mrb[13].mxu0 }
 0x5d6   : > { %v1011_v17 = vpop.f32.mrb[14].mxu0 }
 0x5d7   : > { %1018 = vrot.lane.b32.xlu1 %v2339_v15, %s2852_s28  ;;  %v2444_v19 = vpop.f32.mrb[15].mxu0 }
 0x5f2   : > { %v1127_v22 = vpop.f32.mrb[16].mxu0 }
 0x5f3   : > { %v2340_v23 = vpack.c.bf16 %v1127_v22, %v1127_v22  ;;  %v2455_v25 = vpop.f32.mrb[17].mxu0 }
 0x5f4   : > { %v1130_v26 = vpop.f32.mrb[18].mxu0 }
 0x5f5   : > { %1137 = vrot.lane.b32.xlu0 %v2340_v23, %s2853_s19  ;;  %v2456_v27 = vpop.f32.mrb[19].mxu0 }
 0x5fa   : > { %v1335_v28 = vpop.f32.mrb[20].mxu0 }
 0x5fb   : > { %v1336_v29 = vadd.f32 %v3098_v24, %v1335_v28  ;;  %v2471_v31 = vpop.f32.mrb[21].mxu0 }
 0x5fc   : > { %v1338_v32 = vpop.f32.mrb[22].mxu0 }
 0x5fd   : > { %v1341_v33 = vmul.f32 0.35355338, %v1336_v29  ;;  %v3208_v34 = vpack.c.bf16 %v1336_v29, %v1336_v29  ;;  %v2472_v35 = vpop.f32.mrb[23].mxu0 }
 0x5ff   : > { %1458 = vrot.lane.b32.xlu0 %v3208_v34, %s2842_s12  ;;  %1345 = vrot.lane.b32.xlu1 %v3208_v34, %s2840_s16  ;;  %v1342_v36 = vpack.c.bf16 %v1341_v33, %v1341_v33  ;;  %s3466_s12 = smov 40  }
 0x603   : > { %1576 = vrot.lane.b32.xlu0 %v3208_v34, %s2843_s27  ;;  %1456 = vrot.lane.b32.xlu1 %v1342_v36, %s2841_s9  ;;  %s3467_s27 = smov 8  }
 0x607   : > { %1694 = vrot.lane.b32.xlu0 %v3208_v34, %s2845_s21  ;;  %1574 = vrot.lane.b32.xlu1 %v1342_v36, %s2844_s20 }
 0x60b   : > { %1692 = vrot.lane.b32.xlu1 %v1342_v36, %s2846_s8 }
 0x641   : > { %v900_v24 = vpop.permute.xlu0 %899 }
 0x642   : > { %903 = vst.msk [vmem:[#allocation2] sm:$0xf] %vm902_vm5, %v900_v24 }
 0x649   : > { %v1019_v37 = vpop.permute.xlu1 %1018 }
 0x64a   : > { %1022 = vst.msk [vmem:[#allocation2] sm:$0xf] %vm1021_vm6, %v1019_v37 }
 0x667   : > { %v1138_v38 = vpop.permute.xlu0 %1137 }
 0x668   : > { %1141 = vst.msk [vmem:[#allocation2] sm:$0xf] %vm1140_vm7, %v1138_v38 }
 0x66f   : > { %v1142_v39 = vld [vmem:[#allocation2] sm:$0xf] }
 0x670   : > { %2462 = vmatmul.mubr.msk.bf16.vlgmr.msra.gmra.mrb[16].mxu1 %vm571_vm0, %v1142_v39 }
 0x671   : > { %v1346_v40 = vpop.permute.xlu1 %1345  ;;  %2475 = vmatprep.mubr.msk.bf16.mxu1 %vm2839_vm1, %v2838_v12  ;;  %v1459_v42 = vpop.permute.xlu0 %1458 }
 0x672   : > { %v1351_v41 = vsel %vm673_vm2, %v1346_v40, 0  ;;  %v1464_v43 = vsel %vm673_vm2, %v1459_v42, 0 }
 0x673   : > { %2474 = vmatpush3.bf16.xpose.msra.mxu1 %v1351_v41 }
 0x674   : > { %2485 = vmatprep.subr.bf16.mxu1 %v2838_v12 }
 0x675   : > { %v1577_v44 = vpop.permute.xlu0 %1576  ;;  %v1457_v30 = vpop.permute.xlu1 %1456 }
 0x676   : > { %v1582_v45 = vsel %vm673_vm2, %v1577_v44, 0 }
 0x679   : > { %v1695_v46 = vpop.permute.xlu0 %1694  ;;  %v1575_v47 = vpop.permute.xlu1 %1574 }
 0x67a   : > { %2476 = vmatmul.mubr.msk.bf16.vlgmr.msra.gmra.mrb[20].mxu1 %vm673_vm2, %v1342_v36  ;;  %v1700_v48 = vsel %vm673_vm2, %v1695_v46, 0 }
 0x67b   : > { %2486 = vmatpush3.bf16.xpose.msra.mxu1 %v1464_v43  ;;  %2487 = vmatprep.mubr.msk.bf16.mxu1 %vm2839_vm1, %v2838_v12 }
 0x67c   : > { %2497 = vmatprep.subr.bf16.mxu1 %v2838_v12 }
 0x67d   : > { %v1693_v49 = vpop.permute.xlu1 %1692 }
 0x682   : > { %2488 = vmatmul.mubr.msk.bf16.vlgmr.msra.gmra.mrb[24].mxu1 %vm673_vm2, %v1457_v30 }
 0x683   : > { %2498 = vmatpush3.bf16.xpose.msra.mxu1 %v1582_v45  ;;  %2499 = vmatprep.mubr.msk.bf16.mxu1 %vm2839_vm1, %v2838_v12 }
 0x684   : > { %2509 = vmatprep.subr.bf16.mxu1 %v2838_v12 }
 0x68a   : > { %2500 = vmatmul.mubr.msk.bf16.vlgmr.msra.gmra.mrb[28].mxu1 %vm673_vm2, %v1575_v47 }
 0x68b   : > { %2510 = vmatpush3.bf16.xpose.msra.mxu1 %v1700_v48  ;;  %2511 = vmatprep.mubr.msk.bf16.mxu1 %vm2839_vm1, %v2838_v12 }
 0x68c   : > { %2521 = vmatprep.subr.bf16.mxu1 %v2838_v12 }
 0x692   : > { %2512 = vmatmul.mubr.msk.bf16.vlgmr.msra.gmra.mrb[32].mxu1 %vm673_vm2, %v1693_v49 }
 0x693   : > { %2525 = vmatprep.mubr.msk.bf16.mxu1 %vm2839_vm1, %v2838_v12 }
 0x743   : > { %v1203_v51 = vpop.f32.mrb[16].mxu1 }
 0x744   : > { %v1204_v52 = vadd.f32 %v3250_v50, %v1203_v51  ;;  %v2463_v53 = vpop.f32.mrb[17].mxu1 }
 0x745   : > { %v1206_v54 = vpop.f32.mrb[18].mxu1 }
 0x746   : > { %v3254_v56 = vadd.f32 %v1204_v52, %v3060_v4  ;;  %v2464_v57 = vpop.f32.mrb[19].mxu1 }
 0x748   : > { %1242 = vst.msk [vmem:[#allocation4] sm:$0xff] %vm571_vm0, %v3254_v56 }
 0x74d   : > { %v1387_v58 = vpop.f32.mrb[20].mxu1 }
 0x74e   : > { %v2477_v59 = vpop.f32.mrb[21].mxu1  ;;  %v1393_v60 = vsel %vm673_vm2, %v1387_v58, -inf }
 0x74f   : > { %1394 = vmax.xlane.f32.xlu0 %v1393_v60  ;;  %v1390_v61 = vpop.f32.mrb[22].mxu1 }
 0x750   : > { %v2478_v62 = vpop.f32.mrb[23].mxu1 }
 0x755   : > { %v1500_v63 = vpop.f32.mrb[24].mxu1 }
 0x756   : > { %v2489_v0 = vpop.f32.mrb[25].mxu1  ;;  %v1506_v1 = vsel %vm673_vm2, %v1500_v63, -inf }
 0x757   : > { %1507 = vmax.xlane.f32.xlu1 %v1506_v1  ;;  %v1503_v2 = vpop.f32.mrb[26].mxu1 }
 0x758   : > { %v2490_v18 = vpop.f32.mrb[27].mxu1 }
 0x75d   : > { %v1618_v4 = vpop.f32.mrb[28].mxu1 }
 0x75e   : > { %v2501_v3 = vpop.f32.mrb[29].mxu1  ;;  %v1624_v5 = vsel %vm673_vm2, %v1618_v4, -inf }
 0x75f   : > { %1625 = vmax.xlane.f32.xlu0 %v1624_v5  ;;  %v1621_v6 = vpop.f32.mrb[30].mxu1 }
 0x760   : > { %v2502_v7 = vpop.f32.mrb[31].mxu1 }
 0x761   : > { %v2670_v7 = vld [vmem:[%s3423_s5] sm:$0xff]  }
 0x762   : > { %2522 = vmatpush3.bf16.msra.mxu1 %v2670_v7 }
 0x763   : > { %2523 = vmatprep.subr.bf16.mxu1 %v2838_v12 }
 0x765   : > { %v1736_v20 = vpop.f32.mrb[32].mxu1 }
 0x766   : > { %v2513_v8 = vpop.f32.mrb[33].mxu1  ;;  %v1742_v9 = vsel %vm673_vm2, %v1736_v20, -inf }
 0x767   : > { %1743 = vmax.xlane.f32.xlu0 %v1742_v9  ;;  %v1739_v10 = vpop.f32.mrb[34].mxu1  ;;  %v2671_v8 = vld [vmem:[%s3423_s5 + $0x8] sm:$0xff]  }
 0x768   : > { %v2514_v11 = vpop.f32.mrb[35].mxu1  ;;  %2524 = vmatpush3.bf16.msra.mxu1 %v2671_v8 }
 0x7dc   : > { %v1395_v13 = vpop.xlane.xlu0 %1394 }
 0x7dd   : > { %v1396_v14 = vsub.f32 %v1387_v58, %v1395_v13 }
 0x7df   : > { %v1397_v15 = vmul.f32 1.442695, %v1396_v14 }
 0x7e1   : > { %2692 = vpow2.f32 %v1397_v15 }
 0x7e4   : > { %v1508_v16 = vpop.xlane.xlu1 %1507 }
 0x7e5   : > { %v1509_v17 = vsub.f32 %v1500_v63, %v1508_v16 }
 0x7e7   : > { %v1510_v19 = vmul.f32 1.442695, %v1509_v17 }
 0x7e9   : > { %2694 = vpow2.f32 %v1510_v19 }
 0x7eb   : > { %v2693_v21 = vpop.eup %2692 }
 0x7ec   : > { %v1399_v22 = vsel %vm673_vm2, %v2693_v21, 0.0  ;;  %v1626_v23 = vpop.xlane.xlu0 %1625 }
 0x7ed   : > { %1400 = vadd.xlane.f32.xlu1 %v1399_v22  ;;  %v1627_v33 = vsub.f32 %v1618_v4, %v1626_v23 }
 0x7ef   : > { %v1628_v35 = vmul.f32 1.442695, %v1627_v33 }
 0x7f3   : > { %v2695_v25 = vpop.eup %2694 }
 0x7f4   : > { %v1744_v26 = vpop.xlane.xlu0 %1743  ;;  %v1512_v27 = vsel %vm673_vm2, %v2695_v25, 0.0 }
 0x7f5   : > { %v1745_v28 = vsub.f32 %v1736_v20, %v1744_v26  ;;  %1513 = vadd.xlane.f32.xlu0 %v1512_v27 }
 0x7f7   : > { %v1746_v29 = vmul.f32 1.442695, %v1745_v28 }
 0x7f9   : > { %2696 = vpow2.f32 %v1746_v29 }
 0x7fa   : > { %2698 = vpow2.f32 %v1628_v35 }
 0x7fe   : > { %1405 = vrot.lane.b32.xlu1 %v3208_v34, %s2847_s18 }
 0x803   : > { %v2697_v31 = vpop.eup %2696 }
 0x804   : > { %v1748_v32 = vsel %vm673_vm2, %v2697_v31, 0.0  ;;  %v2699_v36 = vpop.eup %2698 }
 0x805   : > { %1749 = vadd.xlane.f32.xlu0 %v1748_v32  ;;  %v1630_v24 = vsel %vm673_vm2, %v2699_v36, 0.0 }
 0x81b   : > { %1518 = vrot.lane.b32.xlu0 %v3208_v34, %s2849_s22 }
 0x822   : > { %1631 = vadd.xlane.f32.xlu1 %v1630_v24 }
 0x833   : > { %1636 = vrot.lane.b32.xlu1 %v3208_v34, %s2848_s29 }
 0x837   : > { %1754 = vrot.lane.b32.xlu1 %v3208_v34, %s3466_s12 }
 0x87a   : > { %v1401_v37 = vpop.xlane.xlu1 %1400 }
 0x87b   : > { %2700 = vrcp.f32 %v1401_v37 }
 0x87e   : > { %v1406_v38 = vpop.permute.xlu1 %1405 }
 0x87f   : > { %v1411_v39 = vsel %vm737_vm3, %v1406_v38, 0 }
 0x880   : > { %2480 = vmatpush3.bf16.msra.mxu0 %v1411_v39 }
 0x881   : > { %2491 = vmatprep.subr.bf16.mxu0 %v2838_v12 }
 0x882   : > { %v1514_v41 = vpop.xlane.xlu0 %1513 }
 0x883   : > { %2702 = vrcp.f32 %v1514_v41 }
 0x885   : > { %v2701_v40 = vpop.eup %2700 }
 0x886   : > { %v1403_v42 = vmul.f32 %v2701_v40, %v2693_v21  ;;  %v1212_v21 = vsel %vm571_vm0, %v3254_v56, 0.0 }
 0x888   : > { %v1404_v43 = vpack.c.bf16 %v1403_v42, %v1403_v42 }
 0x88a   : > { %2482 = vmatmul.mubr.msk.bf16.vlgmr.msra.gmra.mrb[24].mxu0 %vm673_vm2, %v1404_v43 }
 0x88b   : > { %2493 = vmatprep.mubr.msk.bf16.mxu0 %vm2839_vm1, %v2838_v12 }
 0x88d   : > { %v2703_v44 = vpop.eup %2702 }
 0x88e   : > { %v1516_v30 = vmul.f32 %v2703_v44, %v2695_v25 }
 0x890   : > { %v1517_v47 = vpack.c.bf16 %v1516_v30, %v1516_v30 }
 0x892   : > { %v1750_v34 = vpop.xlane.xlu0 %1749 }
 0x896   : > { %v1519_v45 = vpop.permute.xlu0 %1518 }
 0x897   : > { %v1524_v46 = vsel %vm737_vm3, %v1519_v45, 0  ;;  %v2292_v45 = vld [vmem:[%s3469_s15] ss:$0 sm:$0xff] }
 0x898   : > { %2492 = vmatpush3.bf16.msra.mxu0 %v1524_v46 }
 0x899   : > { %2503 = vmatprep.subr.bf16.mxu0 %v2838_v12 }
 0x89b   : > { %2494 = vmatmul.mubr.msk.bf16.vlgmr.msra.gmra.mrb[28].mxu0 %vm673_vm2, %v1517_v47 }
 0x89c   : > { %2505 = vmatprep.mubr.msk.bf16.mxu0 %vm2839_vm1, %v2838_v12 }
 0x8af   : > { %v1632_v48 = vpop.xlane.xlu1 %1631 }
 0x8b0   : > { %2704 = vrcp.f32 %v1632_v48 }
 0x8b1   : > { %2706 = vrcp.f32 %v1750_v34 }
 0x8b3   : > { %v1637_v49 = vpop.permute.xlu1 %1636 }
 0x8b4   : > { %v1642_v51 = vsel %vm737_vm3, %v1637_v49, 0 }
 0x8b5   : > { %2504 = vmatpush3.bf16.msra.mxu0 %v1642_v51 }
 0x8b6   : > { %2515 = vmatprep.subr.bf16.mxu0 %v2838_v12 }
 0x8b7   : > { %v1755_v54 = vpop.permute.xlu1 %1754 }
 0x8b8   : > { %v1760_v59 = vsel %vm737_vm3, %v1755_v54, 0 }
 0x8ba   : > { %v2705_v52 = vpop.eup %2704 }
 0x8bb   : > { %v1634_v53 = vmul.f32 %v2705_v52, %v2699_v36  ;;  %v2707_v58 = vpop.eup %2706 }
 0x8bc   : > { %v1752_v60 = vmul.f32 %v2707_v58, %v2697_v31 }
 0x8bd   : > { %v1635_v57 = vpack.c.bf16 %v1634_v53, %v1634_v53 }
 0x8be   : > { %v1753_v61 = vpack.c.bf16 %v1752_v60, %v1752_v60 }
 0x8bf   : > { %2506 = vmatmul.mubr.msk.bf16.vlgmr.msra.gmra.mrb[32].mxu0 %vm673_vm2, %v1635_v57 }
 0x8c0   : > { %2516 = vmatpush3.bf16.msra.mxu0 %v1760_v59  ;;  %2517 = vmatprep.mubr.msk.bf16.mxu0 %vm2839_vm1, %v2838_v12 }
 0x8c7   : > { %2518 = vmatmul.mubr.msk.bf16.vlgmr.msra.gmra.mrb[36].mxu0 %vm673_vm2, %v1753_v61 }
 0x95d   : > { %v1447_v62 = vpop.f32.mrb[24].mxu0 }
 0x95e   : > { %v1453_v63 = vpack.c.bf16 %v1447_v62, %v1447_v62  ;;  %v2483_v0 = vpop.f32.mrb[25].mxu0 }
 0x95f   : > { %v1450_v1 = vpop.f32.mrb[26].mxu0 }
 0x960   : > { %1454 = vst.msk [vmem:[#allocation2] sm:$0xf] %vm782_vm4, %v1453_v63  ;;  %v2484_v2 = vpop.f32.mrb[27].mxu0 }
 0x96e   : > { %v1560_v18 = vpop.f32.mrb[28].mxu0 }
 0x96f   : > { %v2341_v4 = vpack.c.bf16 %v1560_v18, %v1560_v18  ;;  %v2495_v3 = vpop.f32.mrb[29].mxu0 }
 0x970   : > { %v1563_v5 = vpop.f32.mrb[30].mxu0 }
 0x971   : > { %1570 = vrot.lane.b32.xlu0 %v2341_v4, %s3467_s27  ;;  %v2496_v6 = vpop.f32.mrb[31].mxu0 }
 0x992   : > { %v1678_v20 = vpop.f32.mrb[32].mxu0 }
 0x993   : > { %v2342_v9 = vpack.c.bf16 %v1678_v20, %v1678_v20  ;;  %v2507_v10 = vpop.f32.mrb[33].mxu0 }
 0x994   : > { %v1681_v11 = vpop.f32.mrb[34].mxu0 }
 0x995   : > { %1688 = vrot.lane.b32.xlu1 %v2342_v9, %s2852_s28  ;;  %v2508_v13 = vpop.f32.mrb[35].mxu0 }
 0x99a   : > { %v1796_v14 = vpop.f32.mrb[36].mxu0 }
 0x99b   : > { %v2343_v15 = vpack.c.bf16 %v1796_v14, %v1796_v14  ;;  %v2519_v16 = vpop.f32.mrb[37].mxu0 }
 0x99c   : > { %v1799_v17 = vpop.f32.mrb[38].mxu0 }
 0x99d   : > { %1806 = vrot.lane.b32.xlu0 %v2343_v15, %s2853_s19  ;;  %v2520_v19 = vpop.f32.mrb[39].mxu0  ;;  %s3468_s19 = sld [smem:[#allocation20_spill]] }
 0x9a3   : > { %v2291_v34 = vld [vmem:[%s3468_s19] ss:$0 sm:$0xff] }
 0x9b9   : > { %1213 = vadd.xlane.f32.xlu1 %v1212_v21 }
 0x9e3   : > { %v1571_v22 = vpop.permute.xlu0 %1570 }
 0x9e4   : > { %1573 = vst.msk [vmem:[#allocation2] sm:$0xf] %vm902_vm5, %v1571_v22 }
 0xa07   : > { %v1689_v12 = vpop.permute.xlu1 %1688 }
 0xa08   : > { %1691 = vst.msk [vmem:[#allocation2] sm:$0xf] %vm1021_vm6, %v1689_v12 }
 0xa0f   : > { %v1807_v23 = vpop.permute.xlu0 %1806 }
 0xa10   : > { %1809 = vst.msk [vmem:[#allocation2] sm:$0xf] %vm1140_vm7, %v1807_v23 }
 0xa17   : > { %v1810_v25 = vld [vmem:[#allocation2] sm:$0xf] }
 0xa18   : > { %2526 = vmatmul.mubr.msk.bf16.vlgmr.msra.gmra.mrb[36].mxu1 %vm571_vm0, %v1810_v25 }
 0xa46   : > { %v1214_v26 = vpop.xlane.xlu1 %1213 }
 0xa47   : > { %v1215_v27 = vmul.f32 0.03125, %v1214_v26 }
 0xa49   : > { %v1216_v29 = vsub.f32 %v3254_v56, %v1215_v27 }
 0xa4b   : > { %v1217_v37 = vmul.f32 %v1216_v29, %v1216_v29 }
 0xa4d   : > { %v1218_v38 = vsel %vm571_vm0, %v1217_v37, 0.0 }
 0xaeb   : > { %v1871_v28 = vpop.f32.mrb[36].mxu1 }
 0xaec   : > { %v1872_v31 = vadd.f32 %v3250_v50, %v1871_v28  ;;  %v2527_v32 = vpop.f32.mrb[37].mxu1 }
 0xaed   : > { %v1874_v33 = vpop.f32.mrb[38].mxu1 }
 0xaee   : > { %v1877_v35 = vadd.f32 %v3137_v55, %v1872_v31  ;;  %v2528_v36 = vpop.f32.mrb[39].mxu1 }
 0xaf0   : > { %1913 = vst.msk [vmem:[#allocation4 + $0x8] sm:$0xff] %vm571_vm0, %v1877_v35  ;;  %v1880_v24 = vsel %vm571_vm0, %v1877_v35, 0.0 }
 0xaf1   : > { %1881 = vadd.xlane.f32.xlu0 %v1880_v24 }
 0xaf5   : > { %1219 = vadd.xlane.f32.xlu0 %v1218_v38 }
 0xb7e   : > { %v1882_v39 = vpop.xlane.xlu0 %1881 }
 0xb7f   : > { %v1883_v40 = vmul.f32 0.03125, %v1882_v39 }
 0xb81   : > { %v1884_v41 = vsub.f32 %v1877_v35, %v1883_v40 }
 0xb82   : > { %v1220_v56 = vpop.xlane.xlu0 %1219 }
 0xb83   : > { %v1221_v42 = vmul.f32 0.03125, %v1220_v56  ;;  %v1885_v50 = vmul.f32 %v1884_v41, %v1884_v41 }
 0xb85   : > { %v1222_v43 = vadd.f32 1e-06, %v1221_v42  ;;  %v1886_v44 = vsel %vm571_vm0, %v1885_v50, 0.0 }
 0xb86   : > { %1887 = vadd.xlane.f32.xlu1 %v1886_v44 }
 0xb87   : > { %2708 = vrsqrt.f32 %v1222_v43 }
 0xb91   : > { %v2709_v55 = vpop.eup %2708 }
 0xb92   : > { %v1224_v30 = vmul.f32 %v2709_v55, %v1216_v29 }
 0xb94   : > { %v1231_v46 = vmul.f32 %v2291_v34, %v1224_v30 }
 0xb96   : > { %v1238_v47 = vadd.f32 %v2292_v45, %v1231_v46 }
 0xb98   : > { %v1239_v48 = vpack.c.bf16 %v1238_v47, %v1238_v47 }
 0xb9a   : > { %1241 = vst.msk [vmem:[#allocation3] sm:$0xf] %vm1240_vm8, %v1239_v48 }
 0xc13   : > { %v1888_v49 = vpop.xlane.xlu1 %1887 }
 0xc14   : > { %v1889_v51 = vmul.f32 0.03125, %v1888_v49 }
 0xc16   : > { %v1890_v52 = vadd.f32 1e-06, %v1889_v51 }
 0xc18   : > { %2710 = vrsqrt.f32 %v1890_v52 }
 0xc22   : > { %v2711_v53 = vpop.eup %2710 }
 0xc23   : > { %v1892_v54 = vmul.f32 %v2711_v53, %v1884_v41 }
 0xc25   : > { %v1899_v57 = vmul.f32 %v2291_v34, %v1892_v54 }
 0xc27   : > { %v1906_v58 = vadd.f32 %v2292_v45, %v1899_v57 }
 0xc29   : > { %v1907_v59 = vpack.c.bf16 %v1906_v58, %v1906_v58 }
 0xc2b   : > { %v1909_v60 = vrot.slane %v1907_v59, 4 }
 0xc2d   : > { %1912 = vst.msk [vmem:[#allocation3] sm:$0xf0] %vm1911_vm9, %v1909_v60 }
 0xc2e PF: > { %s3470_s16 = scalar_lea.vmem [#allocation5], %s3031_s24  ;;  %v2854_v62 = vmov 0.0   ;;  %vm2855_vm10 = vmmov 0   ;;  %v2714_v0 = vld [vmem:[%s3053_s23] sm:$0xff]   ;;  %vm1938_vm11 = vcmask 261120   ;;  %v2715_v2 = vld [vmem:[%s3053_s23 + $0x8] sm:$0xff]   ;;  %s3472_s27 = scalar_lea.vmem %s3428_s10, %s3039_s13 }
 0xc2f   : > { %v2712_v61 = vld [vmem:[%s3470_s16] sm:$0xff]   ;;  %2529 = vmatprep.subr.bf16.mxu0 %v2854_v62  ;;  %2537 = vmatprep.subr.bf16.mxu1 %v2854_v62  ;;  %s3471_s9 = smov %s3470_s16  ;;  %v1994_v31 = vld [vmem:[#allocation4 + $0x8] sm:$0xff]  ;;  %p2329_p7 = scmp.ne.s32.totalorder %s2820_s30, 1 }
 0xc30   : > { %2530 = vmatpush3.bf16.msra.mxu0 %v2712_v61  ;;  %v2713_v63 = vld [vmem:[%s3471_s9 + $0x8] sm:$0xff]   ;;  %2533 = vmatprep.mubr.msk.bf16.mxu0 %vm2855_vm10, %v2854_v62  ;;  %v2716_v18 = vld [vmem:[%s3053_s23 + $0x10] sm:$0xff]   ;;  %v2717_v4 = vld [vmem:[%s3053_s23 + $0x18] sm:$0xff]   ;;  %s3473_s20 = sld [smem:[#allocation23_spill]] (!%p2329_p7) }
 0xc31   : > { %2531 = vmatprep.subr.bf16.mxu0 %v2854_v62  ;;  %2553 = vmatprep.mubr.msk.bf16.mxu1 %vm2855_vm10, %v2854_v62  ;;  %v2718_v3 = vld [vmem:[%s3053_s23 + $0x20] sm:$0xff]   ;;  %v2719_v5 = vld [vmem:[%s3053_s23 + $0x28] sm:$0xff]   ;;  %v2720_v6 = vld [vmem:[%s3053_s23 + $0x30] sm:$0xff]  }
 0xc32   : > { %2538 = vmatpush3.bf16.msra.mxu1 %v2714_v0  ;;  %v2721_v7 = vld [vmem:[%s3053_s23 + $0x38] sm:$0xff]   ;;  %v2317_v20 = vld [vmem:[%s3472_s27] ss:$0 sm:$0xff]  ;;  %v1993_v28 = vld [vmem:[#allocation4] sm:$0xff] }
 0xc33   : > { %2539 = vmatprep.subr.bf16.mxu1 %v2854_v62 }
 0xc34   : > { %v1914_v1 = vld [vmem:[#allocation3] sm:$0xff]  ;;  %2532 = vmatpush3.bf16.msra.mxu0 %v2713_v63 }
 0xc36   : > { %2540 = vmatpush3.bf16.msra.mxu1 %v2715_v2  ;;  %v2330_v38 = vld [vmem:[%s3473_s20] ss:$0 sm:$0xff] (!%p2329_p7) }
 0xc37   : > { %2534 = vmatmul.mubr.msk.bf16.vlgmr.msra.gmra.mrb[0].mxu0 %vm1938_vm11, %v1914_v1  ;;  %2541 = vmatprep.subr.bf16.mxu1 %v2854_v62 }
 0xc3a   : > { %2542 = vmatpush3.bf16.msra.mxu1 %v2716_v18 }
 0xc3b   : > { %2543 = vmatprep.subr.bf16.mxu1 %v2854_v62 }
 0xc3e   : > { %2544 = vmatpush3.bf16.msra.mxu1 %v2717_v4 }
 0xc3f   : > { %2545 = vmatprep.subr.bf16.mxu1 %v2854_v62 }
 0xc42   : > { %2546 = vmatpush3.bf16.msra.mxu1 %v2718_v3 }
 0xc43   : > { %2547 = vmatprep.subr.bf16.mxu1 %v2854_v62 }
 0xc46   : > { %2548 = vmatpush3.bf16.msra.mxu1 %v2719_v5 }
 0xc47   : > { %2549 = vmatprep.subr.bf16.mxu1 %v2854_v62 }
 0xc4a   : > { %2550 = vmatpush3.bf16.msra.mxu1 %v2720_v6 }
 0xc4b   : > { %2551 = vmatprep.subr.bf16.mxu1 %v2854_v62 }
 0xc4e   : > { %2552 = vmatpush3.bf16.msra.mxu1 %v2721_v7 }
 0xd0a   : > { %v1976_v8 = vpop.f32.mrb[0].mxu0 }
 0xd0b   : > { %v1977_v9 = vadd.f32 %v2317_v20, %v1976_v8  ;;  %v2535_v10 = vpop.f32.mrb[1].mxu0 }
 0xd0c   : > { %v1979_v11 = vpop.f32.mrb[2].mxu0 }
 0xd0d   : > { %v1985_v13 = vmul.f32 0.70710677, %v1977_v9  ;;  %v1980_v14 = vadd.f32 %v2317_v20, %v1979_v11  ;;  %v2536_v15 = vpop.f32.mrb[3].mxu0  ;;  %v1983_v22 = vmul.f32 0.5, %v1977_v9 }
 0xd0f   : > { %2722 = verf.f32 %v1985_v13  ;;  %v1986_v16 = vmul.f32 0.70710677, %v1980_v14  ;;  %v1984_v12 = vmul.f32 0.5, %v1980_v14 }
 0xd11   : > { %2724 = verf.f32 %v1986_v16 }
 0xd19   : > { %v2723_v17 = vpop.eup %2722 }
 0xd1a   : > { %v1989_v19 = vadd.f32 1.0, %v2723_v17 }
 0xd1b   : > { %v2725_v21 = vpop.eup %2724 }
 0xd1c   : > { %v1990_v23 = vadd.f32 1.0, %v2725_v21  ;;  %v1991_v25 = vmul.f32 %v1989_v19, %v1983_v22 }
 0xd1e   : > { %v1992_v26 = vmul.f32 %v1990_v23, %v1984_v12 }
 0xd20   : > { %v1995_v27 = vpack.c.bf16 %v1992_v26, %v1991_v25 }
 0xd22   : > { %2554 = vmatmul.mubr.bf16.vlgmr.msra.gmra.mrb[0].mxu1 %v1995_v27 }
 0xdf4   : > { %2108 = sbr.rel (%p2329_p7) target bundleno = 3589 (0xe05), region = 121 }
 0xdf5   : > { %v2094_v29 = vpop.f32.mrb[0].mxu1 }
 0xdf6   : > { %v2101_v32 = vadd.f32 %v2094_v29, %v1993_v28  ;;  %v2555_v33 = vpop.f32.mrb[1].mxu1 }
 0xdf7   : > { %v2097_v35 = vpop.f32.mrb[2].mxu1 }
 0xdf8   : > { %2103 = vst.msk [vmem:[#allocation4] sm:$0xff] %vm1938_vm11, %v2101_v32  ;;  %v2102_v36 = vadd.f32 %v2097_v35, %v1994_v31  ;;  %v2556_v24 = vpop.f32.mrb[3].mxu1 }
 0xdfa   : > { %2104 = vst.msk [vmem:[#allocation4 + $0x8] sm:$0xff] %vm1938_vm11, %v2102_v36 }
 0xdff   : > { %v2109_v37 = vld [vmem:[#allocation4] sm:$0xff] }
 0xe00   : > { %v2117_v40 = vadd.f32 %v2330_v38, %v2109_v37 }
 0xe01   : > { %v2119_v39 = vld [vmem:[#allocation4 + $0x8] sm:$0xff] }
 0xe02   : > { %v2127_v41 = vadd.f32 %v2330_v38, %v2119_v39  ;;  %2118 = vst.msk [vmem:[%s3056_s17] sm:$0xff] %vm1938_vm11, %v2117_v40 }
 0xe04   : > { %2332 = vst.msk [vmem:[%s3056_s17 + $0x8] sm:$0xff] %vm1938_vm11, %v2127_v41 }
 0xe05 PF: > { %s2344_s30 = sshll.u32 %s2824_s14, 8  ;;  %s3474_s18 = sld [smem:[#allocation24_spill]] }
 0xe06   : > { %s2144_s22 = sshll.u32 %s3056_s17, 4  ;;  %s3475_s19 = sand.u32 1, %s2804_s26   ;;  %s3356_s22 = int_to_ptr.vmem [resolvable:$true] %s2144_s22 }
 0xe07   : > { %s3360_s28 = scalar_lea.sflag [#allocation7], %s3475_s19  ;;  %s2726_s25 = scalar_lea.vmem %s3356_s22, 256 }
 0xe08   : > { %p2727_p8 = scmp.ne.s32.totalorder %s3356_s22, %s2726_s25  ;;  %s2856_s14 = smov [#allocation6]  }
 0xe09   : > { %s2730_s15 = sshll.u32 %s2856_s14, 4  ;;  %s2731_s15 = int_to_ptr.vmem [resolvable:$false] %s2730_s15 }
 0xe0a   : > { %p2728_p9 = pnand %p2727_p8, %p3008_p10  ;;  %s2732_s16 = scalar_lea.vmem %s2731_s15, 512 }
 0xe0b   : > { %s3353_s29 = scalar_lea.hbm %s3474_s18, %s2344_s30  ;;  %p2733_p13 = scmp.lt.s32.totalorder %s3356_s22, %s2731_s15 }
 0xe0c   : > { %p2729_p11 = pneg %p2728_p9  ;;  %p2734_p0 = scmp.lt.s32.totalorder %s2732_s16, %s2726_s25 }
 0xe0e   : > { %p2735_p1 = por %p2734_p0, %p2733_p13 }
 0xe10   : > { %p2736_p2 = pnand %p2735_p1, %p2729_p11 }
 0xe12   : > { %2739 = shalt.err (!%p2736_p2)
}
 0xe13   : > { %s2740_s17 = scalar_lea.hbm %s3353_s29, 256  ;;  %s2744_s12 = scalar_lea.hbm %s3474_s18, 512 }
 0xe14   : > { %p2741_p3 = scmp.ne.s32.totalorder %s3353_s29, %s2740_s17  ;;  %p2745_p6 = scmp.lt.u32.totalorder %s3353_s29, %s3474_s18 }
 0xe15   : > { %p2746_p7 = scmp.lt.u32.totalorder %s2744_s12, %s2740_s17  ;;  %p2748_p9 = scmp.lt.u32.totalorder %s2740_s17, %s3353_s29 }
 0xe16   : > { %p2742_p4 = pnand %p2741_p3, %p3008_p10 }
 0xe17   : > { %p2747_p8 = por %p2746_p7, %p2745_p6 }
 0xe18   : > { %p2743_p5 = pneg %p2742_p4 }
 0xe19   : > { %p2749_p11 = por %p2748_p9, %p2747_p8 }
 0xe1b   : > { %p2750_p13 = pnand %p2749_p11, %p2743_p5 }
 0xe1d   : > { %2753 = shalt.err (!%p2750_p13)
}
 0xe1e   : > { %s2857_s13 = smov 128   ;;  %s2858_s20 = smov 8  }
 0xe1f   : > { %2557 = dma.vmem_to_hbm [thread:$0]  (%p3008_p10), %s3356_s22, 256, %s3353_s29, %s3360_s28, %s2857_s13, %s2857_s13, %s2858_s20  }
 0xe20 PF: > { %s3476_s30 = sld [smem:[#allocation14_spill]]  ;;  %s3477_s21 = sld [smem:[#allocation9_spill]] }
 0xe26   : > { %p2563_p0 = scmp.ge.s32.totalorder %s3476_s30, 2  ;;  %s2159_s19 = sand.u32 1, %s3477_s21  }
 0xe27   : > { %s2160_s25 = scalar_lea.sflag [#allocation7], %s2159_s19 }
 0xe28   : > { %p2560_p1 = pnand %p2563_p0, %p3015_p12 }
 0xe2a   : > { %2795 = dma.done.wait (!%p2560_p1), %s2160_s25, 256  }
 0xe2b   : > { %2797 = vsyncadd (!%p2560_p1), %s2160_s25, 4294967040  ;;  %s26_s17 = sadd.s32 1, %s3476_s30   ;;  %s3479_s14 = sld [smem:[#allocation10_spill]] }
 0xe2c   : > { %p23_p2 = scmp.ge.s32.totalorder %s26_s17, 6   ;;  %s3480_s27 = sld [smem:[#allocation18_spill]] }
 0xe2d   : > { %s3481_s28 = sld [smem:[#allocation11_spill]]  ;;  %s3482_s29 = sld [smem:[#allocation17_spill]] }
 0xe2e   : > { %s3483_s30 = sld [smem:[#allocation12_spill]]  ;;  %s3484_s7 = sld [smem:[#allocation13_spill]] }
 0xe2f   : > { %s3485_s15 = sld [smem:[#allocation15_spill]]  ;;  %s3486_s16 = sld [smem:[#allocation16_spill]] }
 0xe30   : > { %s3487_s25 = smov %s2804_s26  ;;  %25 = sbr.rel (!%p23_p2) target bundleno = 12 (0xc), region = 172 }
 0xe31   : > { %s3488_s26 = smov %s3479_s14 }
 0xe34   : > { %s3489_s14 = smov %s3484_s7 }
 0xe37   :  { %2165 = vsyncpa [#allocation7], 1 }
 0xe38   :  { %2167 = vsyncpa [#allocation7 + $0x1], 1 }

// kernel: tpu_custom_call.1
= control target key start
LH: loop header
LB: loop body
LE: loop exit
PB: predicated region body
PF: predicated region fallthrough
CT: control target
= control target key end

     0   :  { %s3418_s0 = inlined_call_operand.vmem [shape: f32[4,8,32], index: 0, kind: input, shape index: {}]   ;;  %s3419_s1 = inlined_call_operand.vmem [shape: f32[1,32], index: 1, kind: input, shape index: {}]   ;;  %s3420_s2 = inlined_call_operand.vmem [shape: f32[1,32], index: 2, kind: input, shape index: {}]   ;;  %s3421_s3 = inlined_call_operand.vmem [shape: bf16[32,96], index: 3, kind: input, shape index: {}]   ;;  %s3422_s4 = inlined_call_operand.vmem [shape: f32[1,96], index: 4, kind: input, shape index: {}]   ;;  %s3423_s5 = inlined_call_operand.vmem [shape: bf16[32,32], index: 5, kind: input, shape index: {}]   ;;  %s3424_s6 = inlined_call_operand.vmem [shape: f32[1,32], index: 6, kind: input, shape index: {}]   ;;  %s3425_s7 = inlined_call_operand.vmem [shape: f32[1,32], index: 7, kind: input, shape index: {}]   ;;  %s3426_s8 = inlined_call_operand.vmem [shape: f32[1,32], index: 8, kind: input, shape index: {}]   ;;  %s3427_s9 = inlined_call_operand.vmem [shape: bf16[32,256], index: 9, kind: input, shape index: {}]   ;;  %s3428_s10 = inlined_call_operand.vmem [shape: f32[1,256], index: 10, kind: input, shape index: {}]   ;;  %s3429_s11 = inlined_call_operand.vmem [shape: bf16[256,32], index: 11, kind: input, shape index: {}]   ;;  %s3430_s12 = inlined_call_operand.vmem [shape: f32[1,32], index: 12, kind: input, shape index: {}]   ;;  %s3431_s13 = inlined_call_operand.hbm [shape: f32[4,8,32], index: 13, kind: output, shape index: {}]  }
   0x1   :  { %3446 = sst [smem:[#allocation20_spill]] %s3425_s7 }
   0x2   :  { %3447 = sst [smem:[#allocation21_spill]] %s3426_s8 }
   0x3   :  { %3448 = sst [smem:[#allocation22_spill]] %s3427_s9 }
   0x4   :  { %3449 = sst [smem:[#allocation23_spill]] %s3430_s12 }
   0x5   :  { %3450 = sst [smem:[#allocation24_spill]] %s3431_s13 }
   0x6   :  { %18 = vsyncpa [#allocation7], 0 }
   0x7   :  { %20 = vsyncpa [#allocation7 + $0x1], 0  ;;  %s2929_s25 = smov 0   ;;  %s2931_s26 = smov 0  }
   0x8   :  { %s2933_s27 = smov 0   ;;  %s2935_s28 = smov 0  }
   0x9   :  { %s2937_s29 = smov 0   ;;  %s2939_s30 = smov 0  }
   0xa   :  { %s2941_s14 = smov 0   ;;  %s2943_s15 = smov 0  }
   0xb   :  { %s2945_s16 = smov 0   ;;  %s2947_s17 = smov 0  }
   0xc LB: > { %3451 = sst [smem:[#allocation9_spill]] %s2800_s25  ;;  %s2256_s18 = sadd.s32 4294967295, %s2836_s17   ;;  %s2836_s17 = sphi %s2947_s17, %s26_s17   ;;  %s2832_s16 = sphi %s2945_s16, %s3486_s16   ;;  %s2828_s15 = sphi %s2943_s15, %s3485_s15   ;;  %s2824_s14 = sphi %s2941_s14, %s3489_s14   ;;  %s2820_s30 = sphi %s2939_s30, %s3483_s30   ;;  %s2816_s29 = sphi %s2937_s29, %s3482_s29   ;;  %s2812_s28 = sphi %s2935_s28, %s3481_s28   ;;  %s2808_s27 = sphi %s2933_s27, %s3480_s27   ;;  %s2804_s26 = sphi %s2931_s26, %s3488_s26   ;;  %s2800_s25 = sphi %s2929_s25, %s3487_s25  }
   0xd   : > { %3452 = sst [smem:[#allocation10_spill]] %s2808_s27  ;;  %s2257_s19 = sadd.s32 4294967294, %s2836_s17  }
   0xe   : > { %3453 = sst [smem:[#allocation11_spill]] %s2816_s29  ;;  %s35_s20 = sadd.s32 1, %s2828_s15 }
   0xf   : > { %3454 = sst [smem:[#allocation12_spill]] %s2828_s15  ;;  %s38_s21 = sadd.s32 1, %s2832_s16 }
  0x10   : > { %3455 = sst [smem:[#allocation13_spill]] %s2832_s16  ;;  %p36_p0 = scmp.ge.s32.totalorder %s35_s20, 2 }
  0x11   : > { %3456 = sst [smem:[#allocation14_spill]] %s2836_s17  ;;  %s239_s22 = sadd.s32 1, %s2816_s29 }
  0x12   : > { %p246_p1 = scmp.ne.s32.totalorder %s2816_s29, %s2812_s28  ;;  %p247_p2 = scmp.eq.s32.totalorder %s2836_s17, 0 }
  0x13   : > { %s3491_s20 = smov (%p36_p0, %s35_s20), 0  ;;  %s3493_s21 = smov (!%p36_p0, %s38_s21), %s2832_s16 }
  0x14   : > { %3457 = sst [smem:[#allocation15_spill]] %s3491_s20  ;;  %s236_s23 = ssub.s32 %s2828_s15, %s3491_s20 }
  0x15   : > { %p2992_p3 = por %p247_p2, %p246_p1  ;;  %p40_p4 = scmp.ge.s32.totalorder %s3493_s21, 2 }
  0x16   : > { %p237_p5 = scmp.eq.s32.totalorder %s236_s23, 0  ;;  %s338_s13 = sadd.s32 1, %s2808_s27 }
  0x17   : > { %p348_p6 = scmp.ne.s32.totalorder %s2808_s27, %s2804_s26  ;;  %s3495_s21 = smov (%p40_p4, %s3493_s21), 0 }
  0x18   : > { %3459 = sst [smem:[#allocation16_spill]] %s3495_s21  ;;  %s335_s8 = ssub.s32 %s2832_s16, %s3495_s21 }
  0x19   : > { %s3002_s12 = scalar_select %p237_p5, %s2816_s29, %s239_s22  }
  0x1a   : > { %p349_p7 = scmp.eq.s32.totalorder %s2256_s18, 3  ;;  %p336_p8 = scmp.eq.s32.totalorder %s335_s8, 0 }
  0x1b   : > { %3460 = sst [smem:[#allocation17_spill]] %s3002_s12  ;;  %p354_p9 = scmp.ne.s32.totalorder %s2804_s26, %s2800_s25 }
  0x1c   : > { %p3008_p10 = por %p349_p7, %p348_p6  ;;  %p355_p11 = scmp.eq.s32.totalorder %s2257_s19, 3 }
  0x1d   : > { %s3013_s20 = scalar_select %p336_p8, %s2808_s27, %s338_s13  }
  0x1e   : > { %p3015_p12 = por %p355_p11, %p354_p9  ;;  %p2259_p13 = scmp.ge.s32.totalorder %s2836_s17, 4 }
  0x1f   : > { %3462 = sst [smem:[#allocation18_spill]] %s3013_s20 }
  0x20   : > { %s3463_s23 = scalar_select %p3015_p12, 1, 0 }
  0x21   : > { %398 = sbr.rel (%p2259_p13) target bundleno = 52 (0x34), region = 52 }
  0x22   : > { %3464 = sst [smem:[#allocation19_spill]] %s3463_s23 }
  0x28   : > { %410 = sbr.rel (!%p2992_p3) target bundleno = 52 (0x34), region = 60  ;;  %s412_s8 = sand.u32 (%p2992_p3), 1, %s2816_s29  }
  0x29   : > { %s2261_s18 = sshll.u32 (%p2992_p3), %s2828_s15, 2  ;;  %s2260_s22 = sshll.u32 (%p2992_p3), %s412_s8, 4 }
  0x2a   : > { %s3465_s9 = sld [smem:[#allocation22_spill]] (%p2992_p3)  ;;  %s414_s19 = scalar_lea.vmem (%p2992_p3), [#allocation5], %s2260_s22 }
  0x30   : > { %s416_s13 = scalar_lea.vmem %s3465_s9, %s2261_s18 }
  0x31   : > { %v432_v0 = vld [vmem:[%s416_s13] sm:$0xf]  ;;  %v434_v1 = vld [vmem:[%s416_s13 + $0x8] sm:$0xf]  ;;  %v436_v2 = vld [vmem:[%s416_s13 + $0x10] sm:$0xf] }
  0x32   : > { %433 = vst [vmem:[%s414_s19] sm:$0xf] %v432_v0  ;;  %435 = vst [vmem:[%s414_s19 + $0x4] sm:$0xf] %v434_v1  ;;  %v438_v3 = vld [vmem:[%s416_s13 + $0x18] sm:$0xf] }
  0x33   : > { %437 = vst [vmem:[%s414_s19 + $0x8] sm:$0xf] %v436_v2  ;;  %439 = vst [vmem:[%s414_s19 + $0xc] sm:$0xf] %v438_v3 }
  0x34 PF: > { %p2262_p0 = scmp.ge.s32.totalorder %s2836_s17, 1  ;;  %p484_p1 = scmp.lt.s32.totalorder %s2836_s17, 5 }
  0x36   : > { %p485_p2 = pnand %p2262_p0, %p484_p1 }
  0x37   : > { %s491_s16 = sand.u32 (!%p485_p2), 1, %s2812_s28   ;;  %s3438_s21 = sand.u32 (!%p485_p2), 1, %s2804_s26  }
  0x38   : > { %488 = sbr.rel (%p485_p2) target bundleno = 3616 (0xe20), region = 109  ;;  %s3031_s24 = sshll.u32 (!%p485_p2), %s491_s16, 4 }
  0x39   : > { %s2264_s8 = sshll.u32 (!%p485_p2), %s3438_s21, 4  ;;  %s2265_s18 = sshll.u32 (!%p485_p2), %s2824_s14, 1 }
  0x3a   : > { %p553_p3 = scmp.lt.s32.totalorder (!%p485_p2), %s2820_s30, 1  ;;  %p548_p4 = scmp.lt.s32.totalorder (!%p485_p2), %s2265_s18, 3 }
  0x3b   : > { %s2267_s22 = sshll.u32 (!%p485_p2), %s2820_s30, 4  ;;  %s3056_s17 = scalar_lea.vmem (!%p485_p2), [#allocation6], %s2264_s8 }
  0x3c   : > { %p557_p5 = scmp.lt.s32.totalorder (!%p485_p2), %s2267_s22, 31  ;;  %p2269_p6 = scmp.ne.s32.totalorder (!%p485_p2), %s2820_s30, 0 }
  0x3f   : > { %s3039_s13 = scalar_select %p553_p3, %s2820_s30, 1 }
  0x40   : > { %s3497_s18 = smov (!%p548_p4, %s2265_s18), 3  ;;  %s3499_s22 = smov (!%p557_p5, %s2267_s22), 31 }
  0x41   : > { %s2266_s28 = sshll.u32 %s3497_s18, 3  ;;  %s2268_s21 = sshll.u32 %s3499_s22, 2  ;;  %vm571_vm0 = vcmask (!%p2269_p6), 261120   ;;  %v2664_v11 = vld [vmem:[%s3421_s3] sm:$0xff] (!%p2269_p6)   ;;  %v2838_v12 = vmov (!%p2269_p6), 0.0   ;;  %vm2839_vm1 = vmmov (!%p2269_p6), 0  }
  0x42   : > { %s3048_s29 = scalar_lea.vmem %s3418_s0, %s2266_s28  ;;  %s3053_s23 = scalar_lea.vmem %s3429_s11, %s2268_s21  ;;  %2401 = vmatprep.subr.bf16.mxu0 (!%p2269_p6), %v2838_v12  ;;  %2405 = vmatprep.mubr.msk.bf16.mxu0 (!%p2269_p6), %vm2839_vm1, %v2838_v12  ;;  %v2665_v13 = vld [vmem:[%s3421_s3 + $0x8] sm:$0xff] (!%p2269_p6)   ;;  %v3083_v18 = vld [vmem:[%s3419_s1] ss:$0 sm:$0xff] (!%p2269_p6)  ;;  %vm673_vm2 = vcmask (!%p2269_p6), 64512   ;;  %vm737_vm3 = vcmask (!%p2269_p6), 1043456   ;;  %vm782_vm4 = vcmask (!%p2269_p6), 60416  }
  0x43   : > { %567 = sbr.rel (%p2269_p6) target bundleno = 3118 (0xc2e), region = 117  ;;  %v3060_v4 = vld [vmem:[%s3048_s29] sm:$0xff] (!%p2269_p6)  ;;  %2402 = vmatpush3.bf16.msra.mxu0 (!%p2269_p6), %v2664_v11  ;;  %2409 = vmatprep.subr.bf16.mxu1 (!%p2269_p6), %v2838_v12  ;;  %s2840_s16 = smov (!%p2269_p6), 96   ;;  %v3137_v55 = vld [vmem:[%s3048_s29 + $0x8] sm:$0xff] (!%p2269_p6)  ;;  %vm902_vm5 = vcmask (!%p2269_p6), 126016   ;;  %vm1021_vm6 = vcmask (!%p2269_p6), 191616  }
  0x44   : > { %v572_v5 = vsel (!%p2269_p6), %vm571_vm0, %v3060_v4, 0.0  ;;  %2403 = vmatprep.subr.bf16.mxu0 (!%p2269_p6), %v2838_v12  ;;  %2411 = vmatprep.mubr.msk.bf16.mxu1 (!%p2269_p6), %vm2839_vm1, %v2838_v12  ;;  %v3088_v20 = vld [vmem:[%s3420_s2] ss:$0 sm:$0xff] (!%p2269_p6)  ;;  %s2841_s9 = smov (!%p2269_p6), 120   ;;  %s2842_s12 = smov (!%p2269_p6), 88   ;;  %v1247_v60 = vsel (!%p2269_p6), %vm571_vm0, %v3137_v55, 0.0 }
  0x45   : > { %573 = vadd.xlane.f32.xlu0 (!%p2269_p6), %v572_v5  ;;  %v3098_v24 = vld [vmem:[%s3422_s4] ss:$0 sm:$0xff] (!%p2269_p6)  ;;  %s2843_s27 = smov (!%p2269_p6), 80   ;;  %s2844_s20 = smov (!%p2269_p6), 112   ;;  %vm1140_vm7 = vcmask (!%p2269_p6), 257216   ;;  %vm1240_vm8 = vcmask (!%p2269_p6), 257024  }
  0x46   : > { %s2845_s21 = smov (!%p2269_p6), 72   ;;  %s2846_s8 = smov (!%p2269_p6), 104   ;;  %vm1911_vm9 = vcmask (!%p2269_p6), 261124  }
  0x47   : > { %2404 = vmatpush3.bf16.msra.mxu0 (!%p2269_p6), %v2665_v13  ;;  %s2847_s18 = smov (!%p2269_p6), 64   ;;  %s2848_s29 = smov (!%p2269_p6), 48  }
  0x48   : > { %2415 = vmatprep.subr.bf16.mxu0 (!%p2269_p6), %v2838_v12  ;;  %s2849_s22 = smov (!%p2269_p6), 56   ;;  %s3444_s19 = smov (!%p2269_p6), 40  }
  0x49   : > { %s2852_s28 = smov (!%p2269_p6), 16   ;;  %s3469_s15 = sld [smem:[#allocation21_spill]] (!%p2269_p6) }
  0xd2   : > { %v574_v6 = vpop.xlane.xlu0 %573 }
  0xd3   : > { %v576_v7 = vmul.f32 0.03125, %v574_v6 }
  0xd5   : > { %v577_v8 = vsub.f32 %v3060_v4, %v576_v7 }
  0xd7   : > { %v578_v9 = vmul.f32 %v577_v8, %v577_v8 }
  0xd9   : > { %v579_v10 = vsel %vm571_vm0, %v578_v9, 0.0 }
  0xda   : > { %580 = vadd.xlane.f32.xlu0 %v579_v10 }
 0x167   : > { %v581_v14 = vpop.xlane.xlu0 %580 }
 0x168   : > { %v582_v15 = vmul.f32 0.03125, %v581_v14 }
 0x16a   : > { %v583_v16 = vadd.f32 1e-06, %v582_v15 }
 0x16c   : > { %2672 = vrsqrt.f32 %v583_v16 }
 0x176   : > { %v2673_v17 = vpop.eup %2672 }
 0x177   : > { %v585_v19 = vmul.f32 %v2673_v17, %v577_v8 }
 0x179   : > { %v592_v21 = vmul.f32 %v3083_v18, %v585_v19 }
 0x17b   : > { %v599_v22 = vadd.f32 %v3088_v20, %v592_v21 }
 0x17d   : > { %v600_v23 = vpack.c.bf16 %v599_v22, %v599_v22 }
 0x17f   : > { %2406 = vmatmul.mubr.msk.bf16.vlgmr.msra.gmra.mrb[0].mxu0 %vm571_vm0, %v600_v23 }
 0x180   : > { %2417 = vmatprep.mubr.msk.bf16.mxu0 %vm2839_vm1, %v2838_v12 }
 0x252   : > { %v661_v25 = vpop.f32.mrb[0].mxu0 }
 0x253   : > { %v662_v26 = vadd.f32 %v3098_v24, %v661_v25  ;;  %v2407_v27 = vpop.f32.mrb[1].mxu0 }
 0x254   : > { %v664_v28 = vpop.f32.mrb[2].mxu0 }
 0x255   : > { %v667_v29 = vmul.f32 0.35355338, %v662_v26  ;;  %v3101_v30 = vpack.c.bf16 %v662_v26, %v662_v26  ;;  %v2408_v31 = vpop.f32.mrb[3].mxu0 }
 0x257   : > { %v668_v32 = vpack.c.bf16 %v667_v29, %v667_v29  ;;  %671 = vrot.lane.b32.xlu1 %v3101_v30, %s2840_s16 }
 0x259   : > { %785 = vrot.lane.b32.xlu0 %v668_v32, %s2841_s9 }
 0x25b   : > { %787 = vrot.lane.b32.xlu1 %v3101_v30, %s2842_s12 }
 0x25f   : > { %906 = vrot.lane.b32.xlu1 %v3101_v30, %s2843_s27 }
 0x263   : > { %904 = vrot.lane.b32.xlu1 %v668_v32, %s2844_s20 }
 0x267   : > { %1025 = vrot.lane.b32.xlu1 %v3101_v30, %s2845_s21 }
 0x26b   : > { %1023 = vrot.lane.b32.xlu1 %v668_v32, %s2846_s8 }
 0x2c9   : > { %v672_v33 = vpop.permute.xlu1 %671 }
 0x2ca   : > { %v678_v34 = vsel %vm673_vm2, %v672_v33, 0 }
 0x2cb   : > { %2410 = vmatpush3.bf16.xpose.msra.mxu1 %v678_v34  ;;  %v786_v38 = vpop.permute.xlu0 %785 }
 0x2cc   : > { %2421 = vmatprep.subr.bf16.mxu1 %v2838_v12 }
 0x2cd   : > { %v788_v35 = vpop.permute.xlu1 %787 }
 0x2ce   : > { %v793_v36 = vsel %vm673_vm2, %v788_v35, 0 }
 0x2d1   : > { %v907_v37 = vpop.permute.xlu1 %906 }
 0x2d2   : > { %2412 = vmatmul.mubr.msk.bf16.vlgmr.msra.gmra.mrb[0].mxu1 %vm673_vm2, %v668_v32  ;;  %v912_v40 = vsel %vm673_vm2, %v907_v37, 0 }
 0x2d3   : > { %2422 = vmatpush3.bf16.xpose.msra.mxu1 %v793_v36  ;;  %2423 = vmatprep.mubr.msk.bf16.mxu1 %vm2839_vm1, %v2838_v12 }
 0x2d4   : > { %2433 = vmatprep.subr.bf16.mxu1 %v2838_v12 }
 0x2d5   : > { %v905_v39 = vpop.permute.xlu1 %904 }
 0x2d9   : > { %v1026_v41 = vpop.permute.xlu1 %1025 }
 0x2da   : > { %2424 = vmatmul.mubr.msk.bf16.vlgmr.msra.gmra.mrb[4].mxu1 %vm673_vm2, %v786_v38  ;;  %v1031_v42 = vsel %vm673_vm2, %v1026_v41, 0 }
 0x2db   : > { %2434 = vmatpush3.bf16.xpose.msra.mxu1 %v912_v40  ;;  %2435 = vmatprep.mubr.msk.bf16.mxu1 %vm2839_vm1, %v2838_v12 }
 0x2dc   : > { %2445 = vmatprep.subr.bf16.mxu1 %v2838_v12 }
 0x2dd   : > { %v1024_v43 = vpop.permute.xlu1 %1023 }
 0x2e2   : > { %2436 = vmatmul.mubr.msk.bf16.vlgmr.msra.gmra.mrb[8].mxu1 %vm673_vm2, %v905_v39 }
 0x2e3   : > { %2446 = vmatpush3.bf16.xpose.msra.mxu1 %v1031_v42  ;;  %2447 = vmatprep.mubr.msk.bf16.mxu1 %vm2839_vm1, %v2838_v12 }
 0x2e4   : > { %2457 = vmatprep.subr.bf16.mxu1 %v2838_v12 }
 0x2ea   : > { %2448 = vmatmul.mubr.msk.bf16.vlgmr.msra.gmra.mrb[12].mxu1 %vm673_vm2, %v1024_v43 }
 0x2eb   : > { %2461 = vmatprep.mubr.msk.bf16.mxu1 %vm2839_vm1, %v2838_v12 }
 0x3a5   : > { %v714_v44 = vpop.f32.mrb[0].mxu1 }
 0x3a6   : > { %v2413_v45 = vpop.f32.mrb[1].mxu1  ;;  %v720_v46 = vsel %vm673_vm2, %v714_v44, -inf }
 0x3a7   : > { %721 = vmax.xlane.f32.xlu1 %v720_v46  ;;  %v717_v47 = vpop.f32.mrb[2].mxu1 }
 0x3a8   : > { %v2414_v48 = vpop.f32.mrb[3].mxu1 }
 0x3ad   : > { %v829_v49 = vpop.f32.mrb[4].mxu1 }
 0x3ae   : > { %v2425_v50 = vpop.f32.mrb[5].mxu1  ;;  %v835_v51 = vsel %vm673_vm2, %v829_v49, -inf }
 0x3af   : > { %836 = vmax.xlane.f32.xlu0 %v835_v51  ;;  %v832_v52 = vpop.f32.mrb[6].mxu1 }
 0x3b0   : > { %v2426_v53 = vpop.f32.mrb[7].mxu1 }
 0x3b5   : > { %v948_v54 = vpop.f32.mrb[8].mxu1 }
 0x3b6   : > { %v2437_v56 = vpop.f32.mrb[9].mxu1  ;;  %v954_v57 = vsel %vm673_vm2, %v948_v54, -inf }
 0x3b7   : > { %955 = vmax.xlane.f32.xlu1 %v954_v57  ;;  %v951_v58 = vpop.f32.mrb[10].mxu1 }
 0x3b8   : > { %v2438_v59 = vpop.f32.mrb[11].mxu1 }
 0x3bb   : > { %1248 = vadd.xlane.f32.xlu1 %v1247_v60 }
 0x3bd   : > { %v1067_v61 = vpop.f32.mrb[12].mxu1 }
 0x3be   : > { %v2449_v62 = vpop.f32.mrb[13].mxu1  ;;  %v1073_v63 = vsel %vm673_vm2, %v1067_v61, -inf }
 0x3bf   : > { %1074 = vmax.xlane.f32.xlu0 %v1073_v63  ;;  %v1070_v0 = vpop.f32.mrb[14].mxu1 }
 0x3c0   : > { %v2450_v1 = vpop.f32.mrb[15].mxu1  ;;  %v2667_v0 = vld [vmem:[%s3421_s3 + $0x8] sm:$0xff]  }
 0x3cc   : > { %732 = vrot.lane.b32.xlu1 %v3101_v30, %s2847_s18 }
 0x434   : > { %v722_v2 = vpop.xlane.xlu1 %721 }
 0x435   : > { %v723_v6 = vsub.f32 %v714_v44, %v722_v2 }
 0x437   : > { %v724_v8 = vmul.f32 1.442695, %v723_v6 }
 0x43c   : > { %v837_v3 = vpop.xlane.xlu0 %836 }
 0x43d   : > { %v838_v5 = vsub.f32 %v829_v49, %v837_v3 }
 0x43f   : > { %v839_v7 = vmul.f32 1.442695, %v838_v5 }
 0x441   : > { %2674 = vpow2.f32 %v839_v7 }
 0x442   : > { %2676 = vpow2.f32 %v724_v8 }
 0x444   : > { %v956_v9 = vpop.xlane.xlu1 %955 }
 0x445   : > { %v957_v10 = vsub.f32 %v948_v54, %v956_v9 }
 0x447   : > { %v958_v11 = vmul.f32 1.442695, %v957_v10 }
 0x448   : > { %v1249_v13 = vpop.xlane.xlu1 %1248 }
 0x449   : > { %v1250_v14 = vmul.f32 0.03125, %v1249_v13  ;;  %2678 = vpow2.f32 %v958_v11 }
 0x44b   : > { %v2675_v15 = vpop.eup %2674  ;;  %v3146_v16 = vsub.f32 %v3137_v55, %v1250_v14 }
 0x44c   : > { %v733_v17 = vpop.permute.xlu1 %732  ;;  %v841_v19 = vsel %vm673_vm2, %v2675_v15, 0.0  ;;  %v2677_v25 = vpop.eup %2676 }
 0x44d   : > { %v739_v21 = vsel %vm737_vm3, %v733_v17, 0  ;;  %842 = vadd.xlane.f32.xlu1 %v841_v19  ;;  %v1252_v22 = vmul.f32 %v3146_v16, %v3146_v16  ;;  %v726_v26 = vsel %vm673_vm2, %v2677_v25, 0.0  ;;  %v1075_v29 = vpop.xlane.xlu0 %1074 }
 0x44e   : > { %2416 = vmatpush3.bf16.msra.mxu0 %v739_v21  ;;  %v1076_v31 = vsub.f32 %v1067_v61, %v1075_v29  ;;  %v2666_v61 = vld [vmem:[%s3421_s3] sm:$0xff]   ;;  %v2669_v21 = vld [vmem:[%s3423_s5 + $0x8] sm:$0xff]  }
 0x44f   : > { %v1253_v23 = vsel %vm571_vm0, %v1252_v22, 0.0  ;;  %2427 = vmatprep.subr.bf16.mxu0 %v2838_v12 }
 0x450   : > { %1254 = vadd.xlane.f32.xlu0 %v1253_v23  ;;  %v1077_v32 = vmul.f32 1.442695, %v1076_v31 }
 0x452   : > { %2680 = vpow2.f32 %v1077_v32 }
 0x453   : > { %v2679_v27 = vpop.eup %2678 }
 0x454   : > { %727 = vadd.xlane.f32.xlu0 %v726_v26  ;;  %v960_v28 = vsel %vm673_vm2, %v2679_v27, 0.0 }
 0x458   : > { %961 = vadd.xlane.f32.xlu0 %v960_v28 }
 0x45c   : > { %v2681_v33 = vpop.eup %2680 }
 0x45d   : > { %v1079_v34 = vsel %vm673_vm2, %v2681_v33, 0.0 }
 0x45e   : > { %966 = vrot.lane.b32.xlu1 %v3101_v30, %s2848_s29 }
 0x46e   : > { %847 = vrot.lane.b32.xlu0 %v3101_v30, %s2849_s22 }
 0x482   : > { %1080 = vadd.xlane.f32.xlu1 %v1079_v34 }
 0x493   : > { %1085 = vrot.lane.b32.xlu1 %v3101_v30, %s3444_s19  ;;  %s3445_s19 = smov 8  }
 0x4da   : > { %v843_v37 = vpop.xlane.xlu1 %842 }
 0x4dd   : > { %v1255_v35 = vpop.xlane.xlu0 %1254 }
 0x4de   : > { %v967_v45 = vpop.permute.xlu1 %966  ;;  %v1256_v51 = vmul.f32 0.03125, %v1255_v35 }
 0x4df   : > { %v972_v48 = vsel %vm737_vm3, %v967_v45, 0 }
 0x4e0   : > { %v1257_v52 = vadd.f32 1e-06, %v1256_v51 }
 0x4e1   : > { %v728_v36 = vpop.xlane.xlu0 %727 }
 0x4e2   : > { %2682 = vrcp.f32 %v728_v36 }
 0x4e3   : > { %2684 = vrcp.f32 %v843_v37 }
 0x4e5   : > { %v962_v38 = vpop.xlane.xlu0 %961 }
 0x4e6   : > { %2686 = vrcp.f32 %v962_v38 }
 0x4e7   : > { %2688 = vrsqrt.f32 %v1257_v52 }
 0x4e9   : > { %v848_v41 = vpop.permute.xlu0 %847 }
 0x4ea   : > { %v853_v44 = vsel %vm737_vm3, %v848_v41, 0 }
 0x4ec   : > { %v2683_v39 = vpop.eup %2682 }
 0x4ed   : > { %v730_v40 = vmul.f32 %v2683_v39, %v2677_v25  ;;  %v2685_v43 = vpop.eup %2684 }
 0x4ee   : > { %v845_v30 = vmul.f32 %v2685_v43, %v2675_v15 }
 0x4ef   : > { %v731_v42 = vpack.c.bf16 %v730_v40, %v730_v40 }
 0x4f0   : > { %v846_v46 = vpack.c.bf16 %v845_v30, %v845_v30  ;;  %v2687_v47 = vpop.eup %2686 }
 0x4f1   : > { %2418 = vmatmul.mubr.msk.bf16.vlgmr.msra.gmra.mrb[4].mxu0 %vm673_vm2, %v731_v42  ;;  %v964_v49 = vmul.f32 %v2687_v47, %v2679_v27  ;;  %v2689_v57 = vpop.eup %2688 }
 0x4f2   : > { %2428 = vmatpush3.bf16.msra.mxu0 %v853_v44  ;;  %2429 = vmatprep.mubr.msk.bf16.mxu0 %vm2839_vm1, %v2838_v12  ;;  %v1259_v58 = vmul.f32 %v2689_v57, %v3146_v16 }
 0x4f3   : > { %2439 = vmatprep.subr.bf16.mxu0 %v2838_v12  ;;  %v965_v50 = vpack.c.bf16 %v964_v49, %v964_v49 }
 0x4f4   : > { %v1266_v63 = vmul.f32 %v3083_v18, %v1259_v58 }
 0x4f6   : > { %v1273_v1 = vadd.f32 %v3088_v20, %v1266_v63  ;;  %v2668_v20 = vld [vmem:[%s3423_s5] sm:$0xff]  }
 0x4f7   : > { %2458 = vmatpush3.bf16.msra.mxu1 %v2668_v20 }
 0x4f8   : > { %v1274_v2 = vpack.c.bf16 %v1273_v1, %v1273_v1  ;;  %2459 = vmatprep.subr.bf16.mxu1 %v2838_v12 }
 0x4f9   : > { %2430 = vmatmul.mubr.msk.bf16.vlgmr.msra.gmra.mrb[8].mxu0 %vm673_vm2, %v846_v46 }
 0x4fa   : > { %2440 = vmatpush3.bf16.msra.mxu0 %v972_v48  ;;  %2441 = vmatprep.mubr.msk.bf16.mxu0 %vm2839_vm1, %v2838_v12 }
 0x4fb   : > { %2451 = vmatprep.subr.bf16.mxu0 %v2838_v12  ;;  %2460 = vmatpush3.bf16.msra.mxu1 %v2669_v21 }
 0x4fc   : > { %2473 = vmatprep.subr.bf16.mxu1 %v2838_v12 }
 0x501   : > { %2442 = vmatmul.mubr.msk.bf16.vlgmr.msra.gmra.mrb[12].mxu0 %vm673_vm2, %v965_v50  ;;  %v3250_v50 = vld [vmem:[%s3424_s6] ss:$0 sm:$0xff] }
 0x502   : > { %2453 = vmatprep.mubr.msk.bf16.mxu0 %vm2839_vm1, %v2838_v12 }
 0x50f   : > { %v1081_v53 = vpop.xlane.xlu1 %1080 }
 0x510   : > { %2690 = vrcp.f32 %v1081_v53 }
 0x513   : > { %v1086_v54 = vpop.permute.xlu1 %1085 }
 0x514   : > { %v1091_v56 = vsel %vm737_vm3, %v1086_v54, 0 }
 0x515   : > { %2452 = vmatpush3.bf16.msra.mxu0 %v1091_v56 }
 0x516   : > { %2465 = vmatprep.subr.bf16.mxu0 %v2838_v12 }
 0x51a   : > { %v2691_v59 = vpop.eup %2690 }
 0x51b   : > { %v1083_v60 = vmul.f32 %v2691_v59, %v2681_v33 }
 0x51d   : > { %v1084_v62 = vpack.c.bf16 %v1083_v60, %v1083_v60 }
 0x51f   : > { %2454 = vmatmul.mubr.msk.bf16.vlgmr.msra.gmra.mrb[16].mxu0 %vm673_vm2, %v1084_v62 }
 0x520   : > { %2466 = vmatpush3.bf16.msra.mxu0 %v2666_v61  ;;  %2469 = vmatprep.mubr.msk.bf16.mxu0 %vm2839_vm1, %v2838_v12 }
 0x521   : > { %2467 = vmatprep.subr.bf16.mxu0 %v2838_v12 }
 0x524   : > { %2468 = vmatpush3.bf16.msra.mxu0 %v2667_v0 }
 0x525   : > { %2479 = vmatprep.subr.bf16.mxu0 %v2838_v12 }
 0x527   : > { %2470 = vmatmul.mubr.msk.bf16.vlgmr.msra.gmra.mrb[20].mxu0 %vm571_vm0, %v1274_v2 }
 0x528   : > { %2481 = vmatprep.mubr.msk.bf16.mxu0 %vm2839_vm1, %v2838_v12 }
 0x5c4   : > { %v775_v18 = vpop.f32.mrb[4].mxu0 }
 0x5c5   : > { %v781_v3 = vpack.c.bf16 %v775_v18, %v775_v18  ;;  %v2419_v5 = vpop.f32.mrb[5].mxu0 }
 0x5c6   : > { %v778_v6 = vpop.f32.mrb[6].mxu0 }
 0x5c7   : > { %783 = vst.msk [vmem:[#allocation2] sm:$0xf] %vm782_vm4, %v781_v3  ;;  %v2420_v7 = vpop.f32.mrb[7].mxu0 }
 0x5cc   : > { %v889_v8 = vpop.f32.mrb[8].mxu0 }
 0x5cd   : > { %v2338_v9 = vpack.c.bf16 %v889_v8, %v889_v8  ;;  %v2431_v10 = vpop.f32.mrb[9].mxu0 }
 0x5ce   : > { %v892_v11 = vpop.f32.mrb[10].mxu0 }
 0x5cf   : > { %899 = vrot.lane.b32.xlu0 %v2338_v9, %s3445_s19  ;;  %v2432_v13 = vpop.f32.mrb[11].mxu0  ;;  %s2853_s19 = smov 24  }
 0x5d4   : > { %v1008_v14 = vpop.f32.mrb[12].mxu0 }
 0x5d5   : > { %v2339_v15 = vpack.c.bf16 %v1008_v14, %v1008_v14  ;;  %v2443_v16 = vpop.f32.mrb[13].mxu0 }
 0x5d6   : > { %v1011_v17 = vpop.f32.mrb[14].mxu0 }
 0x5d7   : > { %1018 = vrot.lane.b32.xlu1 %v2339_v15, %s2852_s28  ;;  %v2444_v19 = vpop.f32.mrb[15].mxu0 }
 0x5f2   : > { %v1127_v22 = vpop.f32.mrb[16].mxu0 }
 0x5f3   : > { %v2340_v23 = vpack.c.bf16 %v1127_v22, %v1127_v22  ;;  %v2455_v25 = vpop.f32.mrb[17].mxu0 }
 0x5f4   : > { %v1130_v26 = vpop.f32.mrb[18].mxu0 }
 0x5f5   : > { %1137 = vrot.lane.b32.xlu0 %v2340_v23, %s2853_s19  ;;  %v2456_v27 = vpop.f32.mrb[19].mxu0 }
 0x5fa   : > { %v1335_v28 = vpop.f32.mrb[20].mxu0 }
 0x5fb   : > { %v1336_v29 = vadd.f32 %v3098_v24, %v1335_v28  ;;  %v2471_v31 = vpop.f32.mrb[21].mxu0 }
 0x5fc   : > { %v1338_v32 = vpop.f32.mrb[22].mxu0 }
 0x5fd   : > { %v1341_v33 = vmul.f32 0.35355338, %v1336_v29  ;;  %v3208_v34 = vpack.c.bf16 %v1336_v29, %v1336_v29  ;;  %v2472_v35 = vpop.f32.mrb[23].mxu0 }
 0x5ff   : > { %1458 = vrot.lane.b32.xlu0 %v3208_v34, %s2842_s12  ;;  %1345 = vrot.lane.b32.xlu1 %v3208_v34, %s2840_s16  ;;  %v1342_v36 = vpack.c.bf16 %v1341_v33, %v1341_v33  ;;  %s3466_s12 = smov 40  }
 0x603   : > { %1576 = vrot.lane.b32.xlu0 %v3208_v34, %s2843_s27  ;;  %1456 = vrot.lane.b32.xlu1 %v1342_v36, %s2841_s9  ;;  %s3467_s27 = smov 8  }
 0x607   : > { %1694 = vrot.lane.b32.xlu0 %v3208_v34, %s2845_s21  ;;  %1574 = vrot.lane.b32.xlu1 %v1342_v36, %s2844_s20 }
 0x60b   : > { %1692 = vrot.lane.b32.xlu1 %v1342_v36, %s2846_s8 }
 0x641   : > { %v900_v24 = vpop.permute.xlu0 %899 }
 0x642   : > { %903 = vst.msk [vmem:[#allocation2] sm:$0xf] %vm902_vm5, %v900_v24 }
 0x649   : > { %v1019_v37 = vpop.permute.xlu1 %1018 }
 0x64a   : > { %1022 = vst.msk [vmem:[#allocation2] sm:$0xf] %vm1021_vm6, %v1019_v37 }
 0x667   : > { %v1138_v38 = vpop.permute.xlu0 %1137 }
 0x668   : > { %1141 = vst.msk [vmem:[#allocation2] sm:$0xf] %vm1140_vm7, %v1138_v38 }
 0x66f   : > { %v1142_v39 = vld [vmem:[#allocation2] sm:$0xf] }
 0x670   : > { %2462 = vmatmul.mubr.msk.bf16.vlgmr.msra.gmra.mrb[16].mxu1 %vm571_vm0, %v1142_v39 }
 0x671   : > { %v1346_v40 = vpop.permute.xlu1 %1345  ;;  %2475 = vmatprep.mubr.msk.bf16.mxu1 %vm2839_vm1, %v2838_v12  ;;  %v1459_v42 = vpop.permute.xlu0 %1458 }
 0x672   : > { %v1351_v41 = vsel %vm673_vm2, %v1346_v40, 0  ;;  %v1464_v43 = vsel %vm673_vm2, %v1459_v42, 0 }
 0x673   : > { %2474 = vmatpush3.bf16.xpose.msra.mxu1 %v1351_v41 }
 0x674   : > { %2485 = vmatprep.subr.bf16.mxu1 %v2838_v12 }
 0x675   : > { %v1577_v44 = vpop.permute.xlu0 %1576  ;;  %v1457_v30 = vpop.permute.xlu1 %1456 }
 0x676   : > { %v1582_v45 = vsel %vm673_vm2, %v1577_v44, 0 }
 0x679   : > { %v1695_v46 = vpop.permute.xlu0 %1694  ;;  %v1575_v47 = vpop.permute.xlu1 %1574 }
 0x67a   : > { %2476 = vmatmul.mubr.msk.bf16.vlgmr.msra.gmra.mrb[20].mxu1 %vm673_vm2, %v1342_v36  ;;  %v1700_v48 = vsel %vm673_vm2, %v1695_v46, 0 }
 0x67b   : > { %2486 = vmatpush3.bf16.xpose.msra.mxu1 %v1464_v43  ;;  %2487 = vmatprep.mubr.msk.bf16.mxu1 %vm2839_vm1, %v2838_v12 }
 0x67c   : > { %2497 = vmatprep.subr.bf16.mxu1 %v2838_v12 }
 0x67d   : > { %v1693_v49 = vpop.permute.xlu1 %1692 }
 0x682   : > { %2488 = vmatmul.mubr.msk.bf16.vlgmr.msra.gmra.mrb[24].mxu1 %vm673_vm2, %v1457_v30 }
 0x683   : > { %2498 = vmatpush3.bf16.xpose.msra.mxu1 %v1582_v45  ;;  %2499 = vmatprep.mubr.msk.bf16.mxu1 %vm2839_vm1, %v2838_v12 }
 0x684   : > { %2509 = vmatprep.subr.bf16.mxu1 %v2838_v12 }
 0x68a   : > { %2500 = vmatmul.mubr.msk.bf16.vlgmr.msra.gmra.mrb[28].mxu1 %vm673_vm2, %v1575_v47 }
 0x68b   : > { %2510 = vmatpush3.bf16.xpose.msra.mxu1 %v1700_v48  ;;  %2511 = vmatprep.mubr.msk.bf16.mxu1 %vm2839_vm1, %v2838_v12 }
 0x68c   : > { %2521 = vmatprep.subr.bf16.mxu1 %v2838_v12 }
 0x692   : > { %2512 = vmatmul.mubr.msk.bf16.vlgmr.msra.gmra.mrb[32].mxu1 %vm673_vm2, %v1693_v49 }
 0x693   : > { %2525 = vmatprep.mubr.msk.bf16.mxu1 %vm2839_vm1, %v2838_v12 }
 0x743   : > { %v1203_v51 = vpop.f32.mrb[16].mxu1 }
 0x744   : > { %v1204_v52 = vadd.f32 %v3250_v50, %v1203_v51  ;;  %v2463_v53 = vpop.f32.mrb[17].mxu1 }
 0x745   : > { %v1206_v54 = vpop.f32.mrb[18].mxu1 }
 0x746   : > { %v3254_v56 = vadd.f32 %v1204_v52, %v3060_v4  ;;  %v2464_v57 = vpop.f32.mrb[19].mxu1 }
 0x748   : > { %1242 = vst.msk [vmem:[#allocation4] sm:$0xff] %vm571_vm0, %v3254_v56 }
 0x74d   : > { %v1387_v58 = vpop.f32.mrb[20].mxu1 }
 0x74e   : > { %v2477_v59 = vpop.f32.mrb[21].mxu1  ;;  %v1393_v60 = vsel %vm673_vm2, %v1387_v58, -inf }
 0x74f   : > { %1394 = vmax.xlane.f32.xlu0 %v1393_v60  ;;  %v1390_v61 = vpop.f32.mrb[22].mxu1 }
 0x750   : > { %v2478_v62 = vpop.f32.mrb[23].mxu1 }
 0x755   : > { %v1500_v63 = vpop.f32.mrb[24].mxu1 }
 0x756   : > { %v2489_v0 = vpop.f32.mrb[25].mxu1  ;;  %v1506_v1 = vsel %vm673_vm2, %v1500_v63, -inf }
 0x757   : > { %1507 = vmax.xlane.f32.xlu1 %v1506_v1  ;;  %v1503_v2 = vpop.f32.mrb[26].mxu1 }
 0x758   : > { %v2490_v18 = vpop.f32.mrb[27].mxu1 }
 0x75d   : > { %v1618_v4 = vpop.f32.mrb[28].mxu1 }
 0x75e   : > { %v2501_v3 = vpop.f32.mrb[29].mxu1  ;;  %v1624_v5 = vsel %vm673_vm2, %v1618_v4, -inf }
 0x75f   : > { %1625 = vmax.xlane.f32.xlu0 %v1624_v5  ;;  %v1621_v6 = vpop.f32.mrb[30].mxu1 }
 0x760   : > { %v2502_v7 = vpop.f32.mrb[31].mxu1 }
 0x761   : > { %v2670_v7 = vld [vmem:[%s3423_s5] sm:$0xff]  }
 0x762   : > { %2522 = vmatpush3.bf16.msra.mxu1 %v2670_v7 }
 0x763   : > { %2523 = vmatprep.subr.bf16.mxu1 %v2838_v12 }
 0x765   : > { %v1736_v20 = vpop.f32.mrb[32].mxu1 }
 0x766   : > { %v2513_v8 = vpop.f32.mrb[33].mxu1  ;;  %v1742_v9 = vsel %vm673_vm2, %v1736_v20, -inf }
 0x767   : > { %1743 = vmax.xlane.f32.xlu0 %v1742_v9  ;;  %v1739_v10 = vpop.f32.mrb[34].mxu1  ;;  %v2671_v8 = vld [vmem:[%s3423_s5 + $0x8] sm:$0xff]  }
 0x768   : > { %v2514_v11 = vpop.f32.mrb[35].mxu1  ;;  %2524 = vmatpush3.bf16.msra.mxu1 %v2671_v8 }
 0x7dc   : > { %v1395_v13 = vpop.xlane.xlu0 %1394 }
 0x7dd   : > { %v1396_v14 = vsub.f32 %v1387_v58, %v1395_v13 }
 0x7df   : > { %v1397_v15 = vmul.f32 1.442695, %v1396_v14 }
 0x7e1   : > { %2692 = vpow2.f32 %v1397_v15 }
 0x7e4   : > { %v1508_v16 = vpop.xlane.xlu1 %1507 }
 0x7e5   : > { %v1509_v17 = vsub.f32 %v1500_v63, %v1508_v16 }
 0x7e7   : > { %v1510_v19 = vmul.f32 1.442695, %v1509_v17 }
 0x7e9   : > { %2694 = vpow2.f32 %v1510_v19 }
 0x7eb   : > { %v2693_v21 = vpop.eup %2692 }
 0x7ec   : > { %v1399_v22 = vsel %vm673_vm2, %v2693_v21, 0.0  ;;  %v1626_v23 = vpop.xlane.xlu0 %1625 }
 0x7ed   : > { %1400 = vadd.xlane.f32.xlu1 %v1399_v22  ;;  %v1627_v33 = vsub.f32 %v1618_v4, %v1626_v23 }
 0x7ef   : > { %v1628_v35 = vmul.f32 1.442695, %v1627_v33 }
 0x7f3   : > { %v2695_v25 = vpop.eup %2694 }
 0x7f4   : > { %v1744_v26 = vpop.xlane.xlu0 %1743  ;;  %v1512_v27 = vsel %vm673_vm2, %v2695_v25, 0.0 }
 0x7f5   : > { %v1745_v28 = vsub.f32 %v1736_v20, %v1744_v26  ;;  %1513 = vadd.xlane.f32.xlu0 %v1512_v27 }
 0x7f7   : > { %v1746_v29 = vmul.f32 1.442695, %v1745_v28 }
 0x7f9   : > { %2696 = vpow2.f32 %v1746_v29 }
 0x7fa   : > { %2698 = vpow2.f32 %v1628_v35 }
 0x7fe   : > { %1405 = vrot.lane.b32.xlu1 %v3208_v34, %s2847_s18 }
 0x803   : > { %v2697_v31 = vpop.eup %2696 }
 0x804   : > { %v1748_v32 = vsel %vm673_vm2, %v2697_v31, 0.0  ;;  %v2699_v36 = vpop.eup %2698 }
 0x805   : > { %1749 = vadd.xlane.f32.xlu0 %v1748_v32  ;;  %v1630_v24 = vsel %vm673_vm2, %v2699_v36, 0.0 }
 0x81b   : > { %1518 = vrot.lane.b32.xlu0 %v3208_v34, %s2849_s22 }
 0x822   : > { %1631 = vadd.xlane.f32.xlu1 %v1630_v24 }
 0x833   : > { %1636 = vrot.lane.b32.xlu1 %v3208_v34, %s2848_s29 }
 0x837   : > { %1754 = vrot.lane.b32.xlu1 %v3208_v34, %s3466_s12 }
 0x87a   : > { %v1401_v37 = vpop.xlane.xlu1 %1400 }
 0x87b   : > { %2700 = vrcp.f32 %v1401_v37 }
 0x87e   : > { %v1406_v38 = vpop.permute.xlu1 %1405 }
 0x87f   : > { %v1411_v39 = vsel %vm737_vm3, %v1406_v38, 0 }
 0x880   : > { %2480 = vmatpush3.bf16.msra.mxu0 %v1411_v39 }
 0x881   : > { %2491 = vmatprep.subr.bf16.mxu0 %v2838_v12 }
 0x882   : > { %v1514_v41 = vpop.xlane.xlu0 %1513 }
 0x883   : > { %2702 = vrcp.f32 %v1514_v41 }
 0x885   : > { %v2701_v40 = vpop.eup %2700 }
 0x886   : > { %v1403_v42 = vmul.f32 %v2701_v40, %v2693_v21  ;;  %v1212_v21 = vsel %vm571_vm0, %v3254_v56, 0.0 }
 0x888   : > { %v1404_v43 = vpack.c.bf16 %v1403_v42, %v1403_v42 }
 0x88a   : > { %2482 = vmatmul.mubr.msk.bf16.vlgmr.msra.gmra.mrb[24].mxu0 %vm673_vm2, %v1404_v43 }
 0x88b   : > { %2493 = vmatprep.mubr.msk.bf16.mxu0 %vm2839_vm1, %v2838_v12 }
 0x88d   : > { %v2703_v44 = vpop.eup %2702 }
 0x88e   : > { %v1516_v30 = vmul.f32 %v2703_v44, %v2695_v25 }
 0x890   : > { %v1517_v47 = vpack.c.bf16 %v1516_v30, %v1516_v30 }
 0x892   : > { %v1750_v34 = vpop.xlane.xlu0 %1749 }
 0x896   : > { %v1519_v45 = vpop.permute.xlu0 %1518 }
 0x897   : > { %v1524_v46 = vsel %vm737_vm3, %v1519_v45, 0  ;;  %v2292_v45 = vld [vmem:[%s3469_s15] ss:$0 sm:$0xff] }
 0x898   : > { %2492 = vmatpush3.bf16.msra.mxu0 %v1524_v46 }
 0x899   : > { %2503 = vmatprep.subr.bf16.mxu0 %v2838_v12 }
 0x89b   : > { %2494 = vmatmul.mubr.msk.bf16.vlgmr.msra.gmra.mrb[28].mxu0 %vm673_vm2, %v1517_v47 }
 0x89c   : > { %2505 = vmatprep.mubr.msk.bf16.mxu0 %vm2839_vm1, %v2838_v12 }
 0x8af   : > { %v1632_v48 = vpop.xlane.xlu1 %1631 }
 0x8b0   : > { %2704 = vrcp.f32 %v1632_v48 }
 0x8b1   : > { %2706 = vrcp.f32 %v1750_v34 }
 0x8b3   : > { %v1637_v49 = vpop.permute.xlu1 %1636 }
 0x8b4   : > { %v1642_v51 = vsel %vm737_vm3, %v1637_v49, 0 }
 0x8b5   : > { %2504 = vmatpush3.bf16.msra.mxu0 %v1642_v51 }
 0x8b6   : > { %2515 = vmatprep.subr.bf16.mxu0 %v2838_v12 }
 0x8b7   : > { %v1755_v54 = vpop.permute.xlu1 %1754 }
 0x8b8   : > { %v1760_v59 = vsel %vm737_vm3, %v1755_v54, 0 }
 0x8ba   : > { %v2705_v52 = vpop.eup %2704 }
 0x8bb   : > { %v1634_v53 = vmul.f32 %v2705_v52, %v2699_v36  ;;  %v2707_v58 = vpop.eup %2706 }
 0x8bc   : > { %v1752_v60 = vmul.f32 %v2707_v58, %v2697_v31 }
 0x8bd   : > { %v1635_v57 = vpack.c.bf16 %v1634_v53, %v1634_v53 }
 0x8be   : > { %v1753_v61 = vpack.c.bf16 %v1752_v60, %v1752_v60 }
 0x8bf   : > { %2506 = vmatmul.mubr.msk.bf16.vlgmr.msra.gmra.mrb[32].mxu0 %vm673_vm2, %v1635_v57 }
 0x8c0   : > { %2516 = vmatpush3.bf16.msra.mxu0 %v1760_v59  ;;  %2517 = vmatprep.mubr.msk.bf16.mxu0 %vm2839_vm1, %v2838_v12 }
 0x8c7   : > { %2518 = vmatmul.mubr.msk.bf16.vlgmr.msra.gmra.mrb[36].mxu0 %vm673_vm2, %v1753_v61 }
 0x95d   : > { %v1447_v62 = vpop.f32.mrb[24].mxu0 }
 0x95e   : > { %v1453_v63 = vpack.c.bf16 %v1447_v62, %v1447_v62  ;;  %v2483_v0 = vpop.f32.mrb[25].mxu0 }
 0x95f   : > { %v1450_v1 = vpop.f32.mrb[26].mxu0 }
 0x960   : > { %1454 = vst.msk [vmem:[#allocation2] sm:$0xf] %vm782_vm4, %v1453_v63  ;;  %v2484_v2 = vpop.f32.mrb[27].mxu0 }
 0x96e   : > { %v1560_v18 = vpop.f32.mrb[28].mxu0 }
 0x96f   : > { %v2341_v4 = vpack.c.bf16 %v1560_v18, %v1560_v18  ;;  %v2495_v3 = vpop.f32.mrb[29].mxu0 }
 0x970   : > { %v1563_v5 = vpop.f32.mrb[30].mxu0 }
 0x971   : > { %1570 = vrot.lane.b32.xlu0 %v2341_v4, %s3467_s27  ;;  %v2496_v6 = vpop.f32.mrb[31].mxu0 }
 0x992   : > { %v1678_v20 = vpop.f32.mrb[32].mxu0 }
 0x993   : > { %v2342_v9 = vpack.c.bf16 %v1678_v20, %v1678_v20  ;;  %v2507_v10 = vpop.f32.mrb[33].mxu0 }
 0x994   : > { %v1681_v11 = vpop.f32.mrb[34].mxu0 }
 0x995   : > { %1688 = vrot.lane.b32.xlu1 %v2342_v9, %s2852_s28  ;;  %v2508_v13 = vpop.f32.mrb[35].mxu0 }
 0x99a   : > { %v1796_v14 = vpop.f32.mrb[36].mxu0 }
 0x99b   : > { %v2343_v15 = vpack.c.bf16 %v1796_v14, %v1796_v14  ;;  %v2519_v16 = vpop.f32.mrb[37].mxu0 }
 0x99c   : > { %v1799_v17 = vpop.f32.mrb[38].mxu0 }
 0x99d   : > { %1806 = vrot.lane.b32.xlu0 %v2343_v15, %s2853_s19  ;;  %v2520_v19 = vpop.f32.mrb[39].mxu0  ;;  %s3468_s19 = sld [smem:[#allocation20_spill]] }
 0x9a3   : > { %v2291_v34 = vld [vmem:[%s3468_s19] ss:$0 sm:$0xff] }
 0x9b9   : > { %1213 = vadd.xlane.f32.xlu1 %v1212_v21 }
 0x9e3   : > { %v1571_v22 = vpop.permute.xlu0 %1570 }
 0x9e4   : > { %1573 = vst.msk [vmem:[#allocation2] sm:$0xf] %vm902_vm5, %v1571_v22 }
 0xa07   : > { %v1689_v12 = vpop.permute.xlu1 %1688 }
 0xa08   : > { %1691 = vst.msk [vmem:[#allocation2] sm:$0xf] %vm1021_vm6, %v1689_v12 }
 0xa0f   : > { %v1807_v23 = vpop.permute.xlu0 %1806 }
 0xa10   : > { %1809 = vst.msk [vmem:[#allocation2] sm:$0xf] %vm1140_vm7, %v1807_v23 }
 0xa17   : > { %v1810_v25 = vld [vmem:[#allocation2] sm:$0xf] }
 0xa18   : > { %2526 = vmatmul.mubr.msk.bf16.vlgmr.msra.gmra.mrb[36].mxu1 %vm571_vm0, %v1810_v25 }
 0xa46   : > { %v1214_v26 = vpop.xlane.xlu1 %1213 }
 0xa47   : > { %v1215_v27 = vmul.f32 0.03125, %v1214_v26 }
 0xa49   : > { %v1216_v29 = vsub.f32 %v3254_v56, %v1215_v27 }
 0xa4b   : > { %v1217_v37 = vmul.f32 %v1216_v29, %v1216_v29 }
 0xa4d   : > { %v1218_v38 = vsel %vm571_vm0, %v1217_v37, 0.0 }
 0xaeb   : > { %v1871_v28 = vpop.f32.mrb[36].mxu1 }
 0xaec   : > { %v1872_v31 = vadd.f32 %v3250_v50, %v1871_v28  ;;  %v2527_v32 = vpop.f32.mrb[37].mxu1 }
 0xaed   : > { %v1874_v33 = vpop.f32.mrb[38].mxu1 }
 0xaee   : > { %v1877_v35 = vadd.f32 %v3137_v55, %v1872_v31  ;;  %v2528_v36 = vpop.f32.mrb[39].mxu1 }
 0xaf0   : > { %1913 = vst.msk [vmem:[#allocation4 + $0x8] sm:$0xff] %vm571_vm0, %v1877_v35  ;;  %v1880_v24 = vsel %vm571_vm0, %v1877_v35, 0.0 }
 0xaf1   : > { %1881 = vadd.xlane.f32.xlu0 %v1880_v24 }
 0xaf5   : > { %1219 = vadd.xlane.f32.xlu0 %v1218_v38 }
 0xb7e   : > { %v1882_v39 = vpop.xlane.xlu0 %1881 }
 0xb7f   : > { %v1883_v40 = vmul.f32 0.03125, %v1882_v39 }
 0xb81   : > { %v1884_v41 = vsub.f32 %v1877_v35, %v1883_v40 }
 0xb82   : > { %v1220_v56 = vpop.xlane.xlu0 %1219 }
 0xb83   : > { %v1221_v42 = vmul.f32 0.03125, %v1220_v56  ;;  %v1885_v50 = vmul.f32 %v1884_v41, %v1884_v41 }
 0xb85   : > { %v1222_v43 = vadd.f32 1e-06, %v1221_v42  ;;  %v1886_v44 = vsel %vm571_vm0, %v1885_v50, 0.0 }
 0xb86   : > { %1887 = vadd.xlane.f32.xlu1 %v1886_v44 }
 0xb87   : > { %2708 = vrsqrt.f32 %v1222_v43 }
 0xb91   : > { %v2709_v55 = vpop.eup %2708 }
 0xb92   : > { %v1224_v30 = vmul.f32 %v2709_v55, %v1216_v29 }
 0xb94   : > { %v1231_v46 = vmul.f32 %v2291_v34, %v1224_v30 }
 0xb96   : > { %v1238_v47 = vadd.f32 %v2292_v45, %v1231_v46 }
 0xb98   : > { %v1239_v48 = vpack.c.bf16 %v1238_v47, %v1238_v47 }
 0xb9a   : > { %1241 = vst.msk [vmem:[#allocation3] sm:$0xf] %vm1240_vm8, %v1239_v48 }
 0xc13   : > { %v1888_v49 = vpop.xlane.xlu1 %1887 }
 0xc14   : > { %v1889_v51 = vmul.f32 0.03125, %v1888_v49 }
 0xc16   : > { %v1890_v52 = vadd.f32 1e-06, %v1889_v51 }
 0xc18   : > { %2710 = vrsqrt.f32 %v1890_v52 }
 0xc22   : > { %v2711_v53 = vpop.eup %2710 }
 0xc23   : > { %v1892_v54 = vmul.f32 %v2711_v53, %v1884_v41 }
 0xc25   : > { %v1899_v57 = vmul.f32 %v2291_v34, %v1892_v54 }
 0xc27   : > { %v1906_v58 = vadd.f32 %v2292_v45, %v1899_v57 }
 0xc29   : > { %v1907_v59 = vpack.c.bf16 %v1906_v58, %v1906_v58 }
 0xc2b   : > { %v1909_v60 = vrot.slane %v1907_v59, 4 }
 0xc2d   : > { %1912 = vst.msk [vmem:[#allocation3] sm:$0xf0] %vm1911_vm9, %v1909_v60 }
 0xc2e PF: > { %s3470_s16 = scalar_lea.vmem [#allocation5], %s3031_s24  ;;  %v2854_v62 = vmov 0.0   ;;  %vm2855_vm10 = vmmov 0   ;;  %v2714_v0 = vld [vmem:[%s3053_s23] sm:$0xff]   ;;  %vm1938_vm11 = vcmask 261120   ;;  %v2715_v2 = vld [vmem:[%s3053_s23 + $0x8] sm:$0xff]   ;;  %s3472_s27 = scalar_lea.vmem %s3428_s10, %s3039_s13 }
 0xc2f   : > { %v2712_v61 = vld [vmem:[%s3470_s16] sm:$0xff]   ;;  %2529 = vmatprep.subr.bf16.mxu0 %v2854_v62  ;;  %2537 = vmatprep.subr.bf16.mxu1 %v2854_v62  ;;  %s3471_s9 = smov %s3470_s16  ;;  %v1994_v31 = vld [vmem:[#allocation4 + $0x8] sm:$0xff]  ;;  %p2329_p7 = scmp.ne.s32.totalorder %s2820_s30, 1 }
 0xc30   : > { %2530 = vmatpush3.bf16.msra.mxu0 %v2712_v61  ;;  %v2713_v63 = vld [vmem:[%s3471_s9 + $0x8] sm:$0xff]   ;;  %2533 = vmatprep.mubr.msk.bf16.mxu0 %vm2855_vm10, %v2854_v62  ;;  %v2716_v18 = vld [vmem:[%s3053_s23 + $0x10] sm:$0xff]   ;;  %v2717_v4 = vld [vmem:[%s3053_s23 + $0x18] sm:$0xff]   ;;  %s3473_s20 = sld [smem:[#allocation23_spill]] (!%p2329_p7) }
 0xc31   : > { %2531 = vmatprep.subr.bf16.mxu0 %v2854_v62  ;;  %2553 = vmatprep.mubr.msk.bf16.mxu1 %vm2855_vm10, %v2854_v62  ;;  %v2718_v3 = vld [vmem:[%s3053_s23 + $0x20] sm:$0xff]   ;;  %v2719_v5 = vld [vmem:[%s3053_s23 + $0x28] sm:$0xff]   ;;  %v2720_v6 = vld [vmem:[%s3053_s23 + $0x30] sm:$0xff]  }
 0xc32   : > { %2538 = vmatpush3.bf16.msra.mxu1 %v2714_v0  ;;  %v2721_v7 = vld [vmem:[%s3053_s23 + $0x38] sm:$0xff]   ;;  %v2317_v20 = vld [vmem:[%s3472_s27] ss:$0 sm:$0xff]  ;;  %v1993_v28 = vld [vmem:[#allocation4] sm:$0xff] }
 0xc33   : > { %2539 = vmatprep.subr.bf16.mxu1 %v2854_v62 }
 0xc34   : > { %v1914_v1 = vld [vmem:[#allocation3] sm:$0xff]  ;;  %2532 = vmatpush3.bf16.msra.mxu0 %v2713_v63 }
 0xc36   : > { %2540 = vmatpush3.bf16.msra.mxu1 %v2715_v2  ;;  %v2330_v38 = vld [vmem:[%s3473_s20] ss:$0 sm:$0xff] (!%p2329_p7) }
 0xc37   : > { %2534 = vmatmul.mubr.msk.bf16.vlgmr.msra.gmra.mrb[0].mxu0 %vm1938_vm11, %v1914_v1  ;;  %2541 = vmatprep.subr.bf16.mxu1 %v2854_v62 }
 0xc3a   : > { %2542 = vmatpush3.bf16.msra.mxu1 %v2716_v18 }
 0xc3b   : > { %2543 = vmatprep.subr.bf16.mxu1 %v2854_v62 }
 0xc3e   : > { %2544 = vmatpush3.bf16.msra.mxu1 %v2717_v4 }
 0xc3f   : > { %2545 = vmatprep.subr.bf16.mxu1 %v2854_v62 }
 0xc42   : > { %2546 = vmatpush3.bf16.msra.mxu1 %v2718_v3 }
 0xc43   : > { %2547 = vmatprep.subr.bf16.mxu1 %v2854_v62 }
 0xc46   : > { %2548 = vmatpush3.bf16.msra.mxu1 %v2719_v5 }
 0xc47   : > { %2549 = vmatprep.subr.bf16.mxu1 %v2854_v62 }
 0xc4a   : > { %2550 = vmatpush3.bf16.msra.mxu1 %v2720_v6 }
 0xc4b   : > { %2551 = vmatprep.subr.bf16.mxu1 %v2854_v62 }
 0xc4e   : > { %2552 = vmatpush3.bf16.msra.mxu1 %v2721_v7 }
 0xd0a   : > { %v1976_v8 = vpop.f32.mrb[0].mxu0 }
 0xd0b   : > { %v1977_v9 = vadd.f32 %v2317_v20, %v1976_v8  ;;  %v2535_v10 = vpop.f32.mrb[1].mxu0 }
 0xd0c   : > { %v1979_v11 = vpop.f32.mrb[2].mxu0 }
 0xd0d   : > { %v1985_v13 = vmul.f32 0.70710677, %v1977_v9  ;;  %v1980_v14 = vadd.f32 %v2317_v20, %v1979_v11  ;;  %v2536_v15 = vpop.f32.mrb[3].mxu0  ;;  %v1983_v22 = vmul.f32 0.5, %v1977_v9 }
 0xd0f   : > { %2722 = verf.f32 %v1985_v13  ;;  %v1986_v16 = vmul.f32 0.70710677, %v1980_v14  ;;  %v1984_v12 = vmul.f32 0.5, %v1980_v14 }
 0xd11   : > { %2724 = verf.f32 %v1986_v16 }
 0xd19   : > { %v2723_v17 = vpop.eup %2722 }
 0xd1a   : > { %v1989_v19 = vadd.f32 1.0, %v2723_v17 }
 0xd1b   : > { %v2725_v21 = vpop.eup %2724 }
 0xd1c   : > { %v1990_v23 = vadd.f32 1.0, %v2725_v21  ;;  %v1991_v25 = vmul.f32 %v1989_v19, %v1983_v22 }
 0xd1e   : > { %v1992_v26 = vmul.f32 %v1990_v23, %v1984_v12 }
 0xd20   : > { %v1995_v27 = vpack.c.bf16 %v1992_v26, %v1991_v25 }
 0xd22   : > { %2554 = vmatmul.mubr.bf16.vlgmr.msra.gmra.mrb[0].mxu1 %v1995_v27 }
 0xdf4   : > { %2108 = sbr.rel (%p2329_p7) target bundleno = 3589 (0xe05), region = 121 }
 0xdf5   : > { %v2094_v29 = vpop.f32.mrb[0].mxu1 }
 0xdf6   : > { %v2101_v32 = vadd.f32 %v2094_v29, %v1993_v28  ;;  %v2555_v33 = vpop.f32.mrb[1].mxu1 }
 0xdf7   : > { %v2097_v35 = vpop.f32.mrb[2].mxu1 }
 0xdf8   : > { %2103 = vst.msk [vmem:[#allocation4] sm:$0xff] %vm1938_vm11, %v2101_v32  ;;  %v2102_v36 = vadd.f32 %v2097_v35, %v1994_v31  ;;  %v2556_v24 = vpop.f32.mrb[3].mxu1 }
 0xdfa   : > { %2104 = vst.msk [vmem:[#allocation4 + $0x8] sm:$0xff] %vm1938_vm11, %v2102_v36 }
 0xdff   : > { %v2109_v37 = vld [vmem:[#allocation4] sm:$0xff] }
 0xe00   : > { %v2117_v40 = vadd.f32 %v2330_v38, %v2109_v37 }
 0xe01   : > { %v2119_v39 = vld [vmem:[#allocation4 + $0x8] sm:$0xff] }
 0xe02   : > { %v2127_v41 = vadd.f32 %v2330_v38, %v2119_v39  ;;  %2118 = vst.msk [vmem:[%s3056_s17] sm:$0xff] %vm1938_vm11, %v2117_v40 }
 0xe04   : > { %2332 = vst.msk [vmem:[%s3056_s17 + $0x8] sm:$0xff] %vm1938_vm11, %v2127_v41 }
 0xe05 PF: > { %s2344_s30 = sshll.u32 %s2824_s14, 8  ;;  %s3474_s18 = sld [smem:[#allocation24_spill]] }
 0xe06   : > { %s2144_s22 = sshll.u32 %s3056_s17, 4  ;;  %s3475_s19 = sand.u32 1, %s2804_s26   ;;  %s3356_s22 = int_to_ptr.vmem [resolvable:$true] %s2144_s22 }
 0xe07   : > { %s3360_s28 = scalar_lea.sflag [#allocation7], %s3475_s19  ;;  %s2726_s25 = scalar_lea.vmem %s3356_s22, 256 }
 0xe08   : > { %p2727_p8 = scmp.ne.s32.totalorder %s3356_s22, %s2726_s25  ;;  %s2856_s14 = smov [#allocation6]  }
 0xe09   : > { %s2730_s15 = sshll.u32 %s2856_s14, 4  ;;  %s2731_s15 = int_to_ptr.vmem [resolvable:$false] %s2730_s15 }
 0xe0a   : > { %p2728_p9 = pnand %p2727_p8, %p3008_p10  ;;  %s2732_s16 = scalar_lea.vmem %s2731_s15, 512 }
 0xe0b   : > { %s3353_s29 = scalar_lea.hbm %s3474_s18, %s2344_s30  ;;  %p2733_p13 = scmp.lt.s32.totalorder %s3356_s22, %s2731_s15 }
 0xe0c   : > { %p2729_p11 = pneg %p2728_p9  ;;  %p2734_p0 = scmp.lt.s32.totalorder %s2732_s16, %s2726_s25 }
 0xe0e   : > { %p2735_p1 = por %p2734_p0, %p2733_p13 }
 0xe10   : > { %p2736_p2 = pnand %p2735_p1, %p2729_p11 }
 0xe12   : > { %2739 = shalt.err (!%p2736_p2)
}
 0xe13   : > { %s2740_s17 = scalar_lea.hbm %s3353_s29, 256  ;;  %s2744_s12 = scalar_lea.hbm %s3474_s18, 512 }
 0xe14   : > { %p2741_p3 = scmp.ne.s32.totalorder %s3353_s29, %s2740_s17  ;;  %p2745_p6 = scmp.lt.u32.totalorder %s3353_s29, %s3474_s18 }
 0xe15   : > { %p2746_p7 = scmp.lt.u32.totalorder %s2744_s12, %s2740_s17  ;;  %p2748_p9 = scmp.lt.u32.totalorder %s2740_s17, %s3353_s29 }
 0xe16   : > { %p2742_p4 = pnand %p2741_p3, %p3008_p10 }
 0xe17   : > { %p2747_p8 = por %p2746_p7, %p2745_p6 }
 0xe18   : > { %p2743_p5 = pneg %p2742_p4 }
 0xe19   : > { %p2749_p11 = por %p2748_p9, %p2747_p8 }
 0xe1b   : > { %p2750_p13 = pnand %p2749_p11, %p2743_p5 }
 0xe1d   : > { %2753 = shalt.err (!%p2750_p13)
}
 0xe1e   : > { %s2857_s13 = smov 128   ;;  %s2858_s20 = smov 8  }
 0xe1f   : > { %2557 = dma.vmem_to_hbm [thread:$0]  (%p3008_p10), %s3356_s22, 256, %s3353_s29, %s3360_s28, %s2857_s13, %s2857_s13, %s2858_s20  }
 0xe20 PF: > { %s3476_s30 = sld [smem:[#allocation14_spill]]  ;;  %s3477_s21 = sld [smem:[#allocation9_spill]] }
 0xe26   : > { %p2563_p0 = scmp.ge.s32.totalorder %s3476_s30, 2  ;;  %s2159_s19 = sand.u32 1, %s3477_s21  }
 0xe27   : > { %s2160_s25 = scalar_lea.sflag [#allocation7], %s2159_s19 }
 0xe28   : > { %p2560_p1 = pnand %p2563_p0, %p3015_p12 }
 0xe2a   : > { %2795 = dma.done.wait (!%p2560_p1), %s2160_s25, 256  }
 0xe2b   : > { %2797 = vsyncadd (!%p2560_p1), %s2160_s25, 4294967040  ;;  %s26_s17 = sadd.s32 1, %s3476_s30   ;;  %s3479_s14 = sld [smem:[#allocation10_spill]] }
 0xe2c   : > { %p23_p2 = scmp.ge.s32.totalorder %s26_s17, 6   ;;  %s3480_s27 = sld [smem:[#allocation18_spill]] }
 0xe2d   : > { %s3481_s28 = sld [smem:[#allocation11_spill]]  ;;  %s3482_s29 = sld [smem:[#allocation17_spill]] }
 0xe2e   : > { %s3483_s30 = sld [smem:[#allocation12_spill]]  ;;  %s3484_s7 = sld [smem:[#allocation13_spill]] }
 0xe2f   : > { %s3485_s15 = sld [smem:[#allocation15_spill]]  ;;  %s3486_s16 = sld [smem:[#allocation16_spill]] }
 0xe30   : > { %s3487_s25 = smov %s2804_s26  ;;  %25 = sbr.rel (!%p23_p2) target bundleno = 12 (0xc), region = 172 }
 0xe31   : > { %s3488_s26 = smov %s3479_s14 }
 0xe34   : > { %s3489_s14 = smov %s3484_s7 }
 0xe37   :  { %2165 = vsyncpa [#allocation7], 1 }
 0xe38   :  { %2167 = vsyncpa [#allocation7 + $0x1], 1 }

</bundles_post_ra>
